<compile_context>
chip_gen: v5e
topology: v5e:2x2
jax: 0.10.0
libtpu: 0.0.40
codegen_flags: <defaults>
</compile_context>

<pallas_src>
import jax
import jax.numpy as jnp
from jax import lax
from jax.experimental import pallas as pl
from jax.experimental.pallas import tpu as pltpu

N_EMBD = 192
BLOCK_SIZE = 64
NUM_HEADS = 4
HEAD_SIZE = N_EMBD // NUM_HEADS  # 48
DROPOUT = 0.2  # identity at inference


def fused_mha_kernel(x_ref, wqkv_ref, wproj_ref, bproj_ref, o_ref):
    # x_ref    : (1, T, C)       current batch element
    # wqkv_ref : (C, 3*H*hs)     columns ordered [Q heads 0..H-1 | K heads | V heads]
    # wproj_ref: (C, C)          already transposed so y = cat @ wproj + b
    # bproj_ref: (1, C)
    # o_ref    : (1, T, C)       lane-dense output block
    x = x_ref[0]                                                          # (T, C)
    qkv = jnp.dot(x, wqkv_ref[...], preferred_element_type=jnp.float32)   # (T, 3*H*hs)

    T = x.shape[0]
    scale = float(N_EMBD) ** -0.5  # PyTorch uses C = n_embd here, not head_size
    row = lax.broadcasted_iota(jnp.int32, (T, T), 0)
    col = lax.broadcasted_iota(jnp.int32, (T, T), 1)
    causal = col <= row

    h_off = NUM_HEADS * HEAD_SIZE
    q_all = qkv[:, :h_off]                     # (T, H*hs)
    k_all = qkv[:, h_off:2 * h_off]
    v_all = qkv[:, 2 * h_off:]

    head_outs = []
    for h in range(NUM_HEADS):                 # tiny static unroll over 4 heads
        s = h * HEAD_SIZE
        q = q_all[:, s:s + HEAD_SIZE]          # (T, hs)
        k = k_all[:, s:s + HEAD_SIZE]
        v = v_all[:, s:s + HEAD_SIZE]

        # q @ k^T without materializing a transpose: contract last dims.
        scores = lax.dot_general(q, k, (((1,), (1,)), ((), ())),
                                 preferred_element_type=jnp.float32)      # (T, T)
        scores = scores * scale                 # scale AFTER matmul (matches reference)
        scores = jnp.where(causal, scores, -jnp.inf)
        scores = scores - jnp.max(scores, axis=-1, keepdims=True)
        p = jnp.exp(scores)
        p = p / jnp.sum(p, axis=-1, keepdims=True)   # exact softmax normalization
        # TODO(synk): attention-weight dropout omitted (eval mode identity).
        head_outs.append(
            jnp.dot(p, v, preferred_element_type=jnp.float32))            # (T, hs)

    cat = jnp.concatenate(head_outs, axis=-1)                             # (T, C)
    y = jnp.dot(cat, wproj_ref[...], preferred_element_type=jnp.float32)  # (T, C)
    y = y + bproj_ref[...]
    # TODO(synk): output dropout omitted (eval mode identity).
    o_ref[0] = y.astype(o_ref.dtype)


def multi_head_attention(x, wq, wk, wv, w_proj, b_proj):
    """x: (B, T, C); wq/wk/wv: (H, C, hs); w_proj: (C, C) [PyTorch (out,in)]; b_proj: (C,)."""
    B, T, C = x.shape
    H, _, hs = wq.shape

    # Pack all heads' Q, K, V projections into one (C, 3*H*hs) matrix, ordered
    # [Q_h0..Q_h{H-1} | K_h0.. | V_h0..] to match the in-kernel slicing and the
    # PyTorch head-concat order.
    def pack(w):  # (H, C, hs) -> (C, H*hs)
        return jnp.transpose(w, (1, 0, 2)).reshape(C, H * hs)

    w_qkv = jnp.concatenate([pack(wq), pack(wk), pack(wv)], axis=1)   # (C, 3*H*hs)
    w_proj_t = w_proj.T                 # y = cat @ W^T + b, matching nn.Linear
    b2 = b_proj.reshape(1, C)

    out = pl.pallas_call(
        fused_mha_kernel,
        out_shape=jax.ShapeDtypeStruct((B, T, C), x.dtype),
        grid_spec=pltpu.PrefetchScalarGridSpec(
            num_scalar_prefetch=0,
            grid=(B,),
            in_specs=[
                pl.BlockSpec((1, T, C), lambda b: (b, 0, 0)),
                pl.BlockSpec((C, 3 * H * hs), lambda b: (0, 0)),   # VMEM-resident
                pl.BlockSpec((C, C), lambda b: (0, 0)),            # VMEM-resident
                pl.BlockSpec((1, C), lambda b: (0, 0)),            # VMEM-resident
            ],
            out_specs=pl.BlockSpec((1, T, C), lambda b: (b, 0, 0)),
        ),
        compiler_params=pltpu.CompilerParams(
            # batch axis parallel -> shards across v7x's 2 TensorCores; no-op on v5e/v6e
            dimension_semantics=("parallel",),
        ),
    )(x, w_qkv, w_proj_t, b2)

    return out


def _reference(x, wq, wk, wv, w_proj, b_proj):
    """Pure-JAX reference mirroring the PyTorch forward (eval mode)."""
    B, T, C = x.shape
    outs = []
    for h in range(wq.shape[0]):
        q = x @ wq[h]
        k = x @ wk[h]
        v = x @ wv[h]
        wei = jnp.einsum("btd,bsd->bts", q, k) * (C ** -0.5)
        mask = jnp.tril(jnp.ones((T, T), dtype=bool))
        wei = jnp.where(mask, wei, -jnp.inf)
        wei = jax.nn.softmax(wei, axis=-1)
        outs.append(jnp.einsum("bts,bsd->btd", wei, v))
    cat = jnp.concatenate(outs, axis=-1)
    return cat @ w_proj.T + b_proj


if __name__ == "__main__":
    key = jax.random.PRNGKey(0)
    k_x, k_q, k_k, k_v, k_pw, k_pb = jax.random.split(key, 6)

    B, T = 2, BLOCK_SIZE  # T = 64 (== block_size), C = 192, 4 heads of size 48
    x = jax.random.normal(k_x, (B, T, N_EMBD), dtype=jnp.float32)

    # Deterministic parameter init (PyTorch Linear-style uniform bounds).
    bound_qkv = 1.0 / (N_EMBD ** 0.5)
    wq = jax.random.uniform(k_q, (NUM_HEADS, N_EMBD, HEAD_SIZE), jnp.float32,
                            -bound_qkv, bound_qkv)
    wk = jax.random.uniform(k_k, (NUM_HEADS, N_EMBD, HEAD_SIZE), jnp.float32,
                            -bound_qkv, bound_qkv)
    wv = jax.random.uniform(k_v, (NUM_HEADS, N_EMBD, HEAD_SIZE), jnp.float32,
                            -bound_qkv, bound_qkv)
    w_proj = jax.random.uniform(k_pw, (N_EMBD, N_EMBD), jnp.float32,
                                -bound_qkv, bound_qkv)
    b_proj = jax.random.uniform(k_pb, (N_EMBD,), jnp.float32,
                                -bound_qkv, bound_qkv)

    out = multi_head_attention(x, wq, wk, wv, w_proj, b_proj)
    out = jax.block_until_ready(out)

    ref = _reference(x, wq, wk, wv, w_proj, b_proj)
    assert out.shape == (B, T, N_EMBD)
    # The kernel now mirrors the reference op-for-op, so interpret-mode results are
    # essentially bit-identical.  The 1e-2 tolerance only absorbs the compiled-mode
    # case where Mosaic's f32 MXU matmul passes differ from XLA's default dot
    # precision (worst observed drift is a few 1e-3); genuine bugs (wrong head order,
    # wrong scale, wrong mask) produce errors >= 5e-2 and still fail.
    assert jnp.allclose(out, ref, rtol=1e-2, atol=1e-2), "mismatch vs reference"

    print("KERNEL_OK")
</pallas_src>

<mosaic_0001>
module attributes {stable_mosaic.version = 11 : i64} {
  func.func @fused_mha_kernel(%arg0: i32, %arg1: memref<1x64x192xf32, #tpu.memory_space<vmem>>, %arg2: memref<192x576xf32, #tpu.memory_space<vmem>>, %arg3: memref<192x192xf32, #tpu.memory_space<vmem>>, %arg4: memref<1x192xf32, #tpu.memory_space<vmem>>, %arg5: memref<1x64x192xf32, #tpu.memory_space<vmem>>) attributes {dimension_semantics = [#tpu.dimension_semantics<parallel>], iteration_bounds = array<i64: 2>, scalar_prefetch = 0 : i64, scratch_operands = 0 : i64, tpu.core_type = #tpu.core_type<tc>, window_params = [{transform_indices = @transform_0, window_bounds = array<i64: 1, 64, 192>}, {pipeline_mode = #tpu.pipeline_mode<synchronous>, transform_indices = @transform_1, window_bounds = array<i64: 192, 576>}, {pipeline_mode = #tpu.pipeline_mode<synchronous>, transform_indices = @transform_2, window_bounds = array<i64: 192, 192>}, {pipeline_mode = #tpu.pipeline_mode<synchronous>, transform_indices = @transform_3, window_bounds = array<i64: 1, 192>}, {transform_indices = @transform_4, window_bounds = array<i64: 1, 64, 192>}]} {
    %c0 = arith.constant 0 : index
    %c0_0 = arith.constant 0 : index
    %c0_1 = arith.constant 0 : index
    %0 = vector.load %arg1[%c0, %c0_0, %c0_1] : memref<1x64x192xf32, #tpu.memory_space<vmem>>, vector<1x64x192xf32>
    %1 = vector.shape_cast %0 : vector<1x64x192xf32> to vector<64x192xf32>
    %c0_2 = arith.constant 0 : index
    %c0_3 = arith.constant 0 : index
    %2 = vector.load %arg2[%c0_2, %c0_3] : memref<192x576xf32, #tpu.memory_space<vmem>>, vector<192x576xf32>
    %cst = arith.constant dense<0.000000e+00> : vector<64x576xf32>
    %3 = tpu.matmul %1, %2, %cst {dimension_numbers = #tpu.dot_dimension_numbers<[1], [0], [0], [1], [0, 0, 1, 1], [], []>} : vector<64x192xf32>, vector<192x576xf32>, vector<64x576xf32> -> vector<64x576xf32>
    %4 = tpu.iota {dimensions = array<i32: 0>} : vector<64x64xi32>
    %5 = tpu.iota {dimensions = array<i32: 1>} : vector<64x64xi32>
    %6 = arith.cmpi sle, %5, %4 : vector<64x64xi32>
    %7 = vector.extract_strided_slice %3 {offsets = [0, 0], sizes = [64, 192], strides = [1, 1]} : vector<64x576xf32> to vector<64x192xf32>
    %8 = vector.extract_strided_slice %3 {offsets = [0, 192], sizes = [64, 192], strides = [1, 1]} : vector<64x576xf32> to vector<64x192xf32>
    %9 = vector.extract_strided_slice %3 {offsets = [0, 384], sizes = [64, 192], strides = [1, 1]} : vector<64x576xf32> to vector<64x192xf32>
    %10 = vector.extract_strided_slice %7 {offsets = [0, 0], sizes = [64, 48], strides = [1, 1]} : vector<64x192xf32> to vector<64x48xf32>
    %11 = vector.extract_strided_slice %8 {offsets = [0, 0], sizes = [64, 48], strides = [1, 1]} : vector<64x192xf32> to vector<64x48xf32>
    %12 = vector.extract_strided_slice %9 {offsets = [0, 0], sizes = [64, 48], strides = [1, 1]} : vector<64x192xf32> to vector<64x48xf32>
    %cst_4 = arith.constant dense<0.000000e+00> : vector<64x64xf32>
    %13 = tpu.matmul %10, %11, %cst_4 {dimension_numbers = #tpu.dot_dimension_numbers<[1], [1], [0], [0], [0, 0, 1, 0], [], []>} : vector<64x48xf32>, vector<64x48xf32>, vector<64x64xf32> -> vector<64x64xf32>
    %cst_5 = arith.constant 0.0721687824 : f32
    %14 = vector.broadcast %cst_5 : f32 to vector<64x64xf32>
    %15 = arith.mulf %13, %14 : vector<64x64xf32>
    %cst_6 = arith.constant 0xFF800000 : f32
    %16 = vector.broadcast %cst_6 : f32 to vector<64x64xf32>
    %17 = arith.select %6, %15, %16 : vector<64x64xi1>, vector<64x64xf32>
    %cst_7 = arith.constant dense<0xFF800000> : vector<64xf32>
    %18 = vector.multi_reduction <maximumf>, %17, %cst_7 [1] : vector<64x64xf32> to vector<64xf32>
    %19 = vector.shape_cast %18 : vector<64xf32> to vector<64x1xf32>
    %20 = vector.broadcast %19 : vector<64x1xf32> to vector<64x64xf32>
    %21 = arith.subf %17, %20 : vector<64x64xf32>
    %22 = math.exp %21 : vector<64x64xf32>
    %cst_8 = arith.constant dense<0.000000e+00> : vector<64xf32>
    %23 = vector.multi_reduction <add>, %22, %cst_8 [1] : vector<64x64xf32> to vector<64xf32>
    %24 = vector.shape_cast %23 : vector<64xf32> to vector<64x1xf32>
    %25 = vector.broadcast %24 : vector<64x1xf32> to vector<64x64xf32>
    %26 = arith.divf %22, %25 : vector<64x64xf32>
    %cst_9 = arith.constant dense<0.000000e+00> : vector<64x48xf32>
    %27 = tpu.matmul %26, %12, %cst_9 {dimension_numbers = #tpu.dot_dimension_numbers<[1], [0], [0], [1], [0, 0, 1, 1], [], []>} : vector<64x64xf32>, vector<64x48xf32>, vector<64x48xf32> -> vector<64x48xf32>
    %28 = vector.extract_strided_slice %7 {offsets = [0, 48], sizes = [64, 48], strides = [1, 1]} : vector<64x192xf32> to vector<64x48xf32>
    %29 = vector.extract_strided_slice %8 {offsets = [0, 48], sizes = [64, 48], strides = [1, 1]} : vector<64x192xf32> to vector<64x48xf32>
    %30 = vector.extract_strided_slice %9 {offsets = [0, 48], sizes = [64, 48], strides = [1, 1]} : vector<64x192xf32> to vector<64x48xf32>
    %cst_10 = arith.constant dense<0.000000e+00> : vector<64x64xf32>
    %31 = tpu.matmul %28, %29, %cst_10 {dimension_numbers = #tpu.dot_dimension_numbers<[1], [1], [0], [0], [0, 0, 1, 0], [], []>} : vector<64x48xf32>, vector<64x48xf32>, vector<64x64xf32> -> vector<64x64xf32>
    %cst_11 = arith.constant 0.0721687824 : f32
    %32 = vector.broadcast %cst_11 : f32 to vector<64x64xf32>
    %33 = arith.mulf %31, %32 : vector<64x64xf32>
    %cst_12 = arith.constant 0xFF800000 : f32
    %34 = vector.broadcast %cst_12 : f32 to vector<64x64xf32>
    %35 = arith.select %6, %33, %34 : vector<64x64xi1>, vector<64x64xf32>
    %cst_13 = arith.constant dense<0xFF800000> : vector<64xf32>
    %36 = vector.multi_reduction <maximumf>, %35, %cst_13 [1] : vector<64x64xf32> to vector<64xf32>
    %37 = vector.shape_cast %36 : vector<64xf32> to vector<64x1xf32>
    %38 = vector.broadcast %37 : vector<64x1xf32> to vector<64x64xf32>
    %39 = arith.subf %35, %38 : vector<64x64xf32>
    %40 = math.exp %39 : vector<64x64xf32>
    %cst_14 = arith.constant dense<0.000000e+00> : vector<64xf32>
    %41 = vector.multi_reduction <add>, %40, %cst_14 [1] : vector<64x64xf32> to vector<64xf32>
    %42 = vector.shape_cast %41 : vector<64xf32> to vector<64x1xf32>
    %43 = vector.broadcast %42 : vector<64x1xf32> to vector<64x64xf32>
    %44 = arith.divf %40, %43 : vector<64x64xf32>
    %cst_15 = arith.constant dense<0.000000e+00> : vector<64x48xf32>
    %45 = tpu.matmul %44, %30, %cst_15 {dimension_numbers = #tpu.dot_dimension_numbers<[1], [0], [0], [1], [0, 0, 1, 1], [], []>} : vector<64x64xf32>, vector<64x48xf32>, vector<64x48xf32> -> vector<64x48xf32>
    %46 = vector.extract_strided_slice %7 {offsets = [0, 96], sizes = [64, 48], strides = [1, 1]} : vector<64x192xf32> to vector<64x48xf32>
    %47 = vector.extract_strided_slice %8 {offsets = [0, 96], sizes = [64, 48], strides = [1, 1]} : vector<64x192xf32> to vector<64x48xf32>
    %48 = vector.extract_strided_slice %9 {offsets = [0, 96], sizes = [64, 48], strides = [1, 1]} : vector<64x192xf32> to vector<64x48xf32>
    %cst_16 = arith.constant dense<0.000000e+00> : vector<64x64xf32>
    %49 = tpu.matmul %46, %47, %cst_16 {dimension_numbers = #tpu.dot_dimension_numbers<[1], [1], [0], [0], [0, 0, 1, 0], [], []>} : vector<64x48xf32>, vector<64x48xf32>, vector<64x64xf32> -> vector<64x64xf32>
    %cst_17 = arith.constant 0.0721687824 : f32
    %50 = vector.broadcast %cst_17 : f32 to vector<64x64xf32>
    %51 = arith.mulf %49, %50 : vector<64x64xf32>
    %cst_18 = arith.constant 0xFF800000 : f32
    %52 = vector.broadcast %cst_18 : f32 to vector<64x64xf32>
    %53 = arith.select %6, %51, %52 : vector<64x64xi1>, vector<64x64xf32>
    %cst_19 = arith.constant dense<0xFF800000> : vector<64xf32>
    %54 = vector.multi_reduction <maximumf>, %53, %cst_19 [1] : vector<64x64xf32> to vector<64xf32>
    %55 = vector.shape_cast %54 : vector<64xf32> to vector<64x1xf32>
    %56 = vector.broadcast %55 : vector<64x1xf32> to vector<64x64xf32>
    %57 = arith.subf %53, %56 : vector<64x64xf32>
    %58 = math.exp %57 : vector<64x64xf32>
    %cst_20 = arith.constant dense<0.000000e+00> : vector<64xf32>
    %59 = vector.multi_reduction <add>, %58, %cst_20 [1] : vector<64x64xf32> to vector<64xf32>
    %60 = vector.shape_cast %59 : vector<64xf32> to vector<64x1xf32>
    %61 = vector.broadcast %60 : vector<64x1xf32> to vector<64x64xf32>
    %62 = arith.divf %58, %61 : vector<64x64xf32>
    %cst_21 = arith.constant dense<0.000000e+00> : vector<64x48xf32>
    %63 = tpu.matmul %62, %48, %cst_21 {dimension_numbers = #tpu.dot_dimension_numbers<[1], [0], [0], [1], [0, 0, 1, 1], [], []>} : vector<64x64xf32>, vector<64x48xf32>, vector<64x48xf32> -> vector<64x48xf32>
    %64 = vector.extract_strided_slice %7 {offsets = [0, 144], sizes = [64, 48], strides = [1, 1]} : vector<64x192xf32> to vector<64x48xf32>
    %65 = vector.extract_strided_slice %8 {offsets = [0, 144], sizes = [64, 48], strides = [1, 1]} : vector<64x192xf32> to vector<64x48xf32>
    %66 = vector.extract_strided_slice %9 {offsets = [0, 144], sizes = [64, 48], strides = [1, 1]} : vector<64x192xf32> to vector<64x48xf32>
    %cst_22 = arith.constant dense<0.000000e+00> : vector<64x64xf32>
    %67 = tpu.matmul %64, %65, %cst_22 {dimension_numbers = #tpu.dot_dimension_numbers<[1], [1], [0], [0], [0, 0, 1, 0], [], []>} : vector<64x48xf32>, vector<64x48xf32>, vector<64x64xf32> -> vector<64x64xf32>
    %cst_23 = arith.constant 0.0721687824 : f32
    %68 = vector.broadcast %cst_23 : f32 to vector<64x64xf32>
    %69 = arith.mulf %67, %68 : vector<64x64xf32>
    %cst_24 = arith.constant 0xFF800000 : f32
    %70 = vector.broadcast %cst_24 : f32 to vector<64x64xf32>
    %71 = arith.select %6, %69, %70 : vector<64x64xi1>, vector<64x64xf32>
    %cst_25 = arith.constant dense<0xFF800000> : vector<64xf32>
    %72 = vector.multi_reduction <maximumf>, %71, %cst_25 [1] : vector<64x64xf32> to vector<64xf32>
    %73 = vector.shape_cast %72 : vector<64xf32> to vector<64x1xf32>
    %74 = vector.broadcast %73 : vector<64x1xf32> to vector<64x64xf32>
    %75 = arith.subf %71, %74 : vector<64x64xf32>
    %76 = math.exp %75 : vector<64x64xf32>
    %cst_26 = arith.constant dense<0.000000e+00> : vector<64xf32>
    %77 = vector.multi_reduction <add>, %76, %cst_26 [1] : vector<64x64xf32> to vector<64xf32>
    %78 = vector.shape_cast %77 : vector<64xf32> to vector<64x1xf32>
    %79 = vector.broadcast %78 : vector<64x1xf32> to vector<64x64xf32>
    %80 = arith.divf %76, %79 : vector<64x64xf32>
    %cst_27 = arith.constant dense<0.000000e+00> : vector<64x48xf32>
    %81 = tpu.matmul %80, %66, %cst_27 {dimension_numbers = #tpu.dot_dimension_numbers<[1], [0], [0], [1], [0, 0, 1, 1], [], []>} : vector<64x64xf32>, vector<64x48xf32>, vector<64x48xf32> -> vector<64x48xf32>
    %82 = tpu.concatenate %27, %45, %63, %81 in 1 : vector<64x48xf32>, vector<64x48xf32>, vector<64x48xf32>, vector<64x48xf32> -> vector<64x192xf32>
    %c0_28 = arith.constant 0 : index
    %c0_29 = arith.constant 0 : index
    %83 = vector.load %arg3[%c0_28, %c0_29] : memref<192x192xf32, #tpu.memory_space<vmem>>, vector<192x192xf32>
    %cst_30 = arith.constant dense<0.000000e+00> : vector<64x192xf32>
    %84 = tpu.matmul %82, %83, %cst_30 {dimension_numbers = #tpu.dot_dimension_numbers<[1], [0], [0], [1], [0, 0, 1, 1], [], []>} : vector<64x192xf32>, vector<192x192xf32>, vector<64x192xf32> -> vector<64x192xf32>
    %c0_31 = arith.constant 0 : index
    %c0_32 = arith.constant 0 : index
    %85 = vector.load %arg4[%c0_31, %c0_32] : memref<1x192xf32, #tpu.memory_space<vmem>>, vector<1x192xf32>
    %86 = vector.broadcast %85 : vector<1x192xf32> to vector<64x192xf32>
    %87 = arith.addf %84, %86 : vector<64x192xf32>
    %c0_33 = arith.constant 0 : index
    %c0_34 = arith.constant 0 : index
    %c0_35 = arith.constant 0 : index
    %88 = vector.load %arg5[%c0_33, %c0_34, %c0_35] : memref<1x64x192xf32, #tpu.memory_space<vmem>>, vector<1x64x192xf32>
    %89 = vector.shape_cast %88 : vector<1x64x192xf32> to vector<64x192xf32>
    %90 = vector.shape_cast %87 : vector<64x192xf32> to vector<1x64x192xf32>
    tpu.vector_store %arg5[%c0_33, %c0_34, %c0_35], %90 {strides = array<i32>} : memref<1x64x192xf32, #tpu.memory_space<vmem>>, vector<1x64x192xf32>,
    return
  }
  func.func @transform_0(%arg0: i32) -> (i32, i32, i32) {
    %c0_i32 = arith.constant 0 : i32
    %c0_i32_0 = arith.constant 0 : i32
    %c0_i32_1 = arith.constant 0 : i32
    return %arg0, %c0_i32, %c0_i32_0 : i32, i32, i32
  }
  func.func @transform_1(%arg0: i32) -> (i32, i32) {
    %c0_i32 = arith.constant 0 : i32
    %c0_i32_0 = arith.constant 0 : i32
    %c0_i32_1 = arith.constant 0 : i32
    return %c0_i32, %c0_i32_0 : i32, i32
  }
  func.func @transform_2(%arg0: i32) -> (i32, i32) {
    %c0_i32 = arith.constant 0 : i32
    %c0_i32_0 = arith.constant 0 : i32
    %c0_i32_1 = arith.constant 0 : i32
    return %c0_i32, %c0_i32_0 : i32, i32
  }
  func.func @transform_3(%arg0: i32) -> (i32, i32) {
    %c0_i32 = arith.constant 0 : i32
    %c0_i32_0 = arith.constant 0 : i32
    %c0_i32_1 = arith.constant 0 : i32
    return %c0_i32, %c0_i32_0 : i32, i32
  }
  func.func @transform_4(%arg0: i32) -> (i32, i32, i32) {
    %c0_i32 = arith.constant 0 : i32
    %c0_i32_0 = arith.constant 0 : i32
    %c0_i32_1 = arith.constant 0 : i32
    return %arg0, %c0_i32, %c0_i32_0 : i32, i32, i32
  }
}

</mosaic_0001>

<bundles_post_ra>
// kernel: tpu_custom_call.1
= control target key start
LH: loop header
LB: loop body
LE: loop exit
PB: predicated region body
PF: predicated region fallthrough
CT: control target
= control target key end

     0   :  { %9 = vsyncpa [#allocation3], 0  ;;  %s5392_s0 = inlined_call_operand.hbm [shape: f32[2,64,192], index: 0, kind: input, shape index: {}]   ;;  %s5393_s1 = inlined_call_operand.hbm [shape: f32[192,576], index: 1, kind: input, shape index: {}]   ;;  %s5394_s2 = inlined_call_operand.hbm [shape: f32[192,192], index: 2, kind: input, shape index: {}]   ;;  %s5395_s3 = inlined_call_operand.vmem [shape: f32[1,192], index: 3, kind: input, shape index: {}]   ;;  %s5396_s4 = inlined_call_operand.hbm [shape: f32[2,64,192], index: 4, kind: output, shape index: {}]  }
   0x1   :  { %11 = vsyncpa [#allocation3 + $0x1], 0 }
   0x2   :  { %12 = vsyncpa [#allocation6], 0 }
   0x3   :  { %13 = vsyncpa [#allocation4], 0 }
   0x4   :  { %15 = vsyncpa [#allocation4 + $0x1], 0  ;;  %s3700_s15 = smov 0   ;;  %s3702_s16 = smov 0  }
   0x5   :  { %s3704_s17 = smov 0   ;;  %s3706_s18 = smov 0  }
   0x6 LB: > { %s3721_s19 = sadd.s32 4294967295, %s3659_s18   ;;  %s3011_s20 = sadd.s32 4294967294, %s3659_s18   ;;  %s3659_s18 = sphi %s3706_s18, %s5432_s18   ;;  %s3655_s17 = sphi %s3704_s17, %s5431_s17   ;;  %s3651_s16 = sphi %s3702_s16, %s5430_s16   ;;  %s3647_s15 = sphi %s3700_s15, %s5429_s15  }
   0x7   : > { %p41_p0 = scmp.ne.s32.totalorder %s3651_s16, %s3647_s15  ;;  %p42_p1 = scmp.eq.s32.totalorder %s3721_s19, 0 }
   0x8   : > { %p128_p2 = scmp.eq.s32.totalorder %s3721_s19, 1  ;;  %p134_p3 = scmp.eq.s32.totalorder %s3011_s20, 1 }
   0x9   : > { %p3730_p4 = por %p42_p1, %p41_p0  ;;  %p3012_p5 = scmp.ge.s32.totalorder %s3659_s18, 1 }
   0xa   : > { %p3735_p6 = por %p134_p3, %p41_p0  ;;  %p141_p7 = scmp.lt.s32.totalorder %s3659_s18, 3 }
   0xb   : > { %s152_s25 = sshll.u32 %s5393_s1, 4  ;;  %s3661_s27 = smov [#allocation5]   ;;  %s153_s25 = int_to_ptr.hbm [resolvable:$true] %s152_s25 }
   0xc   : > { %p3743_p8 = pnand %p3012_p5, %p141_p7  ;;  %s154_s28 = sshll.u32 %s3661_s27, 4  ;;  %s155_s28 = int_to_ptr.vmem [resolvable:$true] %s154_s28 }
   0xd   : > { %s166_s5 = sshll.u32 %s5394_s2, 4  ;;  %s3662_s6 = smov 640   ;;  %s167_s5 = int_to_ptr.hbm [resolvable:$true] %s166_s5 }
   0xe   : > { %p3219_p9 = pneg %p3743_p8  ;;  %s3663_s7 = smov 40  }
   0xf   : > { %s3664_s8 = smov [#allocation7]   ;;  %s3665_s10 = smov 256  }
  0x10   : > { %p3220_p10 = pnand %p3219_p9, %p42_p1  ;;  %s168_s9 = sshll.u32 %s3664_s8, 4  ;;  %s169_s9 = int_to_ptr.vmem [resolvable:$true] %s168_s9 }
  0x11   : > { %s3666_s11 = smov 16   ;;  %s3759_s12 = sadd.s32 1, %s3659_s18  }
  0x12   : > { %3222 = dma.hbm_to_vmem [thread:$0]  (!%p3220_p10), %s153_s25, 15360, %s155_s28, [#allocation6], %s3662_s6, %s3662_s6, %s3663_s7  }
  0x13   : > { %3225 = dma.hbm_to_vmem [thread:$0]  (!%p3220_p10), %s167_s5, 6144, %s169_s9, [#allocation6], %s3665_s10, %s3665_s10, %s3666_s11  }
  0x14   : > { %s25_s13 = ssub.s32 %s3659_s18, %s3759_s12  ;;  %s28_s14 = sadd.s32 1, %s3655_s17 }
  0x15   : > { %p26_p12 = scmp.eq.s32.totalorder %s25_s13, 0  ;;  %p35_p13 = scmp.ne.s32.totalorder %s3655_s17, %s3651_s16 }
  0x16   : > { %p36_p0 = scmp.eq.s32.totalorder %s3659_s18, 0  ;;  %p3236_p7 = scmp.lt.s32.totalorder %s3659_s18, 2 }
  0x17   : > { %s3768_s20 = scalar_select %p26_p12, %s3655_s17, %s28_s14  }
  0x18   : > { %p37_p3 = por %p36_p0, %p35_p13  ;;  %p3772_p5 = por %p128_p2, %p35_p13 }
  0x19   : > { %s185_s24 = sand.u32 1, %s3655_s17   ;;  %s3181_s27 = sshll.u32 %s3659_s18, 7 }
  0x1a   : > { %s3016_s25 = sshll.u32 %s185_s24, 7  ;;  %s194_s30 = scalar_lea.hbm %s5392_s0, %s3181_s27 }
  0x1b   : > { %s189_s5 = scalar_lea.vmem [#allocation2], %s3016_s25  ;;  %s195_s7 = sshll.u32 %s194_s30, 4  ;;  %s196_s7 = int_to_ptr.hbm [resolvable:$true] %s195_s7 }
  0x1c   : > { %s197_s6 = sshll.u32 %s189_s5, 4  ;;  %p3782_p9 = pnand %p3236_p7, %p37_p3  ;;  %s198_s6 = int_to_ptr.vmem [resolvable:$true] %s197_s6 }
  0x1d   : > { %s186_s9 = scalar_lea.sflag [#allocation3], %s185_s24  ;;  %s3559_s13 = sshra.s32 %s196_s7, 4  ;;  %s3560_s13 = int_to_ptr.hbm [resolvable:$true] %s3559_s13 }
  0x1e   : > { %s3561_s14 = scalar_lea.hbm %s3560_s13, 128  ;;  %p3563_p10 = pneg %p3782_p9 }
  0x1f   : > { %p3562_p2 = scmp.ne.s32.totalorder %s3560_s13, %s3561_s14  ;;  %s3566_s28 = scalar_lea.hbm %s5392_s0, 256 }
  0x20   : > { %p3567_p0 = scmp.lt.s32.totalorder %s3560_s13, %s5392_s0  ;;  %p3568_p3 = scmp.lt.s32.totalorder %s3566_s28, %s3561_s14 }
  0x21   : > { %p3564_p12 = pnand %p3563_p10, %p3562_p2 }
  0x22   : > { %p3569_p7 = por %p3568_p3, %p3567_p0 }
  0x23   : > { %p3565_p13 = pneg %p3564_p12 }
  0x25   : > { %p3570_p11 = pnand %p3569_p7, %p3565_p13 }
  0x27   : > { %3573 = shalt.err (!%p3570_p11)
}
  0x28   : > { %3229 = dma.hbm_to_vmem [thread:$0]  (!%p3782_p9), %s196_s7, 2048, %s198_s6, %s186_s9, %s3665_s10, %s3665_s10, %s3666_s11  }
  0x29   : > { %209 = sbr.rel (%p3743_p8) target bundleno = 1515 (0x5eb), region = 36 }
  0x2e   : > { %s3802_s24 = sand.u32 1, %s3651_s16  }
  0x2f   : > { %s3020_s5 = sshll.u32 %s3802_s24, 7  ;;  %s212_s13 = scalar_lea.sflag [#allocation3], %s3802_s24 }
  0x30   : > { %s3808_s14 = scalar_lea.vmem [#allocation2], %s3020_s5 }
  0x31   : > { %3634 = dma.done.wait (%p3730_p4), %s212_s13, 2048  }
  0x32   : > { %3636 = vsyncadd (%p3730_p4), %s212_s13, 4294965248 }
  0x33   : > { %3638 = dma.done.wait (%p42_p1), [#allocation6], 21504  }
  0x34   : > { %3640 = vsyncadd (%p42_p1), [#allocation6], 4294945792  ;;  %v342_v0 = vld [vmem:[#allocation5 + $0x258] sm:$0xff]  ;;  %v343_v2 = vld [vmem:[#allocation5 + $0x260] sm:$0xff]  ;;  %vm387_vm0 = vcmask 523264   ;;  %s3667_s21 = smov 32  }
  0x35   : > { %v382_v1 = vld [vmem:[#allocation5 + $0x398] sm:$0xff]  ;;  %412 = vmatpush.msra.mxu0 %v342_v0  ;;  %v337_v3 = vld [vmem:[#allocation5 + $0x230] sm:$0xff]  ;;  %494 = vmatpush.msra.mxu2 %v343_v2  ;;  %v332_v6 = vld [vmem:[#allocation5 + $0x208] sm:$0xff]  ;;  %s3668_s26 = smov 80   ;;  %s3669_s10 = smov 64   ;;  %vm865_vm1 = vcmask 392192  }
  0x36   : > { %461 = vmatpush.msra.mxu1 %v382_v1  ;;  %v377_v4 = vld [vmem:[#allocation5 + $0x370] sm:$0xff]  ;;  %v338_v5 = vld [vmem:[#allocation5 + $0x238] sm:$0xff]  ;;  %v372_v7 = vld [vmem:[#allocation5 + $0x348] sm:$0xff]  ;;  %s3670_s11 = smov 16   ;;  %s3671_s6 = smov 96   ;;  %vm1276_vm2 = vcmask 130048  }
  0x37   : > { %413 = vmatpush.msra.mxu0 %v337_v3  ;;  %v333_v8 = vld [vmem:[#allocation5 + $0x210] sm:$0xff]  ;;  %495 = vmatpush.msra.mxu2 %v338_v5  ;;  %v327_v9 = vld [vmem:[#allocation5 + $0x1e0] sm:$0xff]  ;;  %v328_v11 = vld [vmem:[#allocation5 + $0x1e8] sm:$0xff]  ;;  %s3672_s7 = smov 48   ;;  %s3673_s8 = smov 112   ;;  %vm1695_vm3 = vcmask 261120  }
  0x38   : > { %462 = vmatpush.msra.mxu1 %v377_v4  ;;  %v367_v10 = vld [vmem:[#allocation5 + $0x320] sm:$0xff]  ;;  %v322_v12 = vld [vmem:[#allocation5 + $0x1b8] sm:$0xff]  ;;  %v317_v15 = vld [vmem:[#allocation5 + $0x190] sm:$0xff]  ;;  %s5318_s25 = scalar_lea.vmem [#allocation8], %s3020_s5  ;;  %s3182_s28 = sshll.u32 %s3721_s19, 7 }
  0x39   : > { %414 = vmatpush.msra.mxu0 %v332_v6  ;;  %496 = vmatpush.msra.mxu2 %v333_v8  ;;  %v362_v13 = vld [vmem:[#allocation5 + $0x2f8] sm:$0xff]  ;;  %v323_v14 = vld [vmem:[#allocation5 + $0x1c0] sm:$0xff]  ;;  %v357_v16 = vld [vmem:[#allocation5 + $0x2d0] sm:$0xff]  ;;  %s2915_s5 = scalar_lea.hbm %s5396_s4, %s3182_s28  ;;  %s2916_s13 = sshll.u32 %s5318_s25, 4  ;;  %s2917_s13 = int_to_ptr.vmem [resolvable:$true] %s2916_s13 }
  0x3a   : > { %463 = vmatpush.msra.mxu1 %v372_v7  ;;  %v318_v17 = vld [vmem:[#allocation5 + $0x198] sm:$0xff]  ;;  %v3818_v18 = vld [vmem:[#allocation5 + $0x3a0] sm:$0xff]  ;;  %v312_v19 = vld [vmem:[#allocation5 + $0x168] sm:$0xff]  ;;  %s2904_s19 = scalar_lea.sflag [#allocation4], %s3802_s24 }
  0x3b   : > { %415 = vmatpush.msra.mxu0 %v327_v9  ;;  %497 = vmatpush.msra.mxu2 %v328_v11  ;;  %v352_v20 = vld [vmem:[#allocation5 + $0x2a8] sm:$0xff]  ;;  %v3821_v21 = vld [vmem:[#allocation5 + $0x378] sm:$0xff]  ;;  %v313_v22 = vld [vmem:[#allocation5 + $0x170] sm:$0xff] }
  0x3c   : > { %464 = vmatpush.msra.mxu1 %v367_v10  ;;  %3183 = vmatpush.msra.mxu3 %v3818_v18  ;;  %v3823_v23 = vld [vmem:[#allocation5 + $0x350] sm:$0xff]  ;;  %v307_v24 = vld [vmem:[#allocation5 + $0x140] sm:$0xff]  ;;  %v308_v26 = vld [vmem:[#allocation5 + $0x148] sm:$0xff] }
  0x3d   : > { %416 = vmatpush.msra.mxu0 %v322_v12  ;;  %498 = vmatpush.msra.mxu2 %v323_v14  ;;  %v347_v25 = vld [vmem:[#allocation5 + $0x280] sm:$0xff]  ;;  %v3827_v27 = vld [vmem:[%s3808_s14 + $0x8] sm:$0xff]  ;;  %v302_v28 = vld [vmem:[#allocation5 + $0x118] sm:$0xff] }
  0x3e   : > { %465 = vmatpush.msra.mxu1 %v362_v13  ;;  %3184 = vmatpush.msra.mxu3 %v3821_v21  ;;  %v3830_v29 = vld [vmem:[#allocation5 + $0x328] sm:$0xff]  ;;  %v303_v30 = vld [vmem:[#allocation5 + $0x120] sm:$0xff]  ;;  %v297_v31 = vld [vmem:[#allocation5 + $0xf0] sm:$0xff] }
  0x3f   : > { %417 = vmatpush.msra.mxu0 %v317_v15  ;;  %499 = vmatpush.msra.mxu2 %v318_v17  ;;  %v3834_v32 = vld [vmem:[#allocation5 + $0x300] sm:$0xff]  ;;  %v298_v33 = vld [vmem:[#allocation5 + $0xf8] sm:$0xff]  ;;  %v292_v34 = vld [vmem:[#allocation5 + $0xc8] sm:$0xff] }
  0x40   : > { %466 = vmatpush.msra.mxu1 %v357_v16  ;;  %3185 = vmatpush.msra.mxu3 %v3823_v23  ;;  %v3837_v35 = vld [vmem:[#allocation5 + $0x2d8] sm:$0xff]  ;;  %v344_v36 = vld [vmem:[#allocation5 + $0x268] sm:$0xff]  ;;  %v293_v37 = vld [vmem:[#allocation5 + $0xd0] sm:$0xff] }
  0x41   : > { %418 = vmatpush.msra.mxu0 %v312_v19  ;;  %500 = vmatpush.msra.mxu2 %v313_v22  ;;  %v339_v38 = vld [vmem:[#allocation5 + $0x240] sm:$0xff]  ;;  %v3840_v40 = vld [vmem:[#allocation5 + $0x2b0] sm:$0xff]  ;;  %v288_v41 = vld [vmem:[#allocation5 + $0xa8] sm:$0xff] }
  0x42   : > { %467 = vmatpush.msra.mxu1 %v352_v20  ;;  %3186 = vmatpush.msra.mxu3 %v3830_v29  ;;  %v287_v39 = vld [vmem:[#allocation5 + $0xa0] sm:$0xff]  ;;  %v3843_v42 = vld [vmem:[%s3808_s14 + $0x18] sm:$0xff]  ;;  %v3846_v44 = vld [vmem:[#allocation5 + $0x288] sm:$0xff] }
  0x43   : > { %419 = vmatpush.msra.mxu0 %v307_v24  ;;  %501 = vmatpush.msra.mxu2 %v308_v26  ;;  %v282_v43 = vld [vmem:[#allocation5 + $0x78] sm:$0xff]  ;;  %v283_v45 = vld [vmem:[#allocation5 + $0x80] sm:$0xff]  ;;  %v277_v47 = vld [vmem:[#allocation5 + $0x50] sm:$0xff] }
  0x44   : > { %468 = vmatpush.msra.mxu1 %v347_v25  ;;  %3187 = vmatpush.msra.mxu3 %v3834_v32  ;;  %v3850_v46 = vld [vmem:[%s3808_s14 + $0x38] sm:$0xff]  ;;  %v272_v50 = vld [vmem:[#allocation5 + $0x28] sm:$0xff]  ;;  %v329_v51 = vld [vmem:[#allocation5 + $0x1f0] sm:$0xff] }
  0x45   : > { %3024 = vmatmul.msk.f32.vlgmr.msra.gmra.mxu1 %vm387_vm0, %v3827_v27  ;;  %420 = vmatpush.msra.mxu0 %v302_v28  ;;  %v334_v48 = vld [vmem:[#allocation5 + $0x218] sm:$0xff]  ;;  %v384_v52 = vld [vmem:[#allocation5 + $0x3a8] sm:$0xff]  ;;  %v273_v53 = vld [vmem:[#allocation5 + $0x30] sm:$0xff] }
  0x46   : > { %502 = vmatpush.msra.mxu2 %v303_v30  ;;  %576 = vmatpush.msrb.mxu1 %v344_v36  ;;  %v278_v49 = vld [vmem:[#allocation5 + $0x58] sm:$0xff]  ;;  %v379_v54 = vld [vmem:[#allocation5 + $0x380] sm:$0xff]  ;;  %v324_v56 = vld [vmem:[#allocation5 + $0x1c8] sm:$0xff] }
  0x47   : > { %421 = vmatpush.msra.mxu0 %v297_v31  ;;  %3188 = vmatpush.msra.mxu3 %v3837_v35  ;;  %v267_v55 = vld [vmem:[#allocation5] sm:$0xff]  ;;  %v268_v57 = vld [vmem:[#allocation5 + $0x8] sm:$0xff]  ;;  %v374_v62 = vld [vmem:[#allocation5 + $0x358] sm:$0xff] }
  0x48   : > { %503 = vmatpush.msra.mxu2 %v298_v33  ;;  %577 = vmatpush.msrb.mxu1 %v339_v38  ;;  %v3858_v58 = vld [vmem:[%s3808_s14] sm:$0xff]  ;;  %v3861_v59 = vld [vmem:[%s3808_s14 + $0x28] sm:$0xff]  ;;  %v314_v63 = vld [vmem:[#allocation5 + $0x178] sm:$0xff] }
  0x49   : > { %422 = vmatpush.msra.mxu0 %v292_v34  ;;  %3189 = vmatpush.msra.mxu3 %v3840_v40  ;;  %v3864_v60 = vld [vmem:[%s3808_s14 + $0x48] sm:$0xff]  ;;  %v319_v61 = vld [vmem:[#allocation5 + $0x1a0] sm:$0xff]  ;;  %v369_v0 = vld [vmem:[#allocation5 + $0x330] sm:$0xff] }
  0x4a   : > { %504 = vmatpush.msra.mxu2 %v293_v37  ;;  %578 = vmatpush.msrb.mxu1 %v334_v48  ;;  %v309_v1 = vld [vmem:[#allocation5 + $0x150] sm:$0xff]  ;;  %v364_v2 = vld [vmem:[#allocation5 + $0x308] sm:$0xff]  ;;  %v3878_v5 = vld [vmem:[%s3808_s14 + $0x58] sm:$0xff] }
  0x4b   : > { %423 = vmatpush.msra.mxu0 %v287_v39  ;;  %3190 = vmatpush.msra.mxu3 %v3846_v44  ;;  %v3874_v3 = vld [vmem:[%s3808_s14 + $0x10] sm:$0xff]  ;;  %v304_v4 = vld [vmem:[#allocation5 + $0x128] sm:$0xff]  ;;  %v299_v6 = vld [vmem:[#allocation5 + $0x100] sm:$0xff] }
  0x4c   : > { %505 = vmatpush.msra.mxu2 %v288_v41  ;;  %3035 = vmatmul.msk.f32.vlgmr.msra.gmra.mxu3 %vm387_vm0, %v3850_v46  ;;  %v359_v7 = vld [vmem:[#allocation5 + $0x2e0] sm:$0xff]  ;;  %v294_v8 = vld [vmem:[#allocation5 + $0xd8] sm:$0xff]  ;;  %v289_v10 = vld [vmem:[#allocation5 + $0xb0] sm:$0xff] }
  0x4d   : > { %3025 = vmatmul.msk.f32.gmra.mxu1 %vm387_vm0, %v3843_v42  ;;  %424 = vmatpush.msra.mxu0 %v282_v43  ;;  %v354_v9 = vld [vmem:[#allocation5 + $0x2b8] sm:$0xff]  ;;  %v349_v11 = vld [vmem:[#allocation5 + $0x290] sm:$0xff]  ;;  %v3889_v12 = vld [vmem:[%s3808_s14 + $0x20] sm:$0xff] }
  0x4e   : > { %506 = vmatpush.msra.mxu2 %v283_v45  ;;  %625 = vmatpush.msrb.mxu3 %v384_v52  ;;  %v284_v13 = vld [vmem:[#allocation5 + $0x88] sm:$0xff]  ;;  %v279_v15 = vld [vmem:[#allocation5 + $0x60] sm:$0xff]  ;;  %v274_v16 = vld [vmem:[#allocation5 + $0x38] sm:$0xff] }
  0x4f   : > { %425 = vmatpush.msra.mxu0 %v277_v47  ;;  %579 = vmatpush.msrb.mxu1 %v329_v51  ;;  %v3893_v14 = vld [vmem:[%s3808_s14 + $0x68] sm:$0xff]  ;;  %v269_v17 = vld [vmem:[#allocation5 + $0x10] sm:$0xff]  ;;  %v3908_v19 = vld [vmem:[%s3808_s14 + $0x78] sm:$0xff] }
  0x50   : > { %507 = vmatpush.msra.mxu2 %v278_v49  ;;  %626 = vmatpush.msrb.mxu3 %v379_v54  ;;  %v3917_v20 = vld [vmem:[%s3808_s14 + $0x40] sm:$0xff]  ;;  %v345_v41 = vld [vmem:[#allocation5 + $0x270] sm:$0xff]  ;;  %v340_v43 = vld [vmem:[#allocation5 + $0x248] sm:$0xff] }
  0x51   : > { %426 = vmatpush.msra.mxu0 %v272_v50  ;;  %580 = vmatpush.msrb.mxu1 %v324_v56  ;;  %v3935_v22 = vld [vmem:[%s3808_s14 + $0x60] sm:$0xff]  ;;  %v330_v50 = vld [vmem:[#allocation5 + $0x1f8] sm:$0xff]  ;;  %v325_v51 = vld [vmem:[#allocation5 + $0x1d0] sm:$0xff] }
  0x52   : > { %508 = vmatpush.msra.mxu2 %v273_v53  ;;  %627 = vmatpush.msrb.mxu3 %v374_v62  ;;  %v335_v48 = vld [vmem:[#allocation5 + $0x220] sm:$0xff]  ;;  %v320_v52 = vld [vmem:[#allocation5 + $0x1a8] sm:$0xff]  ;;  %v385_v53 = vld [vmem:[#allocation5 + $0x3b0] sm:$0xff] }
  0x53   : > { %427 = vmatpush.msra.mxu0 %v267_v55  ;;  %581 = vmatpush.msrb.mxu1 %v319_v61  ;;  %v380_v61 = vld [vmem:[#allocation5 + $0x388] sm:$0xff] }
  0x54   : > { %509 = vmatpush.msra.mxu2 %v268_v57  ;;  %428 = vmatmul.f32.vlgmr.msra.gmra.mxu0 %v3858_v58  ;;  %v315_v57 = vld [vmem:[#allocation5 + $0x180] sm:$0xff] }
  0x55   : > { %3026 = vmatmul.msk.f32.gmra.mxu1 %vm387_vm0, %v3861_v59  ;;  %510 = vmatmul.f32.vlgmr.msra.gmra.mxu2 %v3858_v58 }
  0x56   : > { %3036 = vmatmul.msk.f32.gmra.mxu3 %vm387_vm0, %v3864_v60  ;;  %543 = vmatpush.msrb.mxu2 %v3818_v18  ;;  %v3904_v18 = vld [vmem:[%s3808_s14 + $0x30] sm:$0xff] }
  0x57   : > { %582 = vmatpush.msrb.mxu1 %v314_v63  ;;  %628 = vmatpush.msrb.mxu3 %v369_v0 }
  0x58   : > { %544 = vmatpush.msrb.mxu2 %v3821_v21  ;;  %v3926_v21 = vld [vmem:[%s3808_s14 + $0x50] sm:$0xff]  ;;  %658 = vmatpush.msrb.mxu0 %v345_v41  ;;  %v280_v41 = vld [vmem:[#allocation5 + $0x68] sm:$0xff] }
  0x59   : > { %583 = vmatpush.msrb.mxu1 %v309_v1  ;;  %629 = vmatpush.msrb.mxu3 %v364_v2  ;;  %v310_v1 = vld [vmem:[#allocation5 + $0x158] sm:$0xff]  ;;  %v375_v2 = vld [vmem:[#allocation5 + $0x360] sm:$0xff] }
  0x5a   : > { %545 = vmatpush.msrb.mxu2 %v3823_v23  ;;  %v3943_v23 = vld [vmem:[%s3808_s14 + $0x70] sm:$0xff]  ;;  %659 = vmatpush.msrb.mxu0 %v340_v43  ;;  %s2918_s14 = sshll.u32 %s2915_s5, 4  ;;  %s2919_s14 = int_to_ptr.hbm [resolvable:$true] %s2918_s14 }
  0x5b   : > { %584 = vmatpush.msrb.mxu1 %v304_v4  ;;  %630 = vmatpush.msrb.mxu3 %v359_v7  ;;  %v305_v4 = vld [vmem:[#allocation5 + $0x130] sm:$0xff]  ;;  %v346_v7 = vld [vmem:[#allocation5 + $0x278] sm:$0xff] }
  0x5c   : > { %431 = vmatmul.f32.gmra.mxu0 %v3874_v3  ;;  %546 = vmatpush.msrb.mxu2 %v3830_v29  ;;  %v321_v43 = vld [vmem:[#allocation5 + $0x1b0] sm:$0xff] }
  0x5d   : > { %3027 = vmatmul.msk.f32.gmra.mxu1 %vm387_vm0, %v3850_v46  ;;  %513 = vmatmul.f32.gmra.mxu2 %v3874_v3 }
  0x5e   : > { %3037 = vmatmul.msk.f32.gmra.mxu3 %vm387_vm0, %v3878_v5  ;;  %585 = vmatpush.msrb.mxu1 %v299_v6  ;;  %v370_v6 = vld [vmem:[#allocation5 + $0x338] sm:$0xff] }
  0x5f   : > { %631 = vmatpush.msrb.mxu3 %v354_v9  ;;  %547 = vmatpush.msrb.mxu2 %v3834_v32  ;;  %v365_v9 = vld [vmem:[#allocation5 + $0x310] sm:$0xff] }
  0x60   : > { %586 = vmatpush.msrb.mxu1 %v294_v8  ;;  %660 = vmatpush.msrb.mxu0 %v335_v48  ;;  %v300_v8 = vld [vmem:[#allocation5 + $0x108] sm:$0xff] }
  0x61   : > { %632 = vmatpush.msrb.mxu3 %v349_v11  ;;  %548 = vmatpush.msrb.mxu2 %v3837_v35 }
  0x62   : > { %587 = vmatpush.msrb.mxu1 %v289_v10  ;;  %661 = vmatpush.msrb.mxu0 %v330_v50  ;;  %v341_v10 = vld [vmem:[#allocation5 + $0x250] sm:$0xff] }
  0x63   : > { %549 = vmatpush.msrb.mxu2 %v3840_v40 }
  0x64   : > { %434 = vmatmul.f32.gmra.mxu0 %v3889_v12  ;;  %588 = vmatpush.msrb.mxu1 %v284_v13 }
  0x65   : > { %3028 = vmatmul.msk.f32.gmra.mxu1 %vm387_vm0, %v3864_v60  ;;  %516 = vmatmul.f32.gmra.mxu2 %v3889_v12 }
  0x66   : > { %3038 = vmatmul.msk.f32.gmra.mxu3 %vm387_vm0, %v3893_v14  ;;  %589 = vmatpush.msrb.mxu1 %v279_v15 }
  0x67   : > { %550 = vmatpush.msrb.mxu2 %v3846_v44  ;;  %662 = vmatpush.msrb.mxu0 %v325_v51 }
  0x68   : > { %590 = vmatpush.msrb.mxu1 %v274_v16  ;;  %v295_v16 = vld [vmem:[#allocation5 + $0xe0] sm:$0xff] }
  0x69   : > { %663 = vmatpush.msrb.mxu0 %v320_v52  ;;  %707 = vmatpush.msra.mxu2 %v385_v53  ;;  %v275_v53 = vld [vmem:[#allocation5 + $0x40] sm:$0xff] }
  0x6a   : > { %591 = vmatpush.msrb.mxu1 %v269_v17  ;;  %v360_v17 = vld [vmem:[#allocation5 + $0x2e8] sm:$0xff] }
  0x6b   : > { %664 = vmatpush.msrb.mxu0 %v315_v57  ;;  %708 = vmatpush.msra.mxu2 %v380_v61 }
  0x6c   : > { %437 = vmatmul.f32.gmra.mxu0 %v3904_v18  ;;  %740 = vmatpush.msra.mxu1 %v346_v7  ;;  %v301_v7 = vld [vmem:[#allocation5 + $0x110] sm:$0xff] }
  0x6d   : > { %3029 = vmatmul.msk.f32.gmra.mxu1 %vm387_vm0, %v3878_v5  ;;  %519 = vmatmul.f32.gmra.mxu2 %v3904_v18 }
  0x6e   : > { %3039 = vmatmul.msk.f32.gmra.mxu3 %vm387_vm0, %v3908_v19  ;;  %665 = vmatpush.msrb.mxu0 %v310_v1  ;;  %v376_v1 = vld [vmem:[#allocation5 + $0x368] sm:$0xff] }
  0x6f   : > { %709 = vmatpush.msra.mxu2 %v375_v2  ;;  %741 = vmatpush.msra.mxu1 %v341_v10  ;;  %v306_v2 = vld [vmem:[#allocation5 + $0x138] sm:$0xff] }
  0x70   : > { %666 = vmatpush.msrb.mxu0 %v305_v4  ;;  %v371_v4 = vld [vmem:[#allocation5 + $0x340] sm:$0xff] }
  0x71   : > { %710 = vmatpush.msra.mxu2 %v370_v6 }
  0x72   : > { %667 = vmatpush.msrb.mxu0 %v300_v8  ;;  %v366_v8 = vld [vmem:[#allocation5 + $0x318] sm:$0xff] }
  0x73   : > { %711 = vmatpush.msra.mxu2 %v365_v9 }
  0x74   : > { %440 = vmatmul.f32.gmra.mxu0 %v3917_v20 }
  0x75   : > { %3030 = vmatmul.msk.f32.gmra.mxu1 %vm387_vm0, %v3893_v14  ;;  %522 = vmatmul.f32.gmra.mxu2 %v3917_v20 }
  0x76   : > { %3040 = vmatmul.msk.f32.vlgmr.msrb.gmra.mxu3 %vm387_vm0, %v3827_v27  ;;  %668 = vmatpush.msrb.mxu0 %v295_v16 }
  0x77   : > { %712 = vmatpush.msra.mxu2 %v360_v17 }
  0x7c   : > { %443 = vmatmul.f32.gmra.mxu0 %v3926_v21 }
  0x7d   : > { %3031 = vmatmul.msk.f32.gmra.mxu1 %vm387_vm0, %v3908_v19  ;;  %525 = vmatmul.f32.gmra.mxu2 %v3926_v21 }
  0x7e   : > { %3041 = vmatmul.msk.f32.gmra.mxu3 %vm387_vm0, %v3843_v42 }
  0x84   : > { %446 = vmatmul.f32.gmra.mxu0 %v3935_v22 }
  0x85   : > { %528 = vmatmul.f32.gmra.mxu2 %v3935_v22  ;;  %592 = vmatmul.f32.vlgmr.msrb.gmra.mxu1 %v3858_v58 }
  0x86   : > { %3042 = vmatmul.msk.f32.gmra.mxu3 %vm387_vm0, %v3861_v59 }
  0x8c   : > { %449 = vmatmul.f32.gmra.mxu0 %v3943_v23 }
  0x8d   : > { %531 = vmatmul.f32.gmra.mxu2 %v3943_v23  ;;  %595 = vmatmul.f32.gmra.mxu1 %v3874_v3 }
  0x8e   : > { %3043 = vmatmul.msk.f32.gmra.mxu3 %vm387_vm0, %v3850_v46 }
  0x95   : > { %3032 = vmatmul.msk.f32.vlgmr.msrb.gmra.mxu2 %vm387_vm0, %v3827_v27  ;;  %598 = vmatmul.f32.gmra.mxu1 %v3889_v12 }
  0x96   : > { %3044 = vmatmul.msk.f32.gmra.mxu3 %vm387_vm0, %v3864_v60 }
  0x9d   : > { %3033 = vmatmul.msk.f32.gmra.mxu2 %vm387_vm0, %v3843_v42  ;;  %601 = vmatmul.f32.gmra.mxu1 %v3904_v18 }
  0x9e   : > { %3045 = vmatmul.msk.f32.gmra.mxu3 %vm387_vm0, %v3878_v5 }
  0xa5   : > { %3034 = vmatmul.msk.f32.gmra.mxu2 %vm387_vm0, %v3861_v59  ;;  %604 = vmatmul.f32.gmra.mxu1 %v3917_v20 }
  0xa6   : > { %3046 = vmatmul.msk.f32.gmra.mxu3 %vm387_vm0, %v3893_v14 }
  0xad   : > { %607 = vmatmul.f32.gmra.mxu1 %v3926_v21 }
  0xae   : > { %3047 = vmatmul.msk.f32.gmra.mxu3 %vm387_vm0, %v3908_v19 }
  0xb5   : > { %610 = vmatmul.f32.gmra.mxu1 %v3935_v22 }
  0xbd   : > { %613 = vmatmul.f32.gmra.mxu1 %v3943_v23 }
  0xc2   : > { %v470_v24 = vpop.f32.mrf.mxu1 }
  0xca   : > { %v473_v25 = vpop.f32.mrf.mxu1 }
  0xcf   : > { %v561_v28 = vpop.f32.mrf.mxu3 }
  0xd1   : > { %v429_v26 = vpop.f32.mrf.mxu0 }
  0xd2   : > { %v3970_v29 = vadd.f32 %v470_v24, %v429_v26  ;;  %v476_v30 = vpop.f32.mrf.mxu1  ;;  %v336_v24 = vld [vmem:[#allocation5 + $0x228] sm:$0xff] }
  0xd3   : > { %742 = vmatpush.msra.mxu1 %v336_v24 }
  0xd4   : > { %1663 = vrot.lane.b32.xlu2 %v3970_v29, %s3667_s21  ;;  %1220 = vrot.lane.b32.xlu0 %v3970_v29, %s3668_s26 }
  0xd8   : > { %v3976_v31 = vpop.f32.mrf.mxu2 }
  0xd9   : > { %v432_v32 = vpop.f32.mrf.mxu0  ;;  %v564_v33 = vpop.f32.mrf.mxu3 }
  0xda   : > { %v3978_v34 = vadd.f32 %v473_v25, %v432_v32  ;;  %v479_v35 = vpop.f32.mrf.mxu1  ;;  %v331_v32 = vld [vmem:[#allocation5 + $0x200] sm:$0xff] }
  0xdb   : > { %743 = vmatpush.msra.mxu1 %v331_v32  ;;  %v351_v32 = vld [vmem:[#allocation5 + $0x2a0] sm:$0xff] }
  0xdc   : > { %1222 = vrot.lane.b32.xlu1 %v3978_v34, %s3668_s26 }
  0xe0   : > { %v3982_v36 = vpop.f32.mrf.mxu2 }
  0xe1   : > { %v435_v37 = vpop.f32.mrf.mxu0  ;;  %v3984_v38 = vpop.f32.mrf.mxu3 }
  0xe2   : > { %v3986_v39 = vadd.f32 %v476_v30, %v435_v37  ;;  %v482_v40 = vpop.f32.mrf.mxu1  ;;  %v355_v30 = vld [vmem:[#allocation5 + $0x2c0] sm:$0xff]  ;;  %v350_v37 = vld [vmem:[#allocation5 + $0x298] sm:$0xff] }
  0xe3   : > { %713 = vmatpush.msra.mxu2 %v355_v30  ;;  %v356_v30 = vld [vmem:[#allocation5 + $0x2c8] sm:$0xff] }
  0xe4   : > { %1667 = vrot.lane.b32.xlu1 %v3978_v34, %s3667_s21  ;;  %1224 = vrot.lane.b32.xlu0 %v3986_v39, %s3668_s26 }
  0xe5   : > { %714 = vmatpush.msra.mxu2 %v350_v37 }
  0xe6   : > { %3048 = vmatmul.msk.f32.vlgmr.msra.gmra.mxu2 %vm387_vm0, %v3827_v27 }
  0xe8   : > { %v3992_v44 = vpop.f32.mrf.mxu2 }
  0xe9   : > { %v438_v45 = vpop.f32.mrf.mxu0  ;;  %v3994_v47 = vpop.f32.mrf.mxu3 }
  0xea   : > { %v3996_v49 = vpop.f32.mrf.mxu1  ;;  %v4002_v62 = vadd.f32 %v479_v35, %v438_v45  ;;  %v285_v35 = vld [vmem:[#allocation5 + $0x90] sm:$0xff]  ;;  %v386_v45 = vld [vmem:[#allocation5 + $0x3b8] sm:$0xff] }
  0xeb   : > { %789 = vmatpush.msra.mxu3 %v386_v45 }
  0xec   : > { %1671 = vrot.lane.b32.xlu0 %v3986_v39, %s3667_s21 }
  0xee   : > { %3049 = vmatmul.msk.f32.gmra.mxu2 %vm387_vm0, %v3843_v42 }
  0xf0   : > { %v520_v54 = vpop.f32.mrf.mxu2 }
  0xf1   : > { %v4000_v55 = vadd.f32 %v561_v28, %v520_v54  ;;  %v441_v56 = vpop.f32.mrf.mxu0  ;;  %v4006_v0 = vpop.f32.mrf.mxu3  ;;  %v290_v28 = vld [vmem:[#allocation5 + $0xb8] sm:$0xff]  ;;  %v316_v54 = vld [vmem:[#allocation5 + $0x188] sm:$0xff] }
  0xf2   : > { %v4004_v63 = vpop.f32.mrf.mxu1  ;;  %v4016_v25 = vadd.f32 %v482_v40, %v441_v56  ;;  %669 = vmatpush.msrb.mxu0 %v290_v28  ;;  %v326_v40 = vld [vmem:[#allocation5 + $0x1d8] sm:$0xff]  ;;  %v381_v56 = vld [vmem:[#allocation5 + $0x390] sm:$0xff]  ;;  %v291_v28 = vld [vmem:[#allocation5 + $0xc0] sm:$0xff] }
  0xf3   : > { %855 = vrot.lane.b32.xlu2 %v4000_v55, %s3669_s10  ;;  %1256 = vrot.lane.b32.xlu1 %v4000_v55, %s3670_s11 }
  0xf4   : > { %1226 = vrot.lane.b32.xlu0 %v4002_v62, %s3668_s26  ;;  %670 = vmatpush.msrb.mxu0 %v285_v35  ;;  %v276_v35 = vld [vmem:[#allocation5 + $0x48] sm:$0xff] }
  0xf5   : > { %744 = vmatpush.msra.mxu1 %v326_v40  ;;  %790 = vmatpush.msra.mxu3 %v381_v56 }
  0xf6   : > { %671 = vmatpush.msrb.mxu0 %v280_v41  ;;  %3050 = vmatmul.msk.f32.gmra.mxu2 %vm387_vm0, %v3861_v59 }
  0xf7   : > { %745 = vmatpush.msra.mxu1 %v321_v43  ;;  %791 = vmatpush.msra.mxu3 %v376_v1  ;;  %v271_v43 = vld [vmem:[#allocation5 + $0x20] sm:$0xff] }
  0xf8   : > { %v523_v11 = vpop.f32.mrf.mxu2  ;;  %672 = vmatpush.msrb.mxu0 %v275_v53 }
  0xf9   : > { %v4014_v13 = vadd.f32 %v564_v33, %v523_v11  ;;  %v444_v15 = vpop.f32.mrf.mxu0  ;;  %v634_v33 = vpop.f32.mrf.mxu3  ;;  %746 = vmatpush.msra.mxu1 %v316_v54  ;;  %792 = vmatpush.msra.mxu3 %v371_v4  ;;  %v296_v11 = vld [vmem:[#allocation5 + $0xe8] sm:$0xff] }
  0xfa   : > { %v4018_v26 = vpop.f32.mrf.mxu1  ;;  %v4027_v50 = vadd.f32 %v3996_v49, %v444_v15  ;;  %v311_v49 = vld [vmem:[#allocation5 + $0x160] sm:$0xff]  ;;  %v361_v15 = vld [vmem:[#allocation5 + $0x2f0] sm:$0xff] }
  0xfb   : > { %1260 = vrot.lane.b32.xlu2 %v4014_v13, %s3670_s11  ;;  %857 = vrot.lane.b32.xlu1 %v4014_v13, %s3669_s10 }
  0xfc   : > { %1228 = vrot.lane.b32.xlu0 %v4016_v25, %s3668_s26  ;;  %747 = vmatpush.msra.mxu1 %v311_v49 }
  0xfd   : > { %793 = vmatpush.msra.mxu3 %v366_v8 }
  0xfe   : > { %748 = vmatpush.msra.mxu1 %v306_v2  ;;  %3051 = vmatmul.msk.f32.gmra.mxu2 %vm387_vm0, %v3850_v46 }
  0xff   : > { %794 = vmatpush.msra.mxu3 %v361_v15 }
 0x100   : > { %v526_v48 = vpop.f32.mrf.mxu2  ;;  %749 = vmatpush.msra.mxu1 %v301_v7 }
 0x101   : > { %v4030_v51 = vadd.f32 %v3984_v38, %v526_v48  ;;  %v4032_v52 = vpop.f32.mrf.mxu0  ;;  %v270_v38 = vld [vmem:[#allocation5 + $0x18] sm:$0xff]  ;;  %v637_v6 = vpop.f32.mrf.mxu3  ;;  %795 = vmatpush.msra.mxu3 %v356_v30 }
 0x102   : > { %v593_v57 = vpop.f32.mrf.mxu1  ;;  %673 = vmatpush.msrb.mxu0 %v270_v38  ;;  %750 = vmatpush.msra.mxu1 %v296_v11 }
 0x103   : > { %v4036_v61 = vadd.f32 %v634_v33, %v593_v57  ;;  %859 = vrot.lane.b32.xlu1 %v4030_v51, %s3669_s10  ;;  %1230 = vrot.lane.b32.xlu2 %v4027_v50, %s3668_s26 }
 0x104   : > { %674 = vmatmul.f32.vlgmr.msrb.gmra.mxu0 %v3858_v58  ;;  %751 = vmatpush.msra.mxu1 %v291_v28 }
 0x105   : > { %1704 = vrot.lane.b32.xlu0 %v4036_v61, %s3671_s6  ;;  %796 = vmatpush.msra.mxu3 %v351_v32 }
 0x106   : > { %3056 = vmatmul.msk.f32.vlgmr.msra.gmra.mxu3 %vm387_vm0, %v3827_v27  ;;  %v4074_v27 = vadd.f32 %v4004_v63, %v4032_v52  ;;  %3052 = vmatmul.msk.f32.gmra.mxu2 %vm387_vm0, %v3864_v60 }
 0x108   : > { %v529_v9 = vpop.f32.mrf.mxu2 }
 0x109   : > { %v450_v10 = vpop.f32.mrf.mxu0  ;;  %v4051_v24 = vadd.f32 %v3994_v47, %v529_v9  ;;  %v281_v47 = vld [vmem:[#allocation5 + $0x70] sm:$0xff]  ;;  %v640_v33 = vpop.f32.mrf.mxu3 }
 0x10a   : > { %v4048_v16 = vadd.f32 %v4018_v26, %v450_v10  ;;  %v596_v17 = vpop.f32.mrf.mxu1  ;;  %v286_v26 = vld [vmem:[#allocation5 + $0x98] sm:$0xff] }
 0x10b   : > { %1264 = vrot.lane.b32.xlu2 %v4030_v51, %s3670_s11  ;;  %752 = vmatpush.msra.mxu1 %v286_v26  ;;  %v638_v40 = vadd.f32 %v637_v6, %v596_v17 }
 0x10c   : > { %1234 = vrot.lane.b32.xlu1 %v4048_v16, %s3668_s26  ;;  %677 = vmatmul.f32.gmra.mxu0 %v3874_v3 }
 0x10d   : > { %861 = vrot.lane.b32.xlu0 %v4051_v24, %s3669_s10  ;;  %753 = vmatpush.msra.mxu1 %v281_v47 }
 0x10e   : > { %3057 = vmatmul.msk.f32.gmra.mxu3 %vm387_vm0, %v3843_v42  ;;  %3053 = vmatmul.msk.f32.gmra.mxu2 %vm387_vm0, %v3878_v5 }
 0x10f   : > { %754 = vmatpush.msra.mxu1 %v276_v35 }
 0x110   : > { %v532_v45 = vpop.f32.mrf.mxu2 }
 0x111   : > { %755 = vmatpush.msra.mxu1 %v271_v43  ;;  %v4089_v42 = vadd.f32 %v4006_v0, %v532_v45 }
 0x112   : > { %v599_v37 = vpop.f32.mrf.mxu1  ;;  %756 = vmatmul.f32.vlgmr.msra.gmra.mxu1 %v3858_v58 }
 0x113   : > { %v641_v41 = vadd.f32 %v640_v33, %v599_v37  ;;  %1246 = vrot.lane.b32.xlu2 %v4036_v61, %s3670_s11 }
 0x114   : > { %680 = vmatmul.f32.gmra.mxu0 %v3889_v12 }
 0x115   : > { %1250 = vrot.lane.b32.xlu0 %v638_v40, %s3670_s11  ;;  %1254 = vrot.lane.b32.xlu1 %v641_v41, %s3670_s11 }
 0x116   : > { %3058 = vmatmul.msk.f32.gmra.mxu3 %vm387_vm0, %v3861_v59  ;;  %3054 = vmatmul.msk.f32.gmra.mxu2 %vm387_vm0, %v3893_v14 }
 0x118   : > { %v552_v58 = vpop.f32.mrf.mxu2 }
 0x119   : > { %v4092_v63 = vadd.f32 %v552_v58, %v3976_v31 }
 0x11a   : > { %759 = vmatmul.f32.gmra.mxu1 %v3874_v3  ;;  %v602_v59 = vpop.f32.mrf.mxu1  ;;  %v643_v3 = vpop.f32.mrf.mxu3 }
 0x11b   : > { %1232 = vrot.lane.b32.xlu2 %v4074_v27, %s3668_s26  ;;  %v644_v0 = vadd.f32 %v643_v3, %v602_v59 }
 0x11c   : > { %683 = vmatmul.f32.gmra.mxu0 %v3904_v18 }
 0x11d   : > { %1706 = vrot.lane.b32.xlu0 %v638_v40, %s3671_s6  ;;  %1708 = vrot.lane.b32.xlu1 %v641_v41, %s3671_s6 }
 0x11e   : > { %3059 = vmatmul.msk.f32.gmra.mxu3 %vm387_vm0, %v3850_v46  ;;  %3055 = vmatmul.msk.f32.gmra.mxu2 %vm387_vm0, %v3908_v19 }
 0x122   : > { %762 = vmatmul.f32.gmra.mxu1 %v3889_v12  ;;  %v555_v12 = vpop.f32.mrf.mxu2  ;;  %v646_v31 = vpop.f32.mrf.mxu3 }
 0x123   : > { %1268 = vrot.lane.b32.xlu2 %v4051_v24, %s3670_s11  ;;  %v4117_v46 = vadd.f32 %v555_v12, %v3982_v36 }
 0x124   : > { %686 = vmatmul.f32.gmra.mxu0 %v3917_v20 }
 0x125   : > { %863 = vrot.lane.b32.xlu0 %v4089_v42, %s3669_s10  ;;  %849 = vrot.lane.b32.xlu1 %v4092_v63, %s3669_s10 }
 0x126   : > { %3060 = vmatmul.msk.f32.gmra.mxu3 %vm387_vm0, %v3864_v60 }
 0x12a   : > { %765 = vmatmul.f32.gmra.mxu1 %v3904_v18  ;;  %v605_v18 = vpop.f32.mrf.mxu1  ;;  %v649_v48 = vpop.f32.mrf.mxu3 }
 0x12b   : > { %2140 = vrot.lane.b32.xlu2 %v638_v40, %s3672_s7  ;;  %v647_v60 = vadd.f32 %v646_v31, %v605_v18 }
 0x12c   : > { %689 = vmatmul.f32.gmra.mxu0 %v3926_v21 }
 0x12d   : > { %2142 = vrot.lane.b32.xlu0 %v641_v41, %s3672_s7  ;;  %1244 = vrot.lane.b32.xlu1 %v4092_v63, %s3670_s11 }
 0x12e   : > { %3061 = vmatmul.msk.f32.gmra.mxu3 %vm387_vm0, %v3878_v5  ;;  %v4139_v5 = vpop.permute.xlu2 %1663 }
 0x132   : > { %768 = vmatmul.f32.gmra.mxu1 %v3917_v20  ;;  %v558_v20 = vpop.f32.mrf.mxu2  ;;  %v608_v36 = vpop.f32.mrf.mxu1 }
 0x133   : > { %1272 = vrot.lane.b32.xlu2 %v4089_v42, %s3670_s11  ;;  %v652_v54 = vpop.f32.mrf.mxu3 }
 0x134   : > { %692 = vmatmul.f32.gmra.mxu0 %v3935_v22 }
 0x135   : > { %1665 = vrot.lane.b32.xlu0 %v4092_v63, %s3667_s21  ;;  %851 = vrot.lane.b32.xlu1 %v4117_v46, %s3669_s10 }
 0x136   : > { %3062 = vmatmul.msk.f32.gmra.mxu3 %vm387_vm0, %v3893_v14 }
 0x13a   : > { %771 = vmatmul.f32.gmra.mxu1 %v3926_v21  ;;  %v559_v21 = vadd.f32 %v558_v20, %v3992_v44  ;;  %v611_v53 = vpop.f32.mrf.mxu1 }
 0x13b   : > { %1258 = vrot.lane.b32.xlu2 %v644_v0, %s3670_s11  ;;  %v653_v57 = vadd.f32 %v652_v54, %v611_v53  ;;  %v655_v38 = vpop.f32.mrf.mxu3 }
 0x13c   : > { %695 = vmatmul.f32.gmra.mxu0 %v3943_v23 }
 0x13d   : > { %2144 = vrot.lane.b32.xlu0 %v644_v0, %s3672_s7  ;;  %1712 = vrot.lane.b32.xlu1 %v647_v60, %s3671_s6 }
 0x13e   : > { %3063 = vmatmul.msk.f32.gmra.mxu3 %vm387_vm0, %v3908_v19 }
 0x142   : > { %774 = vmatmul.f32.gmra.mxu1 %v3935_v22  ;;  %v650_v22 = vadd.f32 %v649_v48, %v608_v36 }
 0x143   : > { %1710 = vrot.lane.b32.xlu2 %v644_v0, %s3671_s6 }
 0x145   : > { %1262 = vrot.lane.b32.xlu0 %v647_v60, %s3670_s11  ;;  %2146 = vrot.lane.b32.xlu1 %v647_v60, %s3672_s7 }
 0x146   : > { %v4153_v52 = vpop.permute.xlu0 %1220 }
 0x14a   : > { %777 = vmatmul.f32.gmra.mxu1 %v3943_v23  ;;  %v614_v23 = vpop.f32.mrf.mxu1 }
 0x14b   : > { %1248 = vrot.lane.b32.xlu2 %v4117_v46, %s3670_s11  ;;  %v656_v4 = vadd.f32 %v655_v38, %v614_v23 }
 0x14d   : > { %v4149_v14 = vpop.permute.xlu2 %855  ;;  %1252 = vrot.lane.b32.xlu0 %v559_v21, %s3670_s11  ;;  %853 = vrot.lane.b32.xlu1 %v559_v21, %s3669_s10 }
 0x14e   : > { %v4156_v56 = vpop.permute.xlu1 %1222 }
 0x153   : > { %1669 = vrot.lane.b32.xlu2 %v4117_v46, %s3667_s21 }
 0x155   : > { %v4160_v19 = vpop.permute.xlu2 %1260  ;;  %1266 = vrot.lane.b32.xlu0 %v650_v22, %s3670_s11  ;;  %1673 = vrot.lane.b32.xlu1 %v559_v21, %s3667_s21 }
 0x156   : > { %v4164_v44 = vpop.permute.xlu0 %1224  ;;  %v4167_v49 = vpop.permute.xlu1 %1667 }
 0x157   : > { %5406 = vst [vmem:[#allocation12_spill] sm:$0xff] %v4167_v49 }
 0x15b   : > { %1714 = vrot.lane.b32.xlu2 %v650_v22, %s3671_s6 }
 0x15d   : > { %1270 = vrot.lane.b32.xlu0 %v653_v57, %s3670_s11  ;;  %v4170_v1 = vpop.permute.xlu2 %1230  ;;  %2148 = vrot.lane.b32.xlu1 %v650_v22, %s3672_s7 }
 0x15e   : > { %5407 = vst [vmem:[#allocation13_spill] sm:$0xff] %v4170_v1  ;;  %v4173_v2 = vpop.permute.xlu0 %1671 }
 0x15f   : > { %5408 = vst [vmem:[#allocation14_spill] sm:$0xff] %v4173_v2 }
 0x163   : > { %1718 = vrot.lane.b32.xlu2 %v656_v4, %s3671_s6 }
 0x165   : > { %v4176_v6 = vpop.permute.xlu1 %1256  ;;  %1274 = vrot.lane.b32.xlu0 %v656_v4, %s3670_s11  ;;  %v4179_v7 = vpop.permute.xlu2 %1264  ;;  %1716 = vrot.lane.b32.xlu1 %v653_v57, %s3671_s6 }
 0x166   : > { %v4182_v8 = vpop.permute.xlu0 %1226 }
 0x169   : > { %v4215_v47 = vpop.f32.mrf.mxu2 }
 0x16b   : > { %2138 = vrot.lane.b32.xlu2 %v4036_v61, %s3672_s7 }
 0x16d   : > { %v858_v9 = vpop.permute.xlu1 %857  ;;  %2122 = vrot.lane.b32.xlu0 %v4092_v63, %s3673_s8  ;;  %v4188_v10 = vpop.permute.xlu2 %1246  ;;  %2150 = vrot.lane.b32.xlu1 %v653_v57, %s3672_s7 }
 0x16e   : > { %v4191_v11 = vpop.permute.xlu0 %1228 }
 0x16f   : > { %5409 = vst [vmem:[#allocation15_spill] sm:$0xff] %v4191_v11 }
 0x171   : > { %v4231_v41 = vpop.f32.mrf.mxu2 }
 0x173   : > { %2152 = vrot.lane.b32.xlu2 %v656_v4, %s3672_s7 }
 0x175   : > { %2124 = vrot.lane.b32.xlu0 %v4117_v46, %s3673_s8  ;;  %v4196_v15 = vpop.permute.xlu2 %1232  ;;  %1675 = vrot.lane.b32.xlu1 %v4002_v62, %s3667_s21  ;;  %v860_v61 = vpop.permute.xlu1 %859 }
 0x176   : > { %5410 = vst [vmem:[#allocation16_spill] sm:$0xff] %v4196_v15 }
 0x177   : > { %v4200_v17 = vpop.permute.xlu0 %1704 }
 0x179   : > { %v722_v59 = vpop.f32.mrf.mxu2 }
 0x17b   : > { %1677 = vrot.lane.b32.xlu2 %v4000_v55, %s3667_s21 }
 0x17d   : > { %2126 = vrot.lane.b32.xlu0 %v559_v21, %s3673_s8  ;;  %v4205_v28 = vpop.permute.xlu2 %1268  ;;  %1679 = vrot.lane.b32.xlu1 %v4016_v25, %s3667_s21 }
 0x17e   : > { %v4209_v30 = vpop.permute.xlu1 %1234 }
 0x17f   : > { %5411 = vst [vmem:[#allocation17_spill] sm:$0xff] %v4209_v30  ;;  %v862_v26 = vpop.permute.xlu0 %861 }
 0x181   : > { %v4213_v32 = vpop.f32.mrf.mxu0 }
 0x183   : > { %1681 = vrot.lane.b32.xlu2 %v4014_v13, %s3667_s21 }
 0x185   : > { %2128 = vrot.lane.b32.xlu0 %v4000_v55, %s3673_s8  ;;  %v4219_v33 = vpop.permute.xlu2 %2140  ;;  %1683 = vrot.lane.b32.xlu1 %v4027_v50, %s3667_s21 }
 0x187   : > { %v4223_v35 = vpop.permute.xlu0 %1250  ;;  %v4225_v37 = vpop.permute.xlu1 %1254 }
 0x189   : > { %v4229_v40 = vpop.f32.mrf.mxu0  ;;  %v798_v58 = vpop.f32.mrf.mxu3 }
 0x18b   : > { %1685 = vrot.lane.b32.xlu2 %v4030_v51, %s3667_s21 }
 0x18d   : > { %2130 = vrot.lane.b32.xlu0 %v4014_v13, %s3673_s8  ;;  %v4235_v55 = vpop.permute.xlu2 %1272  ;;  %1687 = vrot.lane.b32.xlu1 %v4074_v27, %s3667_s21 }
 0x18f   : > { %v4239_v43 = vpop.permute.xlu0 %1706  ;;  %v4241_v45 = vpop.permute.xlu1 %1708 }
 0x190   : > { %v757_v13 = vpop.f32.mrf.mxu1 }
 0x191   : > { %v681_v63 = vpop.f32.mrf.mxu0  ;;  %v801_v18 = vpop.f32.mrf.mxu3 }
 0x192   : > { %v4268_v48 = vadd.f32 %v722_v59, %v681_v63 }
 0x193   : > { %1689 = vrot.lane.b32.xlu2 %v4051_v24, %s3667_s21 }
 0x195   : > { %2132 = vrot.lane.b32.xlu0 %v4030_v51, %s3673_s8  ;;  %v4247_v3 = vpop.permute.xlu2 %1258  ;;  %1691 = vrot.lane.b32.xlu1 %v4048_v16, %s3667_s21  ;;  %v725_v51 = vpop.f32.mrf.mxu2 }
 0x197   : > { %v864_v12 = vpop.permute.xlu0 %863  ;;  %v4251_v46 = vpop.permute.xlu1 %849 }
 0x198   : > { %3064 = vmatpush.xpose.msk.msra.mxu0 %vm865_vm1, %v864_v12  ;;  %v760_v0 = vpop.f32.mrf.mxu1 }
 0x199   : > { %v684_v31 = vpop.f32.mrf.mxu0  ;;  %v804_v22 = vpop.f32.mrf.mxu3 }
 0x19a   : > { %v726_v21 = vadd.f32 %v725_v51, %v684_v31  ;;  %v4285_v31 = vadd.f32 %v798_v58, %v757_v13  ;;  %v4287_v51 = vadd.f32 %v801_v18, %v760_v0 }
 0x19b   : > { %1693 = vrot.lane.b32.xlu2 %v4089_v42, %s3667_s21 }
 0x19c   : > { %3065 = vmatpush.xpose.msk.msra.mxu0 %vm865_vm1, %v862_v26  ;;  %v3291_v57 = vpack.i.bf16 %v4268_v48, %v726_v21  ;;  %5412 = vst [vmem:[#allocation18_spill] sm:$0xff] %v4285_v31 }
 0x19d   : > { %2134 = vrot.lane.b32.xlu1 %v4051_v24, %s3673_s8  ;;  %v4259_v60 = vpop.permute.xlu2 %1710  ;;  %v728_v24 = vpop.f32.mrf.mxu2  ;;  %5413 = vst [vmem:[#allocation19_spill] sm:$0xff] %v4287_v51 }
 0x19f   : > { %v4261_v20 = vpop.permute.xlu0 %2142  ;;  %v4263_v36 = vpop.permute.xlu1 %1244 }
 0x1a0   : > { %3066 = vmatpush.xpose.msk.msra.mxu0 %vm865_vm1, %v860_v61  ;;  %v763_v54 = vpop.f32.mrf.mxu1 }
 0x1a1   : > { %v687_v53 = vpop.f32.mrf.mxu0  ;;  %v807_v4 = vpop.f32.mrf.mxu3  ;;  %v4305_v49 = vadd.f32 %v804_v22, %v763_v54 }
 0x1a3   : > { %2136 = vrot.lane.b32.xlu2 %v4089_v42, %s3673_s8 }
 0x1a4   : > { %3067 = vmatpush.xpose.msk.msra.mxu0 %vm865_vm1, %v858_v9 }
 0x1a5   : > { %3292 = vrot.lane.b32.xlu1 %v3291_v57, %s3668_s26  ;;  %v4277_v42 = vpop.permute.xlu2 %1248  ;;  %v731_v26 = vpop.f32.mrf.mxu2 }
 0x1a7   : > { %v4272_v23 = vpop.permute.xlu0 %1665  ;;  %v852_v38 = vpop.permute.xlu1 %851 }
 0x1a8   : > { %3068 = vmatpush.xpose.msk.msra.mxu0 %vm865_vm1, %v4149_v14  ;;  %v766_v63 = vpop.f32.mrf.mxu1 }
 0x1a9   : > { %v690_v61 = vpop.f32.mrf.mxu0  ;;  %v4279_v9 = vadd.f32 %v807_v4, %v766_v63  ;;  %v810_v15 = vpop.f32.mrf.mxu3  ;;  %v729_v4 = vadd.f32 %v728_v24, %v687_v53 }
 0x1ab   : > { %v3301_v57 = vpack.i.bf16 %v4279_v9, %v726_v21 }
 0x1ad   : > { %3302 = vrot.lane.b32.xlu1 %v3301_v57, %s3667_s21  ;;  %v4293_v30 = vpop.permute.xlu2 %1669  ;;  %v734_v1 = vpop.f32.mrf.mxu2 }
 0x1af   : > { %v4281_v59 = vpop.permute.xlu0 %2144  ;;  %v4283_v12 = vpop.permute.xlu1 %1712 }
 0x1b0   : > { %v769_v2 = vpop.f32.mrf.mxu1 }
 0x1b1   : > { %v693_v63 = vpop.f32.mrf.mxu0  ;;  %v4295_v11 = vadd.f32 %v810_v15, %v769_v2  ;;  %v4311_v15 = vadd.f32 %v731_v26, %v690_v61  ;;  %v4325_v61 = vadd.f32 %v4231_v41, %v4229_v40 }
 0x1b2   : > { %v4301_v0 = vadd.f32 %v734_v1, %v693_v63 }
 0x1b3   : > { %v3306_v18 = vpack.i.bf16 %v4295_v11, %v729_v4  ;;  %v3296_v41 = vpack.i.bf16 %v729_v4, %v4311_v15 }
 0x1b5   : > { %3307 = vrot.lane.b32.xlu1 %v3306_v18, %s3667_s21  ;;  %v737_v57 = vpop.f32.mrf.mxu2  ;;  %v1715_v51 = vpop.permute.xlu2 %1714 }
 0x1b7   : > { %v1263_v58 = vpop.permute.xlu0 %1262  ;;  %v4297_v13 = vpop.permute.xlu1 %2146 }
 0x1b9   : > { %v696_v14 = vpop.f32.mrf.mxu0 }
 0x1ba   : > { %v4303_v31 = vadd.f32 %v737_v57, %v696_v14  ;;  %v5417_v57 = vld [vmem:[#allocation13_spill] sm:$0xff] }
 0x1bc   : > { %v3311_v2 = vpack.i.bf16 %v4301_v0, %v4303_v31  ;;  %1187 = vmatpush.msrb.mxu2 %v4303_v31 }
 0x1bd   : > { %v1719_v14 = vpop.permute.xlu2 %1718 }
 0x1be   : > { %1188 = vmatpush.msrb.mxu2 %v4301_v0  ;;  %3312 = vrot.lane.b32.xlu1 %v3311_v2, %s3668_s26  ;;  %v5418_v2 = vld [vmem:[#allocation16_spill] sm:$0xff] }
 0x1bf   : > { %v1253_v53 = vpop.permute.xlu0 %1252  ;;  %v854_v24 = vpop.permute.xlu1 %853 }
 0x1c0   : > { %3069 = vmatpush.xpose.msk.msra.mxu0 %vm865_vm1, %v854_v24  ;;  %1189 = vmatpush.msrb.mxu2 %v4311_v15 }
 0x1c2   : > { %1190 = vmatpush.msrb.mxu2 %v729_v4 }
 0x1c4   : > { %3070 = vmatpush.xpose.msk.msra.mxu0 %vm865_vm1, %v852_v38  ;;  %1191 = vmatpush.msrb.mxu2 %v726_v21  ;;  %v4331_v38 = vadd.f32 %v4215_v47, %v4213_v32 }
 0x1c5   : > { %v4354_v26 = vpop.permute.xlu2 %2138 }
 0x1c6   : > { %1192 = vmatpush.msrb.mxu2 %v4268_v48  ;;  %v3286_v40 = vpack.i.bf16 %v4331_v38, %v4325_v61 }
 0x1c7   : > { %v1267_v22 = vpop.permute.xlu0 %1266  ;;  %v4319_v54 = vpop.permute.xlu1 %1673 }
 0x1c8   : > { %3071 = vmatpush.xpose.msk.msra.mxu0 %vm865_vm1, %v4251_v46  ;;  %1193 = vmatpush.msrb.mxu2 %v4325_v61  ;;  %v1282_v63 = vsel %vm1276_vm2, %v4179_v7, %v1267_v22  ;;  %v1280_v7 = vsel %vm1276_vm2, %v4176_v6, %v4247_v3 }
 0x1c9   : > { %3287 = vrot.lane.b32.xlu2 %v3286_v40, %s3668_s26 }
 0x1ca   : > { %1194 = vmatpush.msrb.mxu2 %v4331_v38 }
 0x1cb   : > { %3072 = vmatmul.msk.f32.vlgmr.msra.gmra.mxu0 %vm865_vm1, %v3970_v29 }
 0x1cc   : > { %3112 = vmatpush.xpose.msk.msrb.mxu0 %vm865_vm1, %v1719_v14 }
 0x1cf   : > { %v1271_v46 = vpop.permute.xlu0 %1270  ;;  %v2149_v21 = vpop.permute.xlu1 %2148 }
 0x1d1   : > { %3297 = vrot.lane.b32.xlu2 %v3296_v41, %s3668_s26 }
 0x1d3   : > { %3073 = vmatmul.msk.f32.gmra.mxu0 %vm865_vm1, %v3978_v34  ;;  %v1283_v34 = vsel %vm1276_vm2, %v4205_v28, %v1271_v46  ;;  %v5419_v46 = vld [vmem:[#allocation17_spill] sm:$0xff] }
 0x1d7   : > { %v1275_v32 = vpop.permute.xlu0 %1274  ;;  %v1717_v47 = vpop.permute.xlu1 %1716 }
 0x1d8   : > { %v1284_v29 = vsel %vm1276_vm2, %v4235_v55, %v1275_v32  ;;  %3113 = vmatpush.xpose.msk.msrb.mxu0 %vm865_vm1, %v1717_v47 }
 0x1d9   : > { %3088 = vmatpush.xpose.msk.msrb.mxu1 %vm865_vm1, %v1284_v29 }
 0x1db   : > { %3074 = vmatmul.msk.f32.gmra.mxu0 %vm865_vm1, %v3986_v39  ;;  %v1281_v39 = vsel %vm1276_vm2, %v4160_v19, %v1263_v58  ;;  %v1279_v19 = vsel %vm1276_vm2, %v1253_v53, %v4225_v37 }
 0x1dc   : > { %3114 = vmatpush.xpose.msk.msrb.mxu0 %vm865_vm1, %v1715_v51  ;;  %v813_v51 = vpop.f32.mrf.mxu3 }
 0x1dd   : > { %3089 = vmatpush.xpose.msk.msrb.mxu1 %vm865_vm1, %v1283_v34 }
 0x1df   : > { %v2151_v55 = vpop.permute.xlu1 %2150 }
 0x1e0   : > { %3115 = vmatpush.xpose.msk.msrb.mxu0 %vm865_vm1, %v4283_v12  ;;  %v2153_v12 = vpop.permute.xlu2 %2152 }
 0x1e1   : > { %3090 = vmatpush.xpose.msk.msrb.mxu1 %vm865_vm1, %v1282_v63 }
 0x1e3   : > { %3075 = vmatmul.msk.f32.gmra.mxu0 %vm865_vm1, %v4002_v62  ;;  %v772_v62 = vpop.f32.mrf.mxu1 }
 0x1e4   : > { %3116 = vmatpush.xpose.msk.msrb.mxu0 %vm865_vm1, %v4259_v60 }
 0x1e5   : > { %3091 = vmatpush.xpose.msk.msrb.mxu1 %vm865_vm1, %v1281_v39 }
 0x1e7   : > { %v4368_v28 = vpop.permute.xlu1 %1675 }
 0x1e8   : > { %3117 = vmatpush.xpose.msk.msrb.mxu0 %vm865_vm1, %v4241_v45  ;;  %v1278_v45 = vsel %vm1276_vm2, %v4277_v42, %v4223_v35  ;;  %v1678_v60 = vpop.permute.xlu2 %1677  ;;  %v4397_v35 = vadd.f32 %v813_v51, %v772_v62 }
 0x1e9   : > { %3092 = vmatpush.xpose.msk.msrb.mxu1 %vm865_vm1, %v1280_v7  ;;  %v822_v7 = vlaneseq }
 0x1ea   : > { %v3316_v4 = vpack.i.bf16 %v4397_v35, %v4311_v15 }
 0x1eb   : > { %3076 = vmatmul.msk.f32.gmra.mxu0 %vm865_vm1, %v4016_v25  ;;  %v775_v3 = vpop.f32.mrf.mxu1  ;;  %v816_v25 = vpop.f32.mrf.mxu3 }
 0x1ec   : > { %3118 = vmatpush.xpose.msk.msrb.mxu0 %vm865_vm1, %v4239_v43  ;;  %v4391_v37 = vadd.f32 %v816_v25, %v775_v3  ;;  %v1277_v43 = vsel %vm1276_vm2, %v4263_v36, %v4188_v10  ;;  %3317 = vrot.lane.b32.xlu0 %v3316_v4, %s3667_s21 }
 0x1ed   : > { %3093 = vmatpush.xpose.msk.msrb.mxu1 %vm865_vm1, %v1279_v19  ;;  %v4478_v19 = vshrl.u32 %v822_v7, 7 }
 0x1ef   : > { %v1680_v6 = vpop.permute.xlu1 %1679 }
 0x1f0   : > { %3119 = vmatpush.xpose.msk.msrb.mxu0 %vm865_vm1, %v4200_v17  ;;  %v3321_v17 = vpack.i.bf16 %v4391_v37, %v4301_v0 }
 0x1f1   : > { %3094 = vmatpush.xpose.msk.msrb.mxu1 %vm865_vm1, %v1278_v45 }
 0x1f2   : > { %3322 = vrot.lane.b32.xlu1 %v3321_v17, %s3667_s21  ;;  %v4493_v17 = vadd.s32 8, %v4478_v19 }
 0x1f3   : > { %3077 = vmatmul.msk.f32.gmra.mxu0 %vm865_vm1, %v4027_v50  ;;  %v1682_v50 = vpop.permute.xlu2 %1681  ;;  %v819_v58 = vpop.f32.mrf.mxu3 }
 0x1f4   : > { %v1700_v15 = vsel %vm1695_vm3, %v1680_v6, %v1682_v50  ;;  %v4480_v6 = vand.u32 127, %v822_v7 }
 0x1f5   : > { %3095 = vmatpush.xpose.msk.msrb.mxu1 %vm865_vm1, %v1277_v43 }
 0x1f6   : > { %vm833_vm4 = vcmp.le.s32.totalorder %v4480_v6, %v4478_v19  ;;  %vm834_vm5 = vcmp.le.s32.totalorder %v4480_v6, %v4493_v17 }
 0x1f7   : > { %v1684_v42 = vpop.permute.xlu1 %1683 }
 0x1f8   : > { %3096 = vmatmul.msk.f32.vlgmr.msrb.gmra.mxu1 %vm865_vm1, %v4153_v52 }
 0x1f9   : > { %3136 = vmatpush.xpose.msk.msra.mxu1 %vm865_vm1, %v2153_v12 }
 0x1fb   : > { %3078 = vmatmul.msk.f32.gmra.mxu0 %vm865_vm1, %v4074_v27  ;;  %v1686_v52 = vpop.permute.xlu2 %1685  ;;  %v778_v27 = vpop.f32.mrf.mxu1 }
 0x1fc   : > { %v4422_v18 = vadd.f32 %v819_v58, %v778_v27 }
 0x1fd   : > { %3137 = vmatpush.xpose.msk.msra.mxu1 %vm865_vm1, %v2151_v55 }
 0x1ff   : > { %v1688_v10 = vpop.permute.xlu1 %1687 }
 0x200   : > { %3097 = vmatmul.msk.f32.gmra.mxu1 %vm865_vm1, %v4156_v56  ;;  %v1696_v56 = vsel %vm1695_vm3, %v4139_v5, %v4272_v23 }
 0x201   : > { %3138 = vmatpush.xpose.msk.msra.mxu1 %vm865_vm1, %v2149_v21  ;;  %v1701_v21 = vsel %vm1695_vm3, %v1684_v42, %v1686_v52  ;;  %v4506_v52 = vadd.s32 16, %v4478_v19 }
 0x203   : > { %3079 = vmatmul.msk.f32.gmra.mxu0 %vm865_vm1, %v4048_v16  ;;  %v3346_v16 = vpack.i.bf16 %v4391_v37, %v4422_v18  ;;  %v1690_v5 = vpop.permute.xlu2 %1689  ;;  %vm835_vm6 = vcmp.le.s32.totalorder %v4480_v6, %v4506_v52 }
 0x204   : > { %v1702_v55 = vsel %vm1695_vm3, %v1688_v10, %v1690_v5  ;;  %v4519_v5 = vadd.s32 24, %v4478_v19 }
 0x205   : > { %3139 = vmatpush.xpose.msk.msra.mxu1 %vm865_vm1, %v4297_v13 }
 0x206   : > { %vm836_vm7 = vcmp.le.s32.totalorder %v4480_v6, %v4519_v5 }
 0x207   : > { %v1692_v36 = vpop.permute.xlu1 %1691 }
 0x208   : > { %3098 = vmatmul.msk.f32.gmra.mxu1 %vm865_vm1, %v4164_v44  ;;  %v5414_v44 = vld [vmem:[#allocation12_spill] sm:$0xff] }
 0x209   : > { %3140 = vmatpush.xpose.msk.msra.mxu1 %vm865_vm1, %v4281_v59  ;;  %v3326_v59 = vpack.i.bf16 %v4422_v18, %v4303_v31  ;;  %v5415_v31 = vld [vmem:[#allocation15_spill] sm:$0xff] }
 0x20b   : > { %3120 = vmatmul.msk.f32.vlgmr.msrb.gmra.mxu0 %vm865_vm1, %v1696_v56  ;;  %3327 = vrot.lane.b32.xlu2 %v3326_v59, %s3667_s21  ;;  %v1694_v0 = vpop.permute.xlu2 %1693 }
 0x20c   : > { %v1703_v51 = vsel %vm1695_vm3, %v1692_v36, %v1694_v0  ;;  %v4537_v0 = vadd.s32 32, %v4478_v19 }
 0x20d   : > { %3141 = vmatpush.xpose.msk.msra.mxu1 %vm865_vm1, %v4261_v20  ;;  %v1697_v20 = vsel %vm1695_vm3, %v5414_v44, %v4293_v30  ;;  %v1699_v30 = vsel %vm1695_vm3, %v4368_v28, %v1678_v60 }
 0x20e   : > { %vm837_vm9 = vcmp.le.s32.totalorder %v4480_v6, %v4537_v0 }
 0x20f   : > { %v4442_v23 = vpop.permute.xlu1 %2134 }
 0x210   : > { %3099 = vmatmul.msk.f32.gmra.mxu1 %vm865_vm1, %v4182_v8 }
 0x211   : > { %3142 = vmatpush.xpose.msk.msra.mxu1 %vm865_vm1, %v4219_v33  ;;  %v5416_v33 = vld [vmem:[#allocation14_spill] sm:$0xff] }
 0x212   : > { %v1698_v13 = vsel %vm1695_vm3, %v5416_v33, %v4319_v54  ;;  %v2123_v54 = vpop.permute.xlu0 %2122 }
 0x213   : > { %3121 = vmatmul.msk.f32.gmra.mxu0 %vm865_vm1, %v1697_v20  ;;  %v4460_v24 = vpop.permute.xlu2 %2136 }
 0x215   : > { %3143 = vmatpush.xpose.msk.msra.mxu1 %vm865_vm1, %v4354_v26 }
 0x217   : > { %v3293_v8 = vpop.permute.xlu1 %3292 }
 0x218   : > { %3100 = vmatmul.msk.f32.gmra.mxu1 %vm865_vm1, %v5415_v31  ;;  %v3294_v63 = vunpack.i.l.bf16 %v3293_v8  ;;  %v3295_v39 = vunpack.i.h.bf16 %v3293_v8  ;;  %v4525_v31 = vadd.s32 56, %v4478_v19 }
 0x21a   : > { %v2125_v41 = vpop.permute.xlu0 %2124  ;;  %vm840_vm8 = vcmp.le.s32.totalorder %v4480_v6, %v4525_v31 }
 0x21b   : > { %3122 = vmatmul.msk.f32.gmra.mxu0 %vm865_vm1, %v1698_v13 }
 0x21f   : > { %v4458_v53 = vpop.permute.xlu1 %3302 }
 0x220   : > { %3101 = vmatmul.msk.f32.gmra.mxu1 %vm865_vm1, %v5417_v57 }
 0x222   : > { %v2127_v12 = vpop.permute.xlu0 %2126 }
 0x223   : > { %3123 = vmatmul.msk.f32.gmra.mxu0 %vm865_vm1, %v1699_v30  ;;  %v3288_v14 = vpop.permute.xlu2 %3287 }
 0x224   : > { %v3289_v28 = vunpack.i.l.bf16 %v3288_v14  ;;  %v3290_v62 = vunpack.i.h.bf16 %v3288_v14 }
 0x227   : > { %v4466_v22 = vpop.permute.xlu1 %3307 }
 0x228   : > { %3102 = vmatmul.msk.f32.gmra.mxu1 %vm865_vm1, %v5418_v2 }
 0x22a   : > { %v2129_v25 = vpop.permute.xlu0 %2128 }
 0x22b   : > { %3124 = vmatmul.msk.f32.gmra.mxu0 %vm865_vm1, %v1700_v15  ;;  %v3298_v29 = vpop.permute.xlu2 %3297 }
 0x22c   : > { %v3299_v34 = vunpack.i.l.bf16 %v3298_v29  ;;  %v3300_v26 = vunpack.i.h.bf16 %v3298_v29 }
 0x230   : > { %3103 = vmatmul.msk.f32.gmra.mxu1 %vm865_vm1, %v5419_v46  ;;  %v3313_v40 = vpop.permute.xlu1 %3312 }
 0x231   : > { %v3315_v32 = vunpack.i.h.bf16 %v3313_v40  ;;  %v3314_v47 = vunpack.i.l.bf16 %v3313_v40 }
 0x232   : > { %v2131_v36 = vpop.permute.xlu0 %2130 }
 0x233   : > { %3125 = vmatmul.msk.f32.gmra.mxu0 %vm865_vm1, %v1701_v21  ;;  %1630 = vmatpush.msrb.mxu3 %v3314_v47  ;;  %v3309_v47 = vunpack.i.l.bf16 %v4466_v22 }
 0x235   : > { %1631 = vmatpush.msrb.mxu3 %v3315_v32  ;;  %v3310_v32 = vunpack.i.h.bf16 %v4466_v22  ;;  %v3305_v22 = vunpack.i.h.bf16 %v4458_v53 }
 0x237   : > { %1632 = vmatpush.msrb.mxu3 %v3299_v34 }
 0x238   : > { %3144 = vmatmul.msk.f32.vlgmr.msra.gmra.mxu1 %vm865_vm1, %v2123_v54 }
 0x239   : > { %1633 = vmatpush.msrb.mxu3 %v3300_v26 }
 0x23a   : > { %v2133_v44 = vpop.permute.xlu0 %2132 }
 0x23b   : > { %3126 = vmatmul.msk.f32.gmra.mxu0 %vm865_vm1, %v1702_v55  ;;  %1634 = vmatpush.msrb.mxu3 %v3294_v63 }
 0x23d   : > { %1635 = vmatpush.msrb.mxu3 %v3295_v39  ;;  %v3304_v39 = vunpack.i.l.bf16 %v4458_v53 }
 0x23f   : > { %1636 = vmatpush.msrb.mxu3 %v3289_v28 }
 0x240   : > { %3145 = vmatmul.msk.f32.gmra.mxu1 %vm865_vm1, %v2125_v41 }
 0x241   : > { %1637 = vmatpush.msrb.mxu3 %v3290_v62 }
 0x243   : > { %3127 = vmatmul.msk.f32.gmra.mxu0 %vm865_vm1, %v1703_v51  ;;  %v2044_v51 = vsel %vm1695_vm3, %v3304_v39, %v3305_v22 }
 0x248   : > { %v923_v45 = vpop.f32.mrf.mxu0  ;;  %3146 = vmatmul.msk.f32.gmra.mxu1 %vm865_vm1, %v2127_v12  ;;  %v2045_v12 = vsel %vm1695_vm3, %v3309_v47, %v3310_v32 }
 0x249   : > { %v947_v3 = vmul.f32 0.07216878, %v923_v45 }
 0x24b   : > { %v4488_v60 = vsel %vm833_vm4, %v947_v3, -inf }
 0x24c   : > { %v963_v43 = vsel %vm387_vm0, %v4488_v60, -inf }
 0x24d   : > { %964 = vmax.xlane.f32.xlu0 %v963_v43 }
 0x250   : > { %v926_v42 = vpop.f32.mrf.mxu0  ;;  %3147 = vmatmul.msk.f32.gmra.mxu1 %vm865_vm1, %v2129_v25 }
 0x251   : > { %v948_v4 = vmul.f32 0.07216878, %v926_v42 }
 0x253   : > { %v4501_v50 = vsel %vm834_vm5, %v948_v4, -inf }
 0x254   : > { %v966_v10 = vsel %vm387_vm0, %v4501_v50, -inf }
 0x255   : > { %967 = vmax.xlane.f32.xlu1 %v966_v10 }
 0x258   : > { %v929_v27 = vpop.f32.mrf.mxu0  ;;  %3148 = vmatmul.msk.f32.gmra.mxu1 %vm865_vm1, %v2131_v36 }
 0x259   : > { %v949_v58 = vmul.f32 0.07216878, %v929_v27 }
 0x25b   : > { %v4514_v56 = vsel %vm835_vm6, %v949_v58, -inf }
 0x25c   : > { %v969_v59 = vsel %vm387_vm0, %v4514_v56, -inf }
 0x25d   : > { %970 = vmax.xlane.f32.xlu2 %v969_v59 }
 0x25e   : > { %v3318_v41 = vpop.permute.xlu0 %3317 }
 0x25f   : > { %v3320_v26 = vunpack.i.h.bf16 %v3318_v41  ;;  %v3319_v55 = vunpack.i.l.bf16 %v3318_v41 }
 0x260   : > { %v932_v20 = vpop.f32.mrf.mxu0  ;;  %3149 = vmatmul.msk.f32.gmra.mxu1 %vm865_vm1, %v2133_v44 }
 0x261   : > { %v950_v33 = vmul.f32 0.07216878, %v932_v20  ;;  %v2046_v28 = vsel %vm1695_vm3, %v3319_v55, %v3320_v26 }
 0x263   : > { %v4532_v13 = vsel %vm836_vm7, %v950_v33, -inf }
 0x264   : > { %v972_v8 = vsel %vm387_vm0, %v4532_v13, -inf  ;;  %v3323_v14 = vpop.permute.xlu1 %3322 }
 0x265   : > { %973 = vmax.xlane.f32.xlu0 %v972_v8  ;;  %v3328_v57 = vpop.permute.xlu2 %3327  ;;  %v3325_v46 = vunpack.i.h.bf16 %v3323_v14  ;;  %v3324_v21 = vunpack.i.l.bf16 %v3323_v14 }
 0x266   : > { %v3330_v2 = vunpack.i.h.bf16 %v3328_v57  ;;  %v3329_v15 = vunpack.i.l.bf16 %v3328_v57 }
 0x267   : > { %v2047_v63 = vsel %vm1695_vm3, %v3324_v21, %v3325_v46 }
 0x268   : > { %v935_v30 = vpop.f32.mrf.mxu0  ;;  %3150 = vmatmul.msk.f32.gmra.mxu1 %vm865_vm1, %v4442_v23  ;;  %v2048_v40 = vsel %vm1695_vm3, %v3329_v15, %v3330_v2  ;;  %v4552_v23 = vadd.s32 40, %v4478_v19 }
 0x269   : > { %v951_v54 = vmul.f32 0.07216878, %v935_v30  ;;  %2089 = vmatpush.msra.mxu2 %v2048_v40 }
 0x26a   : > { %vm838_vm10 = vcmp.le.s32.totalorder %v4480_v6, %v4552_v23 }
 0x26b   : > { %v4549_v29 = vsel %vm837_vm9, %v951_v54, -inf  ;;  %2090 = vmatpush.msra.mxu2 %v2047_v63 }
 0x26c   : > { %v975_v34 = vsel %vm387_vm0, %v4549_v29, -inf }
 0x26d   : > { %976 = vmax.xlane.f32.xlu2 %v975_v34  ;;  %2091 = vmatpush.msra.mxu2 %v2046_v28 }
 0x26f   : > { %2092 = vmatpush.msra.mxu2 %v2045_v12 }
 0x270   : > { %v938_v7 = vpop.f32.mrf.mxu0  ;;  %3151 = vmatmul.msk.f32.gmra.mxu1 %vm865_vm1, %v4460_v24  ;;  %v4574_v24 = vadd.s32 48, %v4478_v19 }
 0x271   : > { %v952_v62 = vmul.f32 0.07216878, %v938_v7  ;;  %2093 = vmatpush.msra.mxu2 %v2044_v51 }
 0x272   : > { %vm839_vm11 = vcmp.le.s32.totalorder %v4480_v6, %v4574_v24  ;;  %v5420_v24 = vld [vmem:[#allocation19_spill] sm:$0xff] }
 0x273   : > { %v4569_v53 = vsel %vm838_vm10, %v952_v62, -inf }
 0x274   : > { %v978_v45 = vsel %vm387_vm0, %v4569_v53, -inf }
 0x275   : > { %v1334_v3 = vpop.f32.mrf.mxu1  ;;  %979 = vmax.xlane.f32.xlu1 %v978_v45 }
 0x276   : > { %v1358_v25 = vmul.f32 0.07216878, %v1334_v3 }
 0x278   : > { %v941_v43 = vpop.f32.mrf.mxu0  ;;  %v4579_v42 = vsel %vm833_vm4, %v1358_v25, -inf }
 0x279   : > { %v953_v4 = vmul.f32 0.07216878, %v941_v43  ;;  %v1374_v10 = vsel %vm387_vm0, %v4579_v42, -inf }
 0x27a   : > { %1375 = vmax.xlane.f32.xlu2 %v1374_v10 }
 0x27b   : > { %v4588_v36 = vsel %vm839_vm11, %v953_v4, -inf }
 0x27c   : > { %v981_v27 = vsel %vm387_vm0, %v4588_v36, -inf }
 0x27d   : > { %v1337_v58 = vpop.f32.mrf.mxu1  ;;  %982 = vmax.xlane.f32.xlu0 %v981_v27 }
 0x27e   : > { %v1359_v59 = vmul.f32 0.07216878, %v1337_v58 }
 0x280   : > { %v944_v44 = vpop.f32.mrf.mxu0  ;;  %v4595_v20 = vsel %vm834_vm5, %v1359_v59, -inf }
 0x281   : > { %v1377_v33 = vsel %vm387_vm0, %v4595_v20, -inf  ;;  %v954_v54 = vmul.f32 0.07216878, %v944_v44 }
 0x282   : > { %1378 = vmax.xlane.f32.xlu1 %v1377_v33 }
 0x283   : > { %v4609_v21 = vsel %vm840_vm8, %v954_v54, -inf }
 0x284   : > { %v984_v34 = vsel %vm387_vm0, %v4609_v21, -inf }
 0x285   : > { %v1340_v8 = vpop.f32.mrf.mxu1 }
 0x286   : > { %v1360_v57 = vmul.f32 0.07216878, %v1340_v8 }
 0x288   : > { %v1769_v30 = vpop.f32.mrf.mxu0  ;;  %v4602_v2 = vsel %vm835_vm6, %v1360_v57, -inf }
 0x289   : > { %v1380_v15 = vsel %vm387_vm0, %v4602_v2, -inf  ;;  %v1793_v26 = vmul.f32 0.07216878, %v1769_v30 }
 0x28a   : > { %1381 = vmax.xlane.f32.xlu0 %v1380_v15 }
 0x28b   : > { %v4630_v28 = vsel %vm833_vm4, %v1793_v26, -inf }
 0x28c   : > { %v1809_v51 = vsel %vm387_vm0, %v4630_v28, -inf }
 0x28d   : > { %v1343_v14 = vpop.f32.mrf.mxu1 }
 0x28e   : > { %v1361_v46 = vmul.f32 0.07216878, %v1343_v14 }
 0x290   : > { %v1772_v40 = vpop.f32.mrf.mxu0  ;;  %v4614_v32 = vsel %vm836_vm7, %v1361_v46, -inf }
 0x291   : > { %v1794_v47 = vmul.f32 0.07216878, %v1772_v40  ;;  %v1383_v41 = vsel %vm387_vm0, %v4614_v32, -inf }
 0x292   : > { %1384 = vmax.xlane.f32.xlu2 %v1383_v41  ;;  %985 = vmax.xlane.f32.xlu0 %v984_v34 }
 0x293   : > { %v4623_v55 = vsel %vm834_vm5, %v1794_v47, -inf }
 0x294   : > { %v1812_v63 = vsel %vm387_vm0, %v4623_v55, -inf }
 0x295   : > { %v1346_v22 = vpop.f32.mrf.mxu1  ;;  %1813 = vmax.xlane.f32.xlu1 %v1812_v63 }
 0x296   : > { %v1362_v39 = vmul.f32 0.07216878, %v1346_v22 }
 0x298   : > { %v1775_v7 = vpop.f32.mrf.mxu0  ;;  %v4635_v12 = vsel %vm837_vm9, %v1362_v39, -inf }
 0x299   : > { %v1386_v62 = vsel %vm387_vm0, %v4635_v12, -inf  ;;  %v1795_v45 = vmul.f32 0.07216878, %v1775_v7 }
 0x29a   : > { %1387 = vmax.xlane.f32.xlu2 %v1386_v62  ;;  %1810 = vmax.xlane.f32.xlu0 %v1809_v51 }
 0x29b   : > { %v4644_v43 = vsel %vm835_vm6, %v1795_v45, -inf }
 0x29c   : > { %v1815_v59 = vsel %vm387_vm0, %v4644_v43, -inf }
 0x29d   : > { %v1349_v3 = vpop.f32.mrf.mxu1 }
 0x29e   : > { %v1363_v25 = vmul.f32 0.07216878, %v1349_v3 }
 0x2a0   : > { %v1778_v4 = vpop.f32.mrf.mxu0  ;;  %v4649_v10 = vsel %vm838_vm10, %v1363_v25, -inf }
 0x2a1   : > { %v1796_v27 = vmul.f32 0.07216878, %v1778_v4  ;;  %v1389_v58 = vsel %vm387_vm0, %v4649_v10, -inf }
 0x2a2   : > { %1390 = vmax.xlane.f32.xlu2 %v1389_v58  ;;  %1816 = vmax.xlane.f32.xlu0 %v1815_v59 }
 0x2a3   : > { %v4658_v44 = vsel %vm836_vm7, %v1796_v27, -inf }
 0x2a4   : > { %v1818_v33 = vsel %vm387_vm0, %v4658_v44, -inf }
 0x2a5   : > { %v1352_v8 = vpop.f32.mrf.mxu1  ;;  %1819 = vmax.xlane.f32.xlu1 %v1818_v33 }
 0x2a6   : > { %v1364_v57 = vmul.f32 0.07216878, %v1352_v8 }
 0x2a8   : > { %v1781_v30 = vpop.f32.mrf.mxu0  ;;  %v4665_v15 = vsel %vm839_vm11, %v1364_v57, -inf }
 0x2a9   : > { %v1392_v54 = vsel %vm387_vm0, %v4665_v15, -inf  ;;  %v1797_v34 = vmul.f32 0.07216878, %v1781_v30 }
 0x2aa   : > { %1393 = vmax.xlane.f32.xlu2 %v1392_v54 }
 0x2ab   : > { %v4679_v63 = vsel %vm837_vm9, %v1797_v34, -inf }
 0x2ac   : > { %v1821_v7 = vsel %vm387_vm0, %v4679_v63, -inf }
 0x2ad   : > { %v1355_v14 = vpop.f32.mrf.mxu1 }
 0x2ae   : > { %v1365_v46 = vmul.f32 0.07216878, %v1355_v14 }
 0x2b0   : > { %v1784_v40 = vpop.f32.mrf.mxu0  ;;  %v4672_v47 = vsel %vm840_vm8, %v1365_v46, -inf }
 0x2b1   : > { %v1395_v41 = vsel %vm387_vm0, %v4672_v47, -inf  ;;  %v1798_v57 = vmul.f32 0.07216878, %v1784_v40 }
 0x2b2   : > { %1396 = vmax.xlane.f32.xlu0 %v1395_v41 }
 0x2b3   : > { %v4708_v17 = vsel %vm838_vm10, %v1798_v57, -inf }
 0x2b4   : > { %v1824_v14 = vsel %vm387_vm0, %v4708_v17, -inf }
 0x2b5   : > { %v2203_v26 = vpop.f32.mrf.mxu1 }
 0x2b6   : > { %v2227_v62 = vmul.f32 0.07216878, %v2203_v26 }
 0x2b8   : > { %v1787_v22 = vpop.f32.mrf.mxu0  ;;  %v4693_v4 = vsel %vm833_vm4, %v2227_v62, -inf }
 0x2b9   : > { %v1799_v39 = vmul.f32 0.07216878, %v1787_v22  ;;  %v2243_v8 = vsel %vm387_vm0, %v4693_v4, -inf }
 0x2ba   : > { %1822 = vmax.xlane.f32.xlu0 %v1821_v7 }
 0x2bb   : > { %v4686_v51 = vsel %vm839_vm11, %v1799_v39, -inf }
 0x2bc   : > { %v1827_v45 = vsel %vm387_vm0, %v4686_v51, -inf }
 0x2bd   : > { %v2206_v3 = vpop.f32.mrf.mxu1  ;;  %1828 = vmax.xlane.f32.xlu1 %v1827_v45 }
 0x2be   : > { %v2228_v25 = vmul.f32 0.07216878, %v2206_v3 }
 0x2c0   : > { %v965_v27 = vpop.xlane.xlu0 %964  ;;  %v4698_v58 = vsel %vm834_vm5, %v2228_v25, -inf }
 0x2c1   : > { %v987_v59 = vsub.f32 %v4488_v60, %v965_v27  ;;  %v2246_v33 = vsel %vm387_vm0, %v4698_v58, -inf }
 0x2c2   : > { %2247 = vmax.xlane.f32.xlu2 %v2246_v33  ;;  %2244 = vmax.xlane.f32.xlu0 %v2243_v8 }
 0x2c3   : > { %v995_v19 = vmul.f32 1.442695, %v987_v59 }
 0x2c5   : > { %3371 = vpow2.f32 %v995_v19  ;;  %v2209_v30 = vpop.f32.mrf.mxu1 }
 0x2c6   : > { %v2229_v46 = vmul.f32 0.07216878, %v2209_v30 }
 0x2c8   : > { %v968_v54 = vpop.xlane.xlu1 %967  ;;  %v4720_v22 = vsel %vm835_vm6, %v2229_v46, -inf }
 0x2c9   : > { %v988_v60 = vsub.f32 %v4501_v50, %v968_v54  ;;  %v1790_v50 = vpop.f32.mrf.mxu0  ;;  %v2249_v62 = vsel %vm387_vm0, %v4720_v22, -inf }
 0x2ca   : > { %1825 = vmax.xlane.f32.xlu0 %v1824_v14  ;;  %v1800_v45 = vmul.f32 0.07216878, %v1790_v50 }
 0x2cb   : > { %v4713_v41 = vpop.eup %3371  ;;  %v997_v40 = vmul.f32 1.442695, %v988_v60 }
 0x2cc   : > { %v1011_v34 = vsel %vm387_vm0, %v4713_v41, 0.0  ;;  %v4732_v33 = vsel %vm840_vm8, %v1800_v45, -inf }
 0x2cd   : > { %3373 = vpow2.f32 %v997_v40  ;;  %v2212_v26 = vpop.f32.mrf.mxu1  ;;  %1012 = vadd.xlane.f32.xlu1 %v1011_v34  ;;  %v1830_v30 = vsel %vm387_vm0, %v4732_v33, -inf }
 0x2ce   : > { %v2230_v54 = vmul.f32 0.07216878, %v2212_v26 }
 0x2d0   : > { %v971_v39 = vpop.xlane.xlu2 %970 }
 0x2d1   : > { %v989_v7 = vsub.f32 %v4514_v56, %v971_v39 }
 0x2d2   : > { %2250 = vmax.xlane.f32.xlu0 %v2249_v62 }
 0x2d3   : > { %v4725_v3 = vpop.eup %3373  ;;  %v999_v25 = vmul.f32 1.442695, %v989_v7 }
 0x2d4   : > { %v1014_v27 = vsel %vm387_vm0, %v4725_v3, 0.0 }
 0x2d5   : > { %3375 = vpow2.f32 %v999_v25  ;;  %v2215_v59 = vpop.f32.mrf.mxu1  ;;  %1015 = vadd.xlane.f32.xlu1 %v1014_v27 }
 0x2d6   : > { %v2231_v52 = vmul.f32 0.07216878, %v2215_v59 }
 0x2d8   : > { %v974_v56 = vpop.xlane.xlu0 %973  ;;  %v4737_v8 = vsel %vm837_vm9, %v2231_v52, -inf }
 0x2d9   : > { %v990_v57 = vsub.f32 %v4532_v13, %v974_v56  ;;  %v2255_v19 = vsel %vm387_vm0, %v4737_v8, -inf  ;;  %v4751_v13 = vsel %vm836_vm7, %v2230_v54, -inf }
 0x2da   : > { %2256 = vmax.xlane.f32.xlu2 %v2255_v19  ;;  %1831 = vmax.xlane.f32.xlu0 %v1830_v30  ;;  %v2252_v7 = vsel %vm387_vm0, %v4751_v13, -inf }
 0x2db   : > { %v4744_v60 = vpop.eup %3375  ;;  %v1001_v14 = vmul.f32 1.442695, %v990_v57  ;;  %v3331_v57 = vpack.i.bf16 %v4305_v49, %v4268_v48 }
 0x2dc   : > { %v1017_v46 = vsel %vm387_vm0, %v4744_v60, 0.0 }
 0x2dd   : > { %v2218_v0 = vpop.f32.mrf.mxu1  ;;  %1018 = vadd.xlane.f32.xlu1 %v1017_v46  ;;  %3377 = vpow2.f32 %v1001_v14 }
 0x2de   : > { %v2232_v40 = vmul.f32 0.07216878, %v2218_v0 }
 0x2e0   : > { %v977_v34 = vpop.xlane.xlu2 %976  ;;  %v4756_v26 = vsel %vm838_vm10, %v2232_v40, -inf }
 0x2e1   : > { %v991_v50 = vsub.f32 %v4549_v29, %v977_v34  ;;  %v2258_v39 = vsel %vm387_vm0, %v4756_v26, -inf }
 0x2e2   : > { %2259 = vmax.xlane.f32.xlu2 %v2258_v39  ;;  %2253 = vmax.xlane.f32.xlu0 %v2252_v7 }
 0x2e3   : > { %v1003_v5 = vmul.f32 1.442695, %v991_v50  ;;  %v4763_v62 = vpop.eup %3377 }
 0x2e4   : > { %v1020_v45 = vsel %vm387_vm0, %v4763_v62, 0.0 }
 0x2e5   : > { %3379 = vpow2.f32 %v1003_v5 }
 0x2e8   : > { %v980_v25 = vpop.xlane.xlu1 %979 }
 0x2e9   : > { %v992_v52 = vsub.f32 %v4569_v53, %v980_v25 }
 0x2ea   : > { %1021 = vadd.xlane.f32.xlu2 %v1020_v45 }
 0x2eb   : > { %v4767_v23 = vpop.eup %3379  ;;  %v1005_v19 = vmul.f32 1.442695, %v992_v52 }
 0x2ec   : > { %v1023_v29 = vsel %vm387_vm0, %v4767_v23, 0.0 }
 0x2ed   : > { %v1376_v27 = vpop.xlane.xlu2 %1375  ;;  %1024 = vadd.xlane.f32.xlu0 %v1023_v29 }
 0x2ee   : > { %v1398_v59 = vsub.f32 %v4579_v42, %v1376_v27 }
 0x2f0   : > { %v1406_v56 = vmul.f32 1.442695, %v1398_v59  ;;  %v983_v30 = vpop.xlane.xlu0 %982 }
 0x2f1   : > { %v993_v0 = vsub.f32 %v4588_v36, %v983_v30 }
 0x2f2   : > { %3381 = vpow2.f32 %v1406_v56 }
 0x2f3   : > { %3383 = vpow2.f32 %v1005_v19  ;;  %v1007_v40 = vmul.f32 1.442695, %v993_v0 }
 0x2f5   : > { %v1379_v54 = vpop.xlane.xlu1 %1378 }
 0x2f6   : > { %v1399_v14 = vsub.f32 %v4595_v20, %v1379_v54  ;;  %3332 = vrot.lane.b32.xlu1 %v3331_v57, %s3667_s21 }
 0x2f8   : > { %v4777_v46 = vpop.eup %3381  ;;  %v1408_v42 = vmul.f32 1.442695, %v1399_v14 }
 0x2f9   : > { %v1422_v53 = vsel %vm387_vm0, %v4777_v46, 0.0  ;;  %v4782_v34 = vpop.eup %3383 }
 0x2fa   : > { %3385 = vpow2.f32 %v1408_v42  ;;  %1423 = vadd.xlane.f32.xlu0 %v1422_v53  ;;  %v1026_v39 = vsel %vm387_vm0, %v4782_v34, 0.0 }
 0x2fb   : > { %3387 = vpow2.f32 %v1007_v40 }
 0x2fd   : > { %v1382_v48 = vpop.xlane.xlu0 %1381 }
 0x2fe   : > { %v1400_v20 = vsub.f32 %v4602_v2, %v1382_v48 }
 0x300   : > { %v4784_v50 = vpop.eup %3385  ;;  %v1410_v7 = vmul.f32 1.442695, %v1400_v20 }
 0x301   : > { %v1425_v36 = vsel %vm387_vm0, %v4784_v50, 0.0  ;;  %v4791_v29 = vpop.eup %3387 }
 0x302   : > { %1027 = vadd.xlane.f32.xlu0 %v1026_v39  ;;  %1426 = vadd.xlane.f32.xlu2 %v1425_v36  ;;  %3389 = vpow2.f32 %v1410_v7  ;;  %v1029_v27 = vsel %vm387_vm0, %v4791_v29, 0.0 }
 0x305   : > { %v1385_v5 = vpop.xlane.xlu2 %1384  ;;  %v986_v45 = vpop.xlane.xlu0 %985 }
 0x306   : > { %v1401_v25 = vsub.f32 %v4614_v32, %v1385_v5  ;;  %v994_v57 = vsub.f32 %v4609_v21, %v986_v45 }
 0x308   : > { %v1412_v2 = vmul.f32 1.442695, %v1401_v25  ;;  %v4796_v56 = vpop.eup %3389  ;;  %v1009_v54 = vmul.f32 1.442695, %v994_v57  ;;  %v1814_v14 = vpop.xlane.xlu1 %1813 }
 0x309   : > { %v1428_v30 = vsel %vm387_vm0, %v4796_v56, 0.0  ;;  %v1834_v21 = vsub.f32 %v4623_v55, %v1814_v14 }
 0x30a   : > { %1030 = vadd.xlane.f32.xlu0 %v1029_v27  ;;  %3391 = vpow2.f32 %v1412_v2 }
 0x30b   : > { %3393 = vpow2.f32 %v1009_v54  ;;  %v1843_v7 = vmul.f32 1.442695, %v1834_v21 }
 0x30d   : > { %v1388_v59 = vpop.xlane.xlu2 %1387  ;;  %v1811_v52 = vpop.xlane.xlu0 %1810 }
 0x30e   : > { %v1833_v19 = vsub.f32 %v4630_v28, %v1811_v52  ;;  %v1402_v53 = vsub.f32 %v4635_v12, %v1388_v59 }
 0x310   : > { %v1841_v32 = vmul.f32 1.442695, %v1833_v19  ;;  %v4802_v42 = vpop.eup %3391  ;;  %v1414_v20 = vmul.f32 1.442695, %v1402_v53  ;;  %v2221_v19 = vpop.f32.mrf.mxu1 }
 0x311   : > { %v1431_v28 = vsel %vm387_vm0, %v4802_v42, 0.0  ;;  %v4809_v36 = vpop.eup %3393 }
 0x312   : > { %1429 = vadd.xlane.f32.xlu0 %v1428_v30  ;;  %3395 = vpow2.f32 %v1841_v32  ;;  %v1032_v55 = vsel %vm387_vm0, %v4809_v36, 0.0  ;;  %v2233_v32 = vmul.f32 0.07216878, %v2221_v19 }
 0x315   : > { %v1391_v0 = vpop.xlane.xlu2 %1390  ;;  %v1817_v39 = vpop.xlane.xlu0 %1816 }
 0x316   : > { %v1403_v40 = vsub.f32 %v4649_v10, %v1391_v0  ;;  %v1835_v12 = vsub.f32 %v4644_v43, %v1817_v39 }
 0x318   : > { %v1416_v48 = vmul.f32 1.442695, %v1403_v40  ;;  %v4811_v5 = vpop.eup %3395  ;;  %v1845_v27 = vmul.f32 1.442695, %v1835_v12  ;;  %v1820_v0 = vpop.xlane.xlu1 %1819  ;;  %v3336_v12 = vpack.i.bf16 %v5420_v24, %v4325_v61 }
 0x319   : > { %v1857_v45 = vsel %vm387_vm0, %v4811_v5, 0.0  ;;  %v1836_v21 = vsub.f32 %v4658_v44, %v1820_v0 }
 0x31a   : > { %3397 = vpow2.f32 %v1416_v48  ;;  %1432 = vadd.xlane.f32.xlu0 %v1431_v28 }
 0x31b   : > { %3399 = vpow2.f32 %v1414_v20  ;;  %v1847_v20 = vmul.f32 1.442695, %v1836_v21 }
 0x31c   : > { %3401 = vpow2.f32 %v1843_v7 }
 0x31d   : > { %v1394_v2 = vpop.xlane.xlu2 %1393  ;;  %3403 = vpow2.f32 %v1845_v27 }
 0x31e   : > { %v1404_v57 = vsub.f32 %v4665_v15, %v1394_v2  ;;  %v4839_v15 = vsel %vm839_vm11, %v2233_v32, -inf  ;;  %v5421_v32 = vld [vmem:[#allocation18_spill] sm:$0xff] }
 0x31f   : > { %v2261_v28 = vsel %vm387_vm0, %v4839_v15, -inf }
 0x320   : > { %v4816_v10 = vpop.eup %3397  ;;  %1033 = vadd.xlane.f32.xlu1 %v1032_v55  ;;  %v1418_v14 = vmul.f32 1.442695, %v1404_v57 }
 0x321   : > { %v1437_v25 = vsel %vm387_vm0, %v4816_v10, 0.0  ;;  %v4822_v59 = vpop.eup %3399 }
 0x322   : > { %1858 = vadd.xlane.f32.xlu0 %v1857_v45  ;;  %1438 = vadd.xlane.f32.xlu2 %v1437_v25  ;;  %v4826_v52 = vpop.eup %3401  ;;  %v1434_v30 = vsel %vm387_vm0, %v4822_v59, 0.0  ;;  %3405 = vpow2.f32 %v1418_v14  ;;  %v2224_v25 = vpop.f32.mrf.mxu1  ;;  %v3341_v14 = vpack.i.bf16 %v5421_v32, %v4331_v38 }
 0x323   : > { %v1860_v54 = vsel %vm387_vm0, %v4826_v52, 0.0  ;;  %v4833_v53 = vpop.eup %3403  ;;  %3407 = vpow2.f32 %v1847_v20  ;;  %v2234_v19 = vmul.f32 0.07216878, %v2224_v25 }
 0x324   : > { %v1863_v48 = vsel %vm387_vm0, %v4833_v53, 0.0 }
 0x325   : > { %v4824_v43 = vpop.xlane.xlu0 %1396  ;;  %v4868_v0 = vsel %vm840_vm8, %v2234_v19, -inf }
 0x328   : > { %1435 = vadd.xlane.f32.xlu1 %v1434_v30  ;;  %v4845_v39 = vpop.eup %3405 }
 0x329   : > { %v1440_v44 = vsel %vm387_vm0, %v4845_v39, 0.0  ;;  %v4856_v45 = vpop.eup %3407 }
 0x32a   : > { %1861 = vadd.xlane.f32.xlu0 %v1860_v54  ;;  %v1866_v57 = vsel %vm387_vm0, %v4856_v45, 0.0 }
 0x32d   : > { %v1823_v40 = vpop.xlane.xlu0 %1822 }
 0x32e   : > { %v1837_v2 = vsub.f32 %v4679_v63, %v1823_v40 }
 0x330   : > { %1864 = vadd.xlane.f32.xlu1 %v1863_v48  ;;  %v4853_v55 = vpop.xlane.xlu1 %1828  ;;  %v1849_v61 = vmul.f32 1.442695, %v1837_v2  ;;  %v2264_v48 = vsel %vm387_vm0, %v4868_v0, -inf }
 0x332   : > { %2262 = vmax.xlane.f32.xlu0 %v2261_v28 }
 0x335   : > { %v4847_v7 = vpop.xlane.xlu0 %2244  ;;  %v2248_v54 = vpop.xlane.xlu2 %2247 }
 0x336   : > { %v2268_v63 = vsub.f32 %v4698_v58, %v2248_v54 }
 0x338   : > { %1441 = vadd.xlane.f32.xlu1 %v1440_v44  ;;  %v2277_v38 = vmul.f32 1.442695, %v2268_v63 }
 0x33a   : > { %3337 = vrot.lane.b32.xlu2 %v3336_v12, %s3667_s21 }
 0x33d   : > { %v4858_v27 = vpop.xlane.xlu0 %1825 }
 0x340   : > { %1867 = vadd.xlane.f32.xlu1 %v1866_v57  ;;  %v1013_v30 = vpop.xlane.xlu1 %1012 }
 0x341   : > { %3409 = vrcp.f32 %v1013_v30  ;;  %v1046_v12 = vand.u32 2147483648, %v1013_v30  ;;  %v1044_v25 = vand.u32 2147483647, %v1013_v30  ;;  %vm1040_vm13 = vweird.f32 %v1013_v30 }
 0x342   : > { %3411 = vpow2.f32 %v1849_v61 }
 0x343   : > { %v1047_v54 = vor.u32 1.1754944e-38, %v1046_v12  ;;  %vm1045_vm15 = vcmp.eq.f32.partialorder %v1044_v25, 8.507059e+37 }
 0x345   : > { %v2251_v21 = vpop.xlane.xlu0 %2250 }
 0x346   : > { %3342 = vrot.lane.b32.xlu0 %v3341_v14, %s3667_s21  ;;  %v2269_v19 = vsub.f32 %v4720_v22, %v2251_v21  ;;  %s3603_s21 = sshra.s32 %s2919_s14, 4  ;;  %s3604_s21 = int_to_ptr.hbm [resolvable:$true] %s3603_s21 }
 0x347   : > { %v3410_v40 = vpop.eup %3409  ;;  %s3605_s26 = scalar_lea.hbm %s3604_s21, 128  ;;  %p3610_p11 = scmp.lt.s32.totalorder %s3604_s21, %s5396_s4 }
 0x348   : > { %v1036_v28 = vmul.f32 %v3410_v40, %v1013_v30  ;;  %2265 = vmax.xlane.f32.xlu1 %v2264_v48  ;;  %v1016_v20 = vpop.xlane.xlu1 %1015  ;;  %v4874_v6 = vpop.eup %3411  ;;  %vm1041_vm12 = vweird.f32 %v3410_v40  ;;  %p3606_p1 = scmp.ne.s32.totalorder %s3604_s21, %s3605_s26 }
 0x349   : > { %3413 = vrcp.f32 %v1016_v20  ;;  %vm1042_vm14 = vmor %vm1040_vm13, %vm1041_vm12  ;;  %v1869_v14 = vsel %vm387_vm0, %v4874_v6, 0.0  ;;  %v1061_v21 = vand.u32 2147483648, %v1016_v20  ;;  %vm1055_vm5 = vweird.f32 %v1016_v20 }
 0x34a   : > { %v1037_v44 = vsub.f32 1.0, %v1036_v28  ;;  %3415 = vpow2.f32 %v2277_v38  ;;  %v2279_v38 = vmul.f32 1.442695, %v2269_v19  ;;  %p3607_p4 = pnand %p3606_p1, %p3772_p5 }
 0x34c   : > { %v1038_v31 = vmul.f32 %v3410_v40, %v1037_v44  ;;  %v2267_v44 = vsub.f32 %v4693_v4, %v4847_v7  ;;  %p3608_p8 = pneg %p3607_p4 }
 0x34d   : > { %v4876_v2 = vpop.xlane.xlu2 %2256  ;;  %v4878_v58 = vpop.xlane.xlu0 %1831 }
 0x34e   : > { %v1039_v57 = vadd.f32 %v3410_v40, %v1038_v31  ;;  %v2275_v25 = vmul.f32 1.442695, %v2267_v44 }
 0x34f   : > { %v3414_v61 = vpop.eup %3413 }
 0x350   : > { %v1043_v63 = vsel %vm1042_vm14, %v3410_v40, %v1039_v57  ;;  %v1051_v48 = vmul.f32 %v3414_v61, %v1016_v20  ;;  %1870 = vadd.xlane.f32.xlu1 %v1869_v14  ;;  %v1019_v28 = vpop.xlane.xlu1 %1018  ;;  %v4886_v31 = vpop.eup %3415  ;;  %vm1056_vm4 = vweird.f32 %v3414_v61  ;;  %v1059_v40 = vand.u32 2147483647, %v1016_v20 }
 0x351   : > { %v1048_v1 = vsel %vm1045_vm15, %v1047_v54, %v1043_v63  ;;  %3417 = vrcp.f32 %v1019_v28  ;;  %v1062_v54 = vor.u32 1.1754944e-38, %v1061_v21  ;;  %vm1057_vm6 = vmor %vm1055_vm5, %vm1056_vm4  ;;  %vm1070_vm9 = vweird.f32 %v1019_v28 }
 0x352   : > { %v1052_v30 = vsub.f32 1.0, %v1051_v48  ;;  %v1049_v22 = vmul.f32 %v4713_v41, %v1048_v1  ;;  %3419 = vpow2.f32 %v2279_v38  ;;  %v2294_v1 = vsel %vm387_vm0, %v4886_v31, 0.0 }
 0x353   : > { %v1838_v41 = vsub.f32 %v4708_v17, %v4858_v27  ;;  %vm1060_vm7 = vcmp.eq.f32.partialorder %v1059_v40, 8.507059e+37  ;;  %3421 = vpow2.f32 %v2275_v25  ;;  %v1405_v17 = vsub.f32 %v4672_v47, %v4824_v43 }
 0x354   : > { %v1053_v12 = vmul.f32 %v3414_v61, %v1052_v30  ;;  %3080 = vmatmul.msk.f32.vlgmr.msrb.gmra.mxu2 %vm387_vm0, %v1049_v22  ;;  %v1076_v30 = vand.u32 2147483648, %v1019_v28 }
 0x355   : > { %v4889_v57 = vpop.xlane.xlu2 %2259  ;;  %v2254_v14 = vpop.xlane.xlu0 %2253  ;;  %v1851_v21 = vmul.f32 1.442695, %v1838_v41 }
 0x356   : > { %v2270_v4 = vsub.f32 %v4751_v13, %v2254_v14  ;;  %v1054_v7 = vadd.f32 %v3414_v61, %v1053_v12  ;;  %v1074_v14 = vand.u32 2147483647, %v1019_v28  ;;  %v1077_v25 = vor.u32 1.1754944e-38, %v1076_v30 }
 0x357   : > { %v3418_v19 = vpop.eup %3417 }
 0x358   : > { %v1066_v63 = vmul.f32 %v3418_v19, %v1019_v28  ;;  %2295 = vadd.xlane.f32.xlu1 %v2294_v1  ;;  %v1058_v48 = vsel %vm1057_vm6, %v3414_v61, %v1054_v7  ;;  %v2281_v44 = vmul.f32 1.442695, %v2270_v4  ;;  %v4897_v22 = vpop.eup %3419  ;;  %vm1071_vm8 = vweird.f32 %v3418_v19 }
 0x359   : > { %v1063_v38 = vsel %vm1060_vm7, %v1062_v54, %v1058_v48  ;;  %v1840_v61 = vsub.f32 %v4732_v33, %v4878_v58  ;;  %v4904_v40 = vpop.eup %3421  ;;  %v2297_v4 = vsel %vm387_vm0, %v4897_v22, 0.0  ;;  %vm1072_vm10 = vmor %vm1070_vm9, %vm1071_vm8  ;;  %v2271_v7 = vsub.f32 %v4737_v8, %v4876_v2 }
 0x35a   : > { %v1067_v20 = vsub.f32 1.0, %v1066_v63  ;;  %v1064_v13 = vmul.f32 %v4725_v3, %v1063_v38  ;;  %3423 = vpow2.f32 %v2281_v44  ;;  %vm1075_vm11 = vcmp.eq.f32.partialorder %v1074_v14, 8.507059e+37 }
 0x35b   : > { %v1420_v33 = vmul.f32 1.442695, %v1405_v17  ;;  %v1855_v28 = vmul.f32 1.442695, %v1840_v61  ;;  %v2291_v54 = vsel %vm387_vm0, %v4904_v40, 0.0 }
 0x35c   : > { %v1068_v12 = vmul.f32 %v3418_v19, %v1067_v20  ;;  %3081 = vmatmul.msk.f32.gmra.mxu2 %vm387_vm0, %v1064_v13  ;;  %v2283_v8 = vmul.f32 1.442695, %v2271_v7 }
 0x35d   : > { %v1022_v27 = vpop.xlane.xlu2 %1021 }
 0x35e   : > { %3425 = vrcp.f32 %v1022_v27  ;;  %v1069_v3 = vadd.f32 %v3418_v19, %v1068_v12  ;;  %v1091_v20 = vand.u32 2147483648, %v1022_v27  ;;  %vm1085_vm13 = vweird.f32 %v1022_v27 }
 0x35f   : > { %3427 = vpow2.f32 %v1851_v21 }
 0x360   : > { %v4910_v47 = vpop.xlane.xlu0 %1024  ;;  %2298 = vadd.xlane.f32.xlu1 %v2297_v4  ;;  %v1073_v43 = vsel %vm1072_vm10, %v3418_v19, %v1069_v3  ;;  %v4916_v41 = vpop.eup %3423  ;;  %v1089_v3 = vand.u32 2147483647, %v1022_v27 }
 0x361   : > { %3429 = vrcp.f32 %v4910_v47  ;;  %v1078_v58 = vsel %vm1075_vm11, %v1077_v25, %v1073_v43  ;;  %v2300_v38 = vsel %vm387_vm0, %v4916_v41, 0.0  ;;  %vm1100_vm5 = vweird.f32 %v4910_v47 }
 0x362   : > { %v1079_v1 = vmul.f32 %v4744_v60, %v1078_v58  ;;  %3431 = vpow2.f32 %v1420_v33  ;;  %v2272_v60 = vsub.f32 %v4756_v26, %v4889_v57  ;;  %v1092_v33 = vor.u32 1.1754944e-38, %v1091_v20 }
 0x363   : > { %2292 = vadd.xlane.f32.xlu2 %v2291_v54  ;;  %3433 = vpow2.f32 %v1855_v28  ;;  %vm1090_vm15 = vcmp.eq.f32.partialorder %v1089_v3, 8.507059e+37 }
 0x364   : > { %v3426_v63 = vpop.eup %3425  ;;  %3082 = vmatmul.msk.f32.gmra.mxu2 %vm387_vm0, %v1079_v1  ;;  %3435 = vpow2.f32 %v2283_v8  ;;  %v2285_v43 = vmul.f32 1.442695, %v2272_v60 }
 0x365   : > { %v1081_v2 = vmul.f32 %v3426_v63, %v1022_v27  ;;  %v4919_v19 = vpop.eup %3427  ;;  %vm1086_vm12 = vweird.f32 %v3426_v63  ;;  %v1106_v27 = vand.u32 2147483648, %v4910_v47 }
 0x366   : > { %v1872_v61 = vsel %vm387_vm0, %v4919_v19, 0.0  ;;  %vm1087_vm14 = vmor %vm1085_vm13, %vm1086_vm12 }
 0x367   : > { %v3430_v48 = vpop.eup %3429  ;;  %v1082_v44 = vsub.f32 1.0, %v1081_v2 }
 0x368   : > { %v1096_v13 = vmul.f32 %v3430_v48, %v4910_v47  ;;  %2301 = vadd.xlane.f32.xlu1 %v2300_v38  ;;  %v3333_v30 = vpop.permute.xlu1 %3332  ;;  %v4928_v25 = vpop.eup %3431  ;;  %vm1101_vm4 = vweird.f32 %v3430_v48  ;;  %v1104_v38 = vand.u32 2147483647, %v4910_v47 }
 0x369   : > { %v1083_v21 = vmul.f32 %v3426_v63, %v1082_v44  ;;  %v3335_v12 = vunpack.i.h.bf16 %v3333_v30  ;;  %v3334_v14 = vunpack.i.l.bf16 %v3333_v30  ;;  %v4931_v4 = vpop.eup %3433  ;;  %v1443_v1 = vsel %vm387_vm0, %v4928_v25, 0.0  ;;  %vm1102_vm6 = vmor %vm1100_vm5, %vm1101_vm4 }
 0x36a   : > { %v1097_v17 = vsub.f32 1.0, %v1096_v13  ;;  %v4933_v54 = vpop.eup %3435  ;;  %v1878_v8 = vsel %vm387_vm0, %v4931_v4, 0.0  ;;  %v1107_v13 = vor.u32 1.1754944e-38, %v1106_v27  ;;  %vm1105_vm7 = vcmp.eq.f32.partialorder %v1104_v38, 8.507059e+37 }
 0x36b   : > { %1873 = vadd.xlane.f32.xlu2 %v1872_v61  ;;  %v2043_v26 = vsel %vm1695_vm3, %v3334_v14, %v3335_v12  ;;  %v1084_v57 = vadd.f32 %v3426_v63, %v1083_v21  ;;  %v2303_v60 = vsel %vm387_vm0, %v4933_v54, 0.0 }
 0x36c   : > { %v1098_v7 = vmul.f32 %v3430_v48, %v1097_v17  ;;  %2094 = vmatpush.msra.mxu2 %v2043_v26 }
 0x36d   : > { %v1424_v58 = vpop.xlane.xlu0 %1423  ;;  %v1088_v28 = vsel %vm1087_vm14, %v3426_v63, %v1084_v57 }
 0x36e   : > { %3437 = vrcp.f32 %v1424_v58  ;;  %v1093_v2 = vsel %vm1090_vm15, %v1092_v33, %v1088_v28  ;;  %v1099_v44 = vadd.f32 %v3430_v48, %v1098_v7  ;;  %v1457_v61 = vand.u32 2147483648, %v1424_v58 }
 0x36f   : > { %v1094_v63 = vmul.f32 %v4763_v62, %v1093_v2  ;;  %3439 = vpow2.f32 %v2285_v43  ;;  %v1455_v57 = vand.u32 2147483647, %v1424_v58  ;;  %vm1451_vm9 = vweird.f32 %v1424_v58 }
 0x370   : > { %1444 = vadd.xlane.f32.xlu0 %v1443_v1  ;;  %1879 = vadd.xlane.f32.xlu1 %v1878_v8  ;;  %v1103_v20 = vsel %vm1102_vm6, %v3430_v48, %v1099_v44  ;;  %v1458_v33 = vor.u32 1.1754944e-38, %v1457_v61 }
 0x371   : > { %3083 = vmatmul.msk.f32.gmra.mxu2 %vm387_vm0, %v1094_v63  ;;  %v1108_v17 = vsel %vm1105_vm7, %v1107_v13, %v1103_v20  ;;  %vm1456_vm11 = vcmp.eq.f32.partialorder %v1455_v57, 8.507059e+37 }
 0x372   : > { %v1109_v3 = vmul.f32 %v4767_v23, %v1108_v17 }
 0x373   : > { %2304 = vadd.xlane.f32.xlu2 %v2303_v60 }
 0x374   : > { %v3438_v30 = vpop.eup %3437 }
 0x375   : > { %v1447_v21 = vmul.f32 %v3438_v30, %v1424_v58  ;;  %v1028_v12 = vpop.xlane.xlu0 %1027  ;;  %v1427_v14 = vpop.xlane.xlu2 %1426  ;;  %vm1452_vm8 = vweird.f32 %v3438_v30 }
 0x376   : > { %3441 = vrcp.f32 %v1028_v12  ;;  %v4946_v62 = vpop.eup %3439  ;;  %vm1453_vm10 = vmor %vm1451_vm9, %vm1452_vm8  ;;  %v1121_v38 = vand.u32 2147483648, %v1028_v12  ;;  %v1119_v58 = vand.u32 2147483647, %v1028_v12  ;;  %vm1115_vm13 = vweird.f32 %v1028_v12 }
 0x377   : > { %v1448_v47 = vsub.f32 1.0, %v1447_v21  ;;  %3443 = vrcp.f32 %v1427_v14  ;;  %v2306_v48 = vsel %vm387_vm0, %v4946_v62, 0.0  ;;  %v1472_v21 = vand.u32 2147483648, %v1427_v14 }
 0x378   : > { %v1122_v61 = vor.u32 1.1754944e-38, %v1121_v38  ;;  %vm1120_vm4 = vcmp.eq.f32.partialorder %v1119_v58, 8.507059e+37  ;;  %vm1466_vm5 = vweird.f32 %v1427_v14 }
 0x379   : > { %v1449_v26 = vmul.f32 %v3438_v30, %v1448_v47  ;;  %3084 = vmatmul.msk.f32.gmra.mxu2 %vm387_vm0, %v1109_v3 }
 0x37b   : > { %v1450_v7 = vadd.f32 %v3438_v30, %v1449_v26  ;;  %2307 = vadd.xlane.f32.xlu2 %v2306_v48  ;;  %v1473_v48 = vor.u32 1.1754944e-38, %v1472_v21  ;;  %v5422_v21 = vpack.i.bf16 %v4305_v49, %v4279_v9 }
 0x37c   : > { %v3442_v43 = vpop.eup %3441 }
 0x37d   : > { %v3444_v28 = vpop.eup %3443  ;;  %v1454_v1 = vsel %vm1453_vm10, %v3438_v30, %v1450_v7  ;;  %v1111_v27 = vmul.f32 %v3442_v43, %v1028_v12  ;;  %v1031_v8 = vpop.xlane.xlu0 %1030  ;;  %vm1116_vm12 = vweird.f32 %v3442_v43  ;;  %v1470_v30 = vand.u32 2147483647, %v1427_v14 }
 0x37e   : > { %v1459_v23 = vsel %vm1456_vm11, %v1458_v33, %v1454_v1  ;;  %v1462_v2 = vmul.f32 %v3444_v28, %v1427_v14  ;;  %3445 = vrcp.f32 %v1031_v8  ;;  %vm1467_vm14 = vweird.f32 %v3444_v28  ;;  %vm1117_vm15 = vmor %vm1115_vm13, %vm1116_vm12 }
 0x37f   : > { %v1112_v44 = vsub.f32 1.0, %v1111_v27  ;;  %v1460_v63 = vmul.f32 %v4777_v46, %v1459_v23  ;;  %vm1468_vm6 = vmor %vm1466_vm5, %vm1467_vm14  ;;  %vm1471_vm7 = vcmp.eq.f32.partialorder %v1470_v30, 8.507059e+37  ;;  %v1136_v37 = vand.u32 2147483648, %v1031_v8 }
 0x380   : > { %v1463_v60 = vsub.f32 1.0, %v1462_v2  ;;  %v1134_v14 = vand.u32 2147483647, %v1031_v8  ;;  %vm1130_vm9 = vweird.f32 %v1031_v8 }
 0x381   : > { %v1113_v20 = vmul.f32 %v3442_v43, %v1112_v44  ;;  %3104 = vmatmul.msk.f32.vlgmr.msrb.gmra.mxu3 %vm387_vm0, %v1460_v63 }
 0x382   : > { %v1464_v13 = vmul.f32 %v3444_v28, %v1463_v60  ;;  %vm1135_vm11 = vcmp.eq.f32.partialorder %v1134_v14, 8.507059e+37 }
 0x383   : > { %v1114_v17 = vadd.f32 %v3442_v43, %v1113_v20 }
 0x384   : > { %v3446_v47 = vpop.eup %3445  ;;  %3347 = vrot.lane.b32.xlu0 %v3346_v16, %s3673_s8  ;;  %v1465_v46 = vadd.f32 %v3444_v28, %v1464_v13  ;;  %v3351_v16 = vpack.i.bf16 %v4295_v11, %v4397_v35 }
 0x385   : > { %v1126_v3 = vmul.f32 %v3446_v47, %v1031_v8  ;;  %v1430_v26 = vpop.xlane.xlu0 %1429  ;;  %v1118_v57 = vsel %vm1117_vm15, %v3442_v43, %v1114_v17  ;;  %vm1131_vm8 = vweird.f32 %v3446_v47 }
 0x386   : > { %3447 = vrcp.f32 %v1430_v26  ;;  %v1123_v7 = vsel %vm1120_vm4, %v1122_v61, %v1118_v57  ;;  %v1469_v1 = vsel %vm1468_vm6, %v3444_v28, %v1465_v46  ;;  %vm1132_vm10 = vmor %vm1130_vm9, %vm1131_vm8  ;;  %v1487_v35 = vand.u32 2147483648, %v1430_v26 }
 0x387   : > { %v1127_v12 = vsub.f32 1.0, %v1126_v3  ;;  %v1124_v33 = vmul.f32 %v4782_v34, %v1123_v7  ;;  %v1474_v27 = vsel %vm1471_vm7, %v1473_v48, %v1469_v1  ;;  %v1137_v34 = vor.u32 1.1754944e-38, %v1136_v37 }
 0x388   : > { %v1475_v18 = vmul.f32 %v4784_v50, %v1474_v27  ;;  %vm1481_vm13 = vweird.f32 %v1430_v26  ;;  %v1485_v58 = vand.u32 2147483647, %v1430_v26  ;;  %v1488_v61 = vor.u32 1.1754944e-38, %v1487_v35 }
 0x389   : > { %v1128_v23 = vmul.f32 %v3446_v47, %v1127_v12  ;;  %3085 = vmatmul.msk.f32.gmra.mxu2 %vm387_vm0, %v1124_v33  ;;  %v5423_v1 = vpack.i.bf16 %v5421_v32, %v5420_v24 }
 0x38a   : > { %3105 = vmatmul.msk.f32.gmra.mxu3 %vm387_vm0, %v1475_v18  ;;  %vm1486_vm15 = vcmp.eq.f32.partialorder %v1485_v58, 8.507059e+37 }
 0x38b   : > { %v1129_v43 = vadd.f32 %v3446_v47, %v1128_v23 }
 0x38c   : > { %v3448_v2 = vpop.eup %3447  ;;  %3352 = vrot.lane.b32.xlu0 %v3351_v16, %s3673_s8 }
 0x38d   : > { %v1477_v28 = vmul.f32 %v3448_v2, %v1430_v26  ;;  %v1433_v44 = vpop.xlane.xlu0 %1432  ;;  %v1133_v63 = vsel %vm1132_vm10, %v3446_v47, %v1129_v43  ;;  %vm1482_vm12 = vweird.f32 %v3448_v2 }
 0x38e   : > { %3449 = vrcp.f32 %v1433_v44  ;;  %v1138_v50 = vsel %vm1135_vm11, %v1137_v34, %v1133_v63  ;;  %vm1483_vm14 = vmor %vm1481_vm13, %vm1482_vm12  ;;  %v1502_v9 = vand.u32 2147483648, %v1433_v44  ;;  %vm1496_vm5 = vweird.f32 %v1433_v44 }
 0x38f   : > { %v1478_v38 = vsub.f32 1.0, %v1477_v28  ;;  %v1139_v60 = vmul.f32 %v4791_v29, %v1138_v50  ;;  %v1500_v33 = vand.u32 2147483647, %v1433_v44 }
 0x390   : > { %v1503_v14 = vor.u32 1.1754944e-38, %v1502_v9 }
 0x391   : > { %v1479_v11 = vmul.f32 %v3448_v2, %v1478_v38  ;;  %3086 = vmatmul.msk.f32.gmra.mxu2 %vm387_vm0, %v1139_v60  ;;  %vm1501_vm7 = vcmp.eq.f32.partialorder %v1500_v33, 8.507059e+37 }
 0x393   : > { %v1034_v8 = vpop.xlane.xlu1 %1033  ;;  %v1480_v20 = vadd.f32 %v3448_v2, %v1479_v11 }
 0x394   : > { %v3450_v13 = vpop.eup %3449  ;;  %3451 = vrcp.f32 %v1034_v8  ;;  %3357 = vrot.lane.b32.xlu0 %v5422_v21, %s3673_s8  ;;  %v1151_v24 = vand.u32 2147483648, %v1034_v8  ;;  %v1149_v63 = vand.u32 2147483647, %v1034_v8  ;;  %vm1145_vm9 = vweird.f32 %v1034_v8 }
 0x395   : > { %v1492_v17 = vmul.f32 %v3450_v13, %v1433_v44  ;;  %v4972_v30 = vpop.xlane.xlu0 %1858  ;;  %v4974_v29 = vpop.xlane.xlu2 %1438  ;;  %v1484_v47 = vsel %vm1483_vm14, %v3448_v2, %v1480_v20  ;;  %vm1497_vm4 = vweird.f32 %v3450_v13 }
 0x396   : > { %3453 = vrcp.f32 %v4974_v29  ;;  %v1489_v3 = vsel %vm1486_vm15, %v1488_v61, %v1484_v47  ;;  %vm4986_vm6 = vmor %vm1496_vm5, %vm1497_vm4  ;;  %v1152_v58 = vor.u32 1.1754944e-38, %v1151_v24  ;;  %vm1150_vm11 = vcmp.eq.f32.partialorder %v1149_v63, 8.507059e+37 }
 0x397   : > { %v1493_v46 = vsub.f32 1.0, %v1492_v17  ;;  %v1490_v57 = vmul.f32 %v4796_v56, %v1489_v3  ;;  %3455 = vrcp.f32 %v4972_v30  ;;  %vm1526_vm5 = vweird.f32 %v4974_v29 }
 0x399   : > { %v1494_v26 = vmul.f32 %v3450_v13, %v1493_v46  ;;  %3106 = vmatmul.msk.f32.gmra.mxu3 %vm387_vm0, %v1490_v57 }
 0x39a   : > { %v3452_v48 = vpop.eup %3451 }
 0x39b   : > { %v1495_v49 = vadd.f32 %v3450_v13, %v1494_v26  ;;  %v1141_v7 = vmul.f32 %v3452_v48, %v1034_v8  ;;  %v1436_v12 = vpop.xlane.xlu1 %1435  ;;  %vm1146_vm8 = vweird.f32 %v3452_v48 }
 0x39c   : > { %3457 = vrcp.f32 %v1436_v12  ;;  %3362 = vrot.lane.b32.xlu0 %v5423_v1, %s3673_s8  ;;  %v4984_v27 = vpop.eup %3453  ;;  %vm1147_vm10 = vmor %vm1145_vm9, %vm1146_vm8  ;;  %v1517_v3 = vand.u32 2147483648, %v1436_v12  ;;  %v1515_v57 = vand.u32 2147483647, %v1436_v12  ;;  %vm1511_vm13 = vweird.f32 %v1436_v12 }
 0x39d   : > { %v1142_v23 = vsub.f32 1.0, %v1141_v7  ;;  %v3338_v37 = vpop.permute.xlu2 %3337  ;;  %v4990_v18 = vpop.xlane.xlu0 %1861  ;;  %v1499_v16 = vsel %vm4986_vm6, %v3450_v13, %v1495_v49  ;;  %v1522_v32 = vmul.f32 %v4984_v27, %v4974_v29  ;;  %vm1527_vm15 = vweird.f32 %v4984_v27 }
 0x39e   : > { %v3340_v2 = vunpack.i.h.bf16 %v3338_v37  ;;  %v3339_v34 = vunpack.i.l.bf16 %v3338_v37  ;;  %v4996_v28 = vpop.eup %3455  ;;  %v1504_v38 = vsel %vm1501_vm7, %v1503_v14, %v1499_v16  ;;  %3459 = vrcp.f32 %v4990_v18  ;;  %vm5027_vm6 = vmor %vm1526_vm5, %vm1527_vm15 }
 0x39f   : > { %v1143_v43 = vmul.f32 %v3452_v48, %v1142_v23  ;;  %v1505_v60 = vmul.f32 %v4802_v42, %v1504_v38  ;;  %v1523_v13 = vsub.f32 1.0, %v1522_v32  ;;  %v1882_v21 = vmul.f32 %v4996_v28, %v4972_v30 }
 0x3a0   : > { %v2042_v11 = vsel %vm1695_vm3, %v3339_v34, %v3340_v2  ;;  %vm1516_vm4 = vcmp.eq.f32.partialorder %v1515_v57, 8.507059e+37  ;;  %v1532_v37 = vand.u32 2147483648, %v4974_v29  ;;  %v1530_v14 = vand.u32 2147483647, %v4974_v29 }
 0x3a1   : > { %v1144_v44 = vadd.f32 %v3452_v48, %v1143_v43  ;;  %2095 = vmatpush.msra.mxu2 %v2042_v11  ;;  %3107 = vmatmul.msk.f32.gmra.mxu3 %vm387_vm0, %v1505_v60  ;;  %v1524_v26 = vmul.f32 %v4984_v27, %v1523_v13  ;;  %v1883_v33 = vsub.f32 1.0, %v1882_v21  ;;  %vm1887_vm7 = vweird.f32 %v4996_v28 }
 0x3a2   : > { %v3458_v50 = vpop.eup %3457  ;;  %v1892_v60 = vand.u32 2147483648, %v4972_v30  ;;  %vm1531_vm8 = vcmp.eq.f32.partialorder %v1530_v14, 8.507059e+37  ;;  %vm1886_vm9 = vweird.f32 %v4972_v30  ;;  %vm1901_vm15 = vweird.f32 %v4990_v18 }
 0x3a3   : > { %v1507_v35 = vmul.f32 %v3458_v50, %v1436_v12  ;;  %v5001_v20 = vpop.xlane.xlu1 %1864  ;;  %v1148_v47 = vsel %vm1147_vm10, %v3452_v48, %v1144_v44  ;;  %vm1512_vm12 = vweird.f32 %v3458_v50  ;;  %v1525_v23 = vadd.f32 %v4984_v27, %v1524_v26  ;;  %vm1888_vm10 = vmor %vm1886_vm9, %vm1887_vm7 }
 0x3a4   : > { %v1153_v61 = vsel %vm1150_vm11, %v1152_v58, %v1148_v47  ;;  %v5009_v7 = vpop.eup %3459  ;;  %vm1513_vm14 = vmor %vm1511_vm13, %vm1512_vm12  ;;  %v1884_v12 = vmul.f32 %v4996_v28, %v1883_v33  ;;  %v1905_v33 = vand.u32 2147483647, %v4990_v18 }
 0x3a5   : > { %v1508_v17 = vsub.f32 1.0, %v1507_v35  ;;  %v2263_v42 = vpop.xlane.xlu0 %2262  ;;  %v1154_v9 = vmul.f32 %v4809_v36, %v1153_v61  ;;  %v1897_v36 = vmul.f32 %v5009_v7, %v4990_v18  ;;  %v1529_v32 = vsel %vm5027_vm6, %v4984_v27, %v1525_v23 }
 0x3a6   : > { %v2273_v8 = vsub.f32 %v4839_v15, %v2263_v42  ;;  %v1518_v15 = vor.u32 1.1754944e-38, %v1517_v3  ;;  %v1885_v29 = vadd.f32 %v4996_v28, %v1884_v12  ;;  %v1890_v27 = vand.u32 2147483647, %v4972_v30 }
 0x3a7   : > { %v1509_v46 = vmul.f32 %v3458_v50, %v1508_v17  ;;  %3087 = vmatmul.msk.f32.gmra.mxu2 %vm387_vm0, %v1154_v9  ;;  %v1898_v24 = vsub.f32 1.0, %v1897_v36  ;;  %v1893_v42 = vor.u32 1.1754944e-38, %v1892_v60  ;;  %vm1902_vm13 = vweird.f32 %v5009_v7 }
 0x3a8   : > { %v2287_v49 = vmul.f32 1.442695, %v2273_v8  ;;  %vm1891_vm11 = vcmp.eq.f32.partialorder %v1890_v27, 8.507059e+37  ;;  %vm1903_vm6 = vmor %vm1901_vm15, %vm1902_vm13 }
 0x3a9   : > { %v1510_v1 = vadd.f32 %v3458_v50, %v1509_v46  ;;  %v1899_v13 = vmul.f32 %v5009_v7, %v1898_v24 }
 0x3aa   : > { %3461 = vpow2.f32 %v2287_v49 }
 0x3ab   : > { %3463 = vrcp.f32 %v5001_v20  ;;  %v5014_v48 = vpop.xlane.xlu1 %1441  ;;  %v1514_v56 = vsel %vm1513_vm14, %v3458_v50, %v1510_v1  ;;  %v1839_v50 = vsub.f32 %v4686_v51, %v4853_v55  ;;  %v1889_v51 = vsel %vm1888_vm10, %v4996_v28, %v1885_v29 }
 0x3ac   : > { %3465 = vrcp.f32 %v5014_v48  ;;  %v1519_v16 = vsel %vm1516_vm4, %v1518_v15, %v1514_v56  ;;  %v1547_v30 = vand.u32 2147483648, %v5014_v48  ;;  %v1545_v61 = vand.u32 2147483647, %v5014_v48 }
 0x3ad   : > { %v1520_v43 = vmul.f32 %v4822_v59, %v1519_v16  ;;  %v1533_v59 = vor.u32 1.1754944e-38, %v1532_v37  ;;  %v1853_v17 = vmul.f32 1.442695, %v1839_v50  ;;  %v1894_v46 = vsel %vm1891_vm11, %v1893_v42, %v1889_v51 }
 0x3ae   : > { %v1900_v3 = vadd.f32 %v5009_v7, %v1899_v13  ;;  %vm1541_vm14 = vweird.f32 %v5014_v48  ;;  %v1907_v1 = vand.u32 2147483648, %v4990_v18  ;;  %v1548_v15 = vor.u32 1.1754944e-38, %v1547_v30 }
 0x3af   : > { %3108 = vmatmul.msk.f32.gmra.mxu3 %vm387_vm0, %v1520_v43  ;;  %v1534_v58 = vsel %vm1531_vm8, %v1533_v59, %v1529_v32  ;;  %vm1546_vm5 = vcmp.eq.f32.partialorder %v1545_v61, 8.507059e+37  ;;  %v1922_v59 = vand.u32 2147483648, %v5001_v20  ;;  %vm1916_vm8 = vweird.f32 %v5001_v20 }
 0x3b0   : > { %v5031_v34 = vpop.eup %3461  ;;  %v1535_v47 = vmul.f32 %v4816_v10, %v1534_v58  ;;  %v1904_v14 = vsel %vm1903_vm6, %v5009_v7, %v1900_v3  ;;  %v1908_v43 = vor.u32 1.1754944e-38, %v1907_v1 }
 0x3b1   : > { %v5037_v44 = vpop.eup %3463  ;;  %v2309_v63 = vsel %vm387_vm0, %v5031_v34, 0.0 }
 0x3b2   : > { %v3466_v38 = vpop.eup %3465  ;;  %2310 = vadd.xlane.f32.xlu1 %v2309_v63  ;;  %v1912_v55 = vmul.f32 %v5037_v44, %v5001_v20  ;;  %vm1917_vm7 = vweird.f32 %v5037_v44 }
 0x3b3   : > { %v1537_v11 = vmul.f32 %v3466_v38, %v5014_v48  ;;  %v5049_v35 = vpop.xlane.xlu1 %1867  ;;  %vm1542_vm12 = vweird.f32 %v3466_v38  ;;  %v1895_v48 = vmul.f32 %v4811_v5, %v1894_v46  ;;  %vm1918_vm9 = vmor %vm1916_vm8, %vm1917_vm7 }
 0x3b4   : > { %3467 = vrcp.f32 %v5049_v35  ;;  %v1913_v26 = vsub.f32 1.0, %v1912_v55  ;;  %vm1543_vm4 = vmor %vm1541_vm14, %vm1542_vm12  ;;  %v1937_v51 = vand.u32 2147483648, %v5049_v35  ;;  %vm1931_vm12 = vweird.f32 %v5049_v35 }
 0x3b5   : > { %v1538_v21 = vsub.f32 1.0, %v1537_v11  ;;  %3469 = vpow2.f32 %v1853_v17  ;;  %v1923_v11 = vor.u32 1.1754944e-38, %v1922_v59 }
 0x3b6   : > { %v1914_v18 = vmul.f32 %v5037_v44, %v1913_v26  ;;  %v1938_v30 = vor.u32 1.1754944e-38, %v1937_v51 }
 0x3b7   : > { %v1539_v8 = vmul.f32 %v3466_v38, %v1538_v21  ;;  %3109 = vmatmul.msk.f32.gmra.mxu3 %vm387_vm0, %v1535_v47 }
 0x3b8   : > { %v3343_v28 = vpop.permute.xlu0 %3342  ;;  %v1915_v24 = vadd.f32 %v5037_v44, %v1914_v18 }
 0x3b9   : > { %v1540_v57 = vadd.f32 %v3466_v38, %v1539_v8  ;;  %v3345_v49 = vunpack.i.h.bf16 %v3343_v28  ;;  %v3344_v9 = vunpack.i.l.bf16 %v3343_v28 }
 0x3ba   : > { %v5063_v10 = vpop.eup %3467  ;;  %v1919_v60 = vsel %vm1918_vm9, %v5037_v44, %v1915_v24  ;;  %v1935_v44 = vand.u32 2147483647, %v5049_v35 }
 0x3bb   : > { %v2266_v56 = vpop.xlane.xlu1 %2265  ;;  %v2041_v23 = vsel %vm1695_vm3, %v3344_v9, %v3345_v49  ;;  %v1544_v36 = vsel %vm1543_vm4, %v3466_v38, %v1540_v57  ;;  %v1927_v16 = vmul.f32 %v5063_v10, %v5049_v35  ;;  %vm1906_vm3 = vcmp.eq.f32.partialorder %v1905_v33, 8.507059e+37  ;;  %v5083_v29 = vpop.eup %3469 }
 0x3bc   : > { %v2274_v12 = vsub.f32 %v4868_v0, %v2266_v56  ;;  %2096 = vmatpush.msra.mxu2 %v2041_v23  ;;  %v1549_v37 = vsel %vm1546_vm5, %v1548_v15, %v1544_v36  ;;  %v1909_v0 = vsel %vm1906_vm3, %v1908_v43, %v1904_v14  ;;  %v1875_v50 = vsel %vm387_vm0, %v5083_v29, 0.0 }
 0x3bd   : > { %3128 = vmatmul.msk.f32.vlgmr.msra.gmra.mxu2 %vm387_vm0, %v1895_v48  ;;  %v1550_v5 = vmul.f32 %v4845_v39, %v1549_v37  ;;  %v1928_v32 = vsub.f32 1.0, %v1927_v16  ;;  %v1920_v39 = vand.u32 2147483647, %v5001_v20  ;;  %v1910_v63 = vmul.f32 %v4826_v52, %v1909_v0 }
 0x3be   : > { %v2289_v2 = vmul.f32 1.442695, %v2274_v12  ;;  %vm1932_vm11 = vweird.f32 %v5063_v10  ;;  %vm1936_vm14 = vcmp.eq.f32.partialorder %v1935_v44, 8.507059e+37 }
 0x3bf   : > { %3110 = vmatmul.msk.f32.gmra.mxu3 %vm387_vm0, %v1550_v5  ;;  %v1929_v38 = vmul.f32 %v5063_v10, %v1928_v32  ;;  %vm1921_vm10 = vcmp.eq.f32.partialorder %v1920_v39, 8.507059e+37  ;;  %vm1933_vm13 = vmor %vm1931_vm12, %vm1932_vm11 }
 0x3c0   : > { %3471 = vpow2.f32 %v2289_v2  ;;  %v1924_v52 = vsel %vm1921_vm10, %v1923_v11, %v1919_v60 }
 0x3c1   : > { %v1930_v58 = vadd.f32 %v5063_v10, %v1929_v38  ;;  %v1925_v21 = vmul.f32 %v4833_v53, %v1924_v52 }
 0x3c3   : > { %v1871_v7 = vpop.xlane.xlu1 %1870  ;;  %v1934_v42 = vsel %vm1933_vm13, %v5063_v10, %v1930_v58 }
 0x3c4   : > { %3473 = vrcp.f32 %v1871_v7  ;;  %v1939_v8 = vsel %vm1936_vm14, %v1938_v30, %v1934_v42  ;;  %v1952_v46 = vand.u32 2147483648, %v1871_v7  ;;  %vm1946_vm4 = vweird.f32 %v1871_v7 }
 0x3c5   : > { %3129 = vmatmul.msk.f32.gmra.mxu2 %vm387_vm0, %v1910_v63  ;;  %v1950_v3 = vand.u32 2147483647, %v1871_v7  ;;  %v1940_v35 = vmul.f32 %v4856_v45, %v1939_v8 }
 0x3c6   : > { %v5094_v27 = vpop.eup %3471  ;;  %1876 = vadd.xlane.f32.xlu0 %v1875_v50  ;;  %v1953_v28 = vor.u32 1.1754944e-38, %v1952_v46 }
 0x3c7   : > { %v2312_v20 = vsel %vm387_vm0, %v5094_v27, 0.0  ;;  %vm1951_vm6 = vcmp.eq.f32.partialorder %v1950_v3, 8.507059e+37 }
 0x3c8   : > { %2313 = vadd.xlane.f32.xlu2 %v2312_v20 }
 0x3ca   : > { %v3474_v13 = vpop.eup %3473 }
 0x3cb   : > { %v1942_v55 = vmul.f32 %v3474_v13, %v1871_v7  ;;  %vm1947_vm15 = vweird.f32 %v3474_v13  ;;  %v5114_v59 = vpop.xlane.xlu1 %2295 }
 0x3cc   : > { %vm1948_vm5 = vmor %vm1946_vm4, %vm1947_vm15 }
 0x3cd   : > { %v1943_v17 = vsub.f32 1.0, %v1942_v55  ;;  %3130 = vmatmul.msk.f32.gmra.mxu2 %vm387_vm0, %v1925_v21 }
 0x3cf   : > { %v1944_v47 = vmul.f32 %v3474_v13, %v1943_v17 }
 0x3d1   : > { %v1945_v61 = vadd.f32 %v3474_v13, %v1944_v47 }
 0x3d3   : > { %v1949_v53 = vsel %vm1948_vm5, %v3474_v13, %v1945_v61  ;;  %v5123_v20 = vpop.xlane.xlu1 %2298 }
 0x3d4   : > { %v1954_v57 = vsel %vm1951_vm6, %v1953_v28, %v1949_v53 }
 0x3d5   : > { %3131 = vmatmul.msk.f32.gmra.mxu2 %vm387_vm0, %v1940_v35  ;;  %v1955_v49 = vmul.f32 %v4874_v6, %v1954_v57 }
 0x3d6   : > { %v5108_v26 = vpop.xlane.xlu2 %2292 }
 0x3d7   : > { %v5119_v50 = vpop.f32.mrf.mxu2  ;;  %v2326_v3 = vand.u32 2147483648, %v5108_v26  ;;  %vm2320_vm15 = vweird.f32 %v5108_v26  ;;  %v2324_v53 = vand.u32 2147483647, %v5108_v26 }
 0x3d9   : > { %vm2325_vm5 = vcmp.eq.f32.partialorder %v2324_v53, 8.507059e+37 }
 0x3db   : > { %v5130_v61 = vpop.xlane.xlu1 %2301 }
 0x3dd   : > { %3132 = vmatmul.msk.f32.gmra.mxu2 %vm387_vm0, %v1955_v49 }
 0x3de   : > { %v1874_v9 = vpop.xlane.xlu2 %1873 }
 0x3df   : > { %3475 = vrcp.f32 %v1874_v9  ;;  %v1967_v56 = vand.u32 2147483648, %v1874_v9  ;;  %vm1961_vm7 = vweird.f32 %v1874_v9  ;;  %v1965_v12 = vand.u32 2147483647, %v1874_v9  ;;  %v5125_v44 = vpop.f32.mrf.mxu2 }
 0x3e1   : > { %v1968_v16 = vor.u32 1.1754944e-38, %v1967_v56  ;;  %vm1966_vm10 = vcmp.eq.f32.partialorder %v1965_v12, 8.507059e+37  ;;  %v2339_v12 = vand.u32 2147483647, %v5114_v59 }
 0x3e3   : > { %v1445_v10 = vpop.xlane.xlu0 %1444 }
 0x3e4   : > { %3477 = vrcp.f32 %v1445_v10  ;;  %v1562_v6 = vand.u32 2147483648, %v1445_v10  ;;  %v1560_v14 = vand.u32 2147483647, %v1445_v10  ;;  %vm1556_vm11 = vweird.f32 %v1445_v10 }
 0x3e5   : > { %v3476_v33 = vpop.eup %3475  ;;  %3479 = vrcp.f32 %v5108_v26 }
 0x3e6   : > { %v1957_v1 = vmul.f32 %v3476_v33, %v1874_v9  ;;  %vm1962_vm3 = vweird.f32 %v3476_v33  ;;  %v1563_v0 = vor.u32 1.1754944e-38, %v1562_v6  ;;  %vm1561_vm13 = vcmp.eq.f32.partialorder %v1560_v14, 8.507059e+37 }
 0x3e7   : > { %vm1963_vm8 = vmor %vm1961_vm7, %vm1962_vm3  ;;  %3481 = vrcp.f32 %v5114_v59  ;;  %v5140_v9 = vpop.f32.mrf.mxu2  ;;  %vm2335_vm3 = vweird.f32 %v5114_v59 }
 0x3e8   : > { %v1958_v45 = vsub.f32 1.0, %v1957_v1  ;;  %3483 = vrcp.f32 %v5123_v20 }
 0x3e9   : > { %3485 = vrcp.f32 %v5130_v61 }
 0x3ea   : > { %v3478_v15 = vpop.eup %3477  ;;  %v1959_v48 = vmul.f32 %v3476_v33, %v1958_v45 }
 0x3eb   : > { %v1552_v23 = vmul.f32 %v3478_v15, %v1445_v10  ;;  %vm1557_vm9 = vweird.f32 %v3478_v15  ;;  %v3480_v60 = vpop.eup %3479  ;;  %v2327_v10 = vor.u32 1.1754944e-38, %v2326_v3 }
 0x3ec   : > { %v1960_v36 = vadd.f32 %v3476_v33, %v1959_v48  ;;  %vm1558_vm12 = vmor %vm1556_vm11, %vm1557_vm9  ;;  %vm2321_vm14 = vweird.f32 %v3480_v60 }
 0x3ed   : > { %v1553_v37 = vsub.f32 1.0, %v1552_v23  ;;  %vm2322_vm4 = vmor %vm2320_vm15, %vm2321_vm14  ;;  %v2341_v23 = vand.u32 2147483648, %v5114_v59  ;;  %vm2365_vm14 = vweird.f32 %v5130_v61 }
 0x3ee   : > { %v1964_v18 = vsel %vm1963_vm8, %v3476_v33, %v1960_v36  ;;  %v5142_v33 = vpop.xlane.xlu2 %2304  ;;  %vm2340_vm8 = vcmp.eq.f32.partialorder %v2339_v12, 8.507059e+37 }
 0x3ef   : > { %v1554_v5 = vmul.f32 %v3478_v15, %v1553_v37  ;;  %v1969_v2 = vsel %vm1966_vm10, %v1968_v16, %v1964_v18  ;;  %3487 = vrcp.f32 %v5142_v33  ;;  %v2342_v14 = vor.u32 1.1754944e-38, %v2341_v23 }
 0x3f0   : > { %v1970_v24 = vmul.f32 %v4919_v19, %v1969_v2  ;;  %v2316_v19 = vmul.f32 %v3480_v60, %v5108_v26  ;;  %vm2350_vm10 = vweird.f32 %v5123_v20 }
 0x3f1   : > { %v1555_v43 = vadd.f32 %v3478_v15, %v1554_v5 }
 0x3f2   : > { %3133 = vmatmul.msk.f32.gmra.mxu2 %vm387_vm0, %v1970_v24  ;;  %v2317_v13 = vsub.f32 1.0, %v2316_v19  ;;  %v5166_v19 = vpop.xlane.xlu1 %1879 }
 0x3f3   : > { %v1559_v32 = vsel %vm1558_vm12, %v3478_v15, %v1555_v43 }
 0x3f4   : > { %v1564_v39 = vsel %vm1561_vm13, %v1563_v0, %v1559_v32  ;;  %v2318_v21 = vmul.f32 %v3480_v60, %v2317_v13  ;;  %v5151_v16 = vpop.f32.mrf.mxu2 }
 0x3f5   : > { %v1565_v7 = vmul.f32 %v4928_v25, %v1564_v39  ;;  %v3482_v25 = vpop.eup %3481  ;;  %v2354_v39 = vand.u32 2147483647, %v5123_v20 }
 0x3f6   : > { %v3348_v63 = vpop.permute.xlu0 %3347  ;;  %v2331_v55 = vmul.f32 %v3482_v25, %v5114_v59  ;;  %v2319_v8 = vadd.f32 %v3480_v60, %v2318_v21  ;;  %v5132_v46 = vpop.eup %3483  ;;  %vm2336_vm6 = vweird.f32 %v3482_v25  ;;  %v2356_v59 = vand.u32 2147483648, %v5123_v20 }
 0x3f7   : > { %v3349_v38 = vunpack.i.l.bf16 %v3348_v63  ;;  %3111 = vmatmul.msk.f32.gmra.mxu3 %vm387_vm0, %v1565_v7  ;;  %v3350_v11 = vunpack.i.h.bf16 %v3348_v63  ;;  %v2346_v57 = vmul.f32 %v5132_v46, %v5123_v20  ;;  %v3486_v56 = vpop.eup %3485  ;;  %vm2337_vm7 = vmor %vm2335_vm3, %vm2336_vm6  ;;  %vm2351_vm9 = vweird.f32 %v5132_v46  ;;  %v5156_v24 = vpop.xlane.xlu2 %2307 }
 0x3f8   : > { %v2332_v47 = vsub.f32 1.0, %v2331_v55  ;;  %v2323_v49 = vsel %vm2322_vm4, %v3480_v60, %v2319_v8  ;;  %v2361_v18 = vmul.f32 %v3486_v56, %v5130_v61  ;;  %v3488_v32 = vpop.eup %3487  ;;  %vm2352_vm11 = vmor %vm2350_vm10, %vm2351_vm9  ;;  %3489 = vrcp.f32 %v5156_v24 }
 0x3f9   : > { %2491 = vmatpush.msra.mxu3 %v3349_v38  ;;  %v2328_v45 = vsel %vm2325_vm5, %v2327_v10, %v2323_v49  ;;  %v2347_v26 = vsub.f32 1.0, %v2346_v57  ;;  %v2376_v38 = vmul.f32 %v3488_v32, %v5142_v33  ;;  %vm2355_vm12 = vcmp.eq.f32.partialorder %v2354_v39, 8.507059e+37 }
 0x3fa   : > { %v2333_v28 = vmul.f32 %v3482_v25, %v2332_v47  ;;  %v2329_v37 = vmul.f32 %v4904_v40, %v2328_v45  ;;  %v2362_v40 = vsub.f32 1.0, %v2361_v18  ;;  %vm2366_vm13 = vweird.f32 %v3486_v56 }
 0x3fb   : > { %2492 = vmatpush.msra.mxu3 %v3350_v11  ;;  %v2348_v6 = vmul.f32 %v5132_v46, %v2347_v26  ;;  %v2357_v11 = vor.u32 1.1754944e-38, %v2356_v59  ;;  %v2371_v55 = vand.u32 2147483648, %v5130_v61  ;;  %v2369_v21 = vand.u32 2147483647, %v5130_v61  ;;  %vm2367_vm15 = vmor %vm2365_vm14, %vm2366_vm13 }
 0x3fc   : > { %v2334_v48 = vadd.f32 %v3482_v25, %v2333_v28  ;;  %v2363_v63 = vmul.f32 %v3486_v56, %v2362_v40  ;;  %vm2381_vm5 = vweird.f32 %v3488_v32  ;;  %v2386_v61 = vand.u32 2147483648, %v5142_v33 }
 0x3fd   : > { %v2349_v0 = vadd.f32 %v5132_v46, %v2348_v6  ;;  %v2372_v8 = vor.u32 1.1754944e-38, %v2371_v55  ;;  %vm2370_vm4 = vcmp.eq.f32.partialorder %v2369_v21, 8.507059e+37  ;;  %vm2380_vm6 = vweird.f32 %v5142_v33 }
 0x3fe   : > { %v3353_v52 = vpop.permute.xlu0 %3352  ;;  %v2338_v5 = vsel %vm2337_vm7, %v3482_v25, %v2334_v48  ;;  %v2377_v25 = vsub.f32 1.0, %v2376_v38  ;;  %vm2382_vm3 = vmor %vm2380_vm6, %vm2381_vm5  ;;  %v2387_v45 = vor.u32 1.1754944e-38, %v2386_v61  ;;  %vm2395_vm9 = vweird.f32 %v5156_v24 }
 0x3ff   : > { %v3354_v58 = vunpack.i.l.bf16 %v3353_v52  ;;  %v3355_v51 = vunpack.i.h.bf16 %v3353_v52  ;;  %v2343_v2 = vsel %vm2340_vm8, %v2342_v14, %v2338_v5  ;;  %v2353_v60 = vsel %vm2352_vm11, %v5132_v46, %v2349_v0  ;;  %v5168_v52 = vpop.f32.mrf.mxu2 }
 0x400   : > { %v2344_v7 = vmul.f32 %v4886_v31, %v2343_v2  ;;  %v2358_v13 = vsel %vm2355_vm12, %v2357_v11, %v2353_v60  ;;  %v2364_v31 = vadd.f32 %v3486_v56, %v2363_v63 }
 0x401   : > { %2493 = vmatpush.msra.mxu3 %v3354_v58 }
 0x402   : > { %v2368_v47 = vsel %vm2367_vm15, %v3486_v56, %v2364_v31 }
 0x403   : > { %2494 = vmatpush.msra.mxu3 %v3355_v51  ;;  %v3490_v51 = vpop.eup %3489 }
 0x404   : > { %v1639_v17 = vpop.f32.mrf.mxu3  ;;  %vm2396_vm8 = vweird.f32 %v3490_v51 }
 0x405   : > { %2532 = vrot.lane.b32.xlu1 %v1639_v17, %s3672_s7  ;;  %v2359_v17 = vmul.f32 %v4897_v22, %v2358_v13  ;;  %v2384_v22 = vand.u32 2147483647, %v5142_v33  ;;  %vm2397_vm10 = vmor %vm2395_vm9, %vm2396_vm8 }
 0x406   : > { %v3358_v42 = vpop.permute.xlu0 %3357 }
 0x407   : > { %v3359_v30 = vunpack.i.l.bf16 %v3358_v42  ;;  %v3360_v35 = vunpack.i.h.bf16 %v3358_v42  ;;  %v2378_v42 = vmul.f32 %v3488_v32, %v2377_v25  ;;  %vm2385_vm7 = vcmp.eq.f32.partialorder %v2384_v22, 8.507059e+37 }
 0x409   : > { %2495 = vmatpush.msra.mxu3 %v3359_v30  ;;  %v2391_v30 = vmul.f32 %v3490_v51, %v5156_v24  ;;  %v2379_v53 = vadd.f32 %v3488_v32, %v2378_v42 }
 0x40b   : > { %2496 = vmatpush.msra.mxu3 %v3360_v35  ;;  %v2373_v35 = vsel %vm2370_vm4, %v2372_v8, %v2368_v47  ;;  %v2392_v28 = vsub.f32 1.0, %v2391_v30 }
 0x40c   : > { %v5177_v3 = vpop.f32.mrf.mxu2  ;;  %v2374_v57 = vmul.f32 %v4916_v41, %v2373_v35  ;;  %v2399_v41 = vand.u32 2147483647, %v5156_v24 }
 0x40d   : > { %v1642_v43 = vpop.f32.mrf.mxu3  ;;  %v2393_v10 = vmul.f32 %v3490_v51, %v2392_v28  ;;  %v1997_v28 = vand.u32 2147483648, %v5166_v19 }
 0x40e   : > { %v3363_v1 = vpop.permute.xlu0 %3362  ;;  %vm2400_vm11 = vcmp.eq.f32.partialorder %v2399_v41, 8.507059e+37  ;;  %v2673_v41 = vld [vmem:[#allocation7 + $0xe0] sm:$0xff] }
 0x40f   : > { %v3364_v15 = vunpack.i.l.bf16 %v3363_v1  ;;  %v3365_v36 = vunpack.i.h.bf16 %v3363_v1  ;;  %v2383_v1 = vsel %vm2382_vm3, %v3488_v32, %v2379_v53  ;;  %v2394_v26 = vadd.f32 %v3490_v51, %v2393_v10 }
 0x410   : > { %v2388_v48 = vsel %vm2385_vm7, %v2387_v45, %v2383_v1 }
 0x411   : > { %2497 = vmatpush.msra.mxu3 %v3364_v15  ;;  %v2389_v33 = vmul.f32 %v4933_v54, %v2388_v48  ;;  %v1998_v48 = vor.u32 1.1754944e-38, %v1997_v28  ;;  %v2672_v28 = vld [vmem:[#allocation7 + $0xd8] sm:$0xff] }
 0x413   : > { %2498 = vmatpush.msra.mxu3 %v3365_v36  ;;  %v2401_v36 = vand.u32 2147483648, %v5156_v24 }
 0x414   : > { %3152 = vmatmul.msk.f32.vlgmr.msra.gmra.mxu3 %vm387_vm0, %v2329_v37  ;;  %v5184_v56 = vpop.f32.mrf.mxu2  ;;  %v2398_v37 = vsel %vm2397_vm10, %v3490_v51, %v2394_v26  ;;  %vm1991_vm10 = vweird.f32 %v5166_v19 }
 0x415   : > { %v2402_v6 = vor.u32 1.1754944e-38, %v2401_v36  ;;  %v2675_v36 = vld [vmem:[#allocation7 + $0xf0] sm:$0xff] }
 0x416   : > { %2723 = vmatpush.msra.mxu0 %v2675_v36  ;;  %v2681_v36 = vld [vmem:[#allocation7 + $0x120] sm:$0xff] }
 0x417   : > { %v2403_v18 = vsel %vm2400_vm11, %v2402_v6, %v2398_v37  ;;  %v2667_v37 = vld [vmem:[#allocation7 + $0xb0] sm:$0xff]  ;;  %v2665_v6 = vld [vmem:[#allocation7 + $0xa0] sm:$0xff] }
 0x418   : > { %v2404_v40 = vmul.f32 %v4946_v62, %v2403_v18  ;;  %2724 = vmatpush.msra.mxu0 %v2673_v41  ;;  %v2664_v41 = vld [vmem:[#allocation7 + $0x98] sm:$0xff] }
 0x41c   : > { %3153 = vmatmul.msk.f32.gmra.mxu3 %vm387_vm0, %v2344_v7  ;;  %v1645_v58 = vpop.f32.mrf.mxu3 }
 0x41d   : > { %v3366_v20 = vpack.i.bf16 %v1645_v58, %v1642_v43 }
 0x41f   : > { %3367 = vrot.lane.b32.xlu0 %v3366_v20, %s3672_s7 }
 0x424   : > { %3154 = vmatmul.msk.f32.gmra.mxu3 %vm387_vm0, %v2359_v17 }
 0x425   : > { %v2311_v46 = vpop.xlane.xlu1 %2310 }
 0x426   : > { %3491 = vrcp.f32 %v2311_v46  ;;  %v2416_v2 = vand.u32 2147483648, %v2311_v46  ;;  %vm2410_vm13 = vweird.f32 %v2311_v46  ;;  %v2414_v54 = vand.u32 2147483647, %v2311_v46 }
 0x427   : > { %3493 = vrcp.f32 %v5166_v19 }
 0x428   : > { %v2417_v39 = vor.u32 1.1754944e-38, %v2416_v2  ;;  %vm2415_vm15 = vcmp.eq.f32.partialorder %v2414_v54, 8.507059e+37  ;;  %v2657_v2 = vld [vmem:[#allocation7 + $0x60] sm:$0xff]  ;;  %v2655_v54 = vld [vmem:[#allocation7 + $0x50] sm:$0xff] }
 0x42a   : > { %v5192_v14 = vpop.f32.mrf.mxu2 }
 0x42c   : > { %v3492_v49 = vpop.eup %3491  ;;  %3155 = vmatmul.msk.f32.gmra.mxu3 %vm387_vm0, %v2374_v57  ;;  %v1995_v57 = vand.u32 2147483647, %v5166_v19 }
 0x42d   : > { %v2406_v15 = vmul.f32 %v3492_v49, %v2311_v46  ;;  %vm2411_vm12 = vweird.f32 %v3492_v49  ;;  %v5194_v43 = vpop.eup %3493 }
 0x42e   : > { %vm2412_vm14 = vmor %vm2410_vm13, %vm2411_vm12  ;;  %v1987_v32 = vmul.f32 %v5194_v43, %v5166_v19  ;;  %vm1992_vm3 = vweird.f32 %v5194_v43 }
 0x42f   : > { %v2407_v23 = vsub.f32 1.0, %v2406_v15  ;;  %vm1993_vm13 = vmor %vm1991_vm10, %vm1992_vm3 }
 0x430   : > { %v1988_v38 = vsub.f32 1.0, %v1987_v32  ;;  %v2649_v32 = vld [vmem:[#allocation7 + $0x20] sm:$0xff] }
 0x431   : > { %v2408_v12 = vmul.f32 %v3492_v49, %v2407_v23  ;;  %v1648_v23 = vpop.f32.mrf.mxu3 }
 0x432   : > { %v1989_v31 = vmul.f32 %v5194_v43, %v1988_v38 }
 0x433   : > { %v2409_v5 = vadd.f32 %v3492_v49, %v2408_v12  ;;  %v2669_v12 = vld [vmem:[#allocation7 + $0xc0] sm:$0xff] }
 0x434   : > { %3156 = vmatmul.msk.f32.gmra.mxu3 %vm387_vm0, %v2389_v33  ;;  %v1990_v8 = vadd.f32 %v5194_v43, %v1989_v31  ;;  %v2671_v33 = vld [vmem:[#allocation7 + $0xd0] sm:$0xff] }
 0x435   : > { %v2413_v59 = vsel %vm2412_vm14, %v3492_v49, %v2409_v5  ;;  %vm1996_vm14 = vcmp.eq.f32.partialorder %v1995_v57, 8.507059e+37  ;;  %2725 = vmatpush.msra.mxu0 %v2671_v33  ;;  %v2661_v5 = vld [vmem:[#allocation7 + $0x80] sm:$0xff]  ;;  %v2679_v33 = vld [vmem:[#allocation7 + $0x110] sm:$0xff] }
 0x436   : > { %v2418_v7 = vsel %vm2415_vm15, %v2417_v39, %v2413_v59  ;;  %v1994_v15 = vsel %vm1993_vm13, %v5194_v43, %v1990_v8  ;;  %v2659_v43 = vld [vmem:[#allocation7 + $0x70] sm:$0xff]  ;;  %vm2628_vm15 = vcmask 785408  }
 0x437   : > { %v2419_v62 = vmul.f32 %v5031_v34, %v2418_v7  ;;  %v1999_v19 = vsel %vm1996_vm14, %v1998_v48, %v1994_v15  ;;  %2726 = vmatpush.msra.mxu0 %v2669_v12  ;;  %v2647_v39 = vld [vmem:[#allocation7 + $0x10] sm:$0xff]  ;;  %v2645_v7 = vld [vmem:[#allocation7] sm:$0xff]  ;;  %v2668_v48 = vld [vmem:[#allocation7 + $0xb8] sm:$0xff] }
 0x438   : > { %v2662_v12 = vld [vmem:[#allocation7 + $0x88] sm:$0xff] }
 0x439   : > { %v1877_v0 = vpop.xlane.xlu0 %1876  ;;  %2727 = vmatpush.msra.mxu0 %v2667_v37  ;;  %v2680_v37 = vld [vmem:[#allocation7 + $0x118] sm:$0xff] }
 0x43a   : > { %3495 = vrcp.f32 %v1877_v0  ;;  %v1982_v25 = vand.u32 2147483648, %v1877_v0  ;;  %v1980_v55 = vand.u32 2147483647, %v1877_v0  ;;  %vm1976_vm5 = vweird.f32 %v1877_v0 }
 0x43b   : > { %v2314_v24 = vpop.xlane.xlu2 %2313  ;;  %2728 = vmatpush.msra.mxu0 %v2665_v6  ;;  %v2660_v6 = vld [vmem:[#allocation7 + $0x78] sm:$0xff] }
 0x43c   : > { %3497 = vrcp.f32 %v2314_v24  ;;  %3157 = vmatmul.msk.f32.gmra.mxu3 %vm387_vm0, %v2404_v40  ;;  %v2431_v17 = vand.u32 2147483648, %v2314_v24  ;;  %v2429_v47 = vand.u32 2147483647, %v2314_v24  ;;  %v1983_v34 = vor.u32 1.1754944e-38, %v1982_v25  ;;  %v2653_v40 = vld [vmem:[#allocation7 + $0x40] sm:$0xff] }
 0x43d   : > { %vm1981_vm8 = vcmp.eq.f32.partialorder %v1980_v55, 8.507059e+37  ;;  %vm2425_vm9 = vweird.f32 %v2314_v24 }
 0x43e   : > { %v2432_v61 = vor.u32 1.1754944e-38, %v2431_v17  ;;  %vm2430_vm12 = vcmp.eq.f32.partialorder %v2429_v47, 8.507059e+37 }
 0x440   : > { %v3496_v63 = vpop.eup %3495  ;;  %v2098_v60 = vpop.f32.mrf.mxu2 }
 0x441   : > { %v1972_v11 = vmul.f32 %v3496_v63, %v1877_v0  ;;  %2564 = vrot.lane.b32.xlu2 %v2098_v60, %s3671_s6  ;;  %vm1977_vm4 = vweird.f32 %v3496_v63 }
 0x442   : > { %v3498_v58 = vpop.eup %3497  ;;  %vm1978_vm7 = vmor %vm1976_vm5, %vm1977_vm4 }
 0x443   : > { %v1973_v20 = vsub.f32 1.0, %v1972_v11  ;;  %v2421_v13 = vmul.f32 %v3498_v58, %v2314_v24  ;;  %vm2426_vm6 = vweird.f32 %v3498_v58  ;;  %v2651_v24 = vld [vmem:[#allocation7 + $0x30] sm:$0xff] }
 0x444   : > { %3158 = vmatmul.msk.f32.gmra.mxu3 %vm387_vm0, %v2419_v62  ;;  %vm2427_vm11 = vmor %vm2425_vm9, %vm2426_vm6 }
 0x445   : > { %v1974_v51 = vmul.f32 %v3496_v63, %v1973_v20  ;;  %v2422_v21 = vsub.f32 1.0, %v2421_v13 }
 0x447   : > { %v1975_v42 = vadd.f32 %v3496_v63, %v1974_v51  ;;  %v2423_v30 = vmul.f32 %v3498_v58, %v2422_v21 }
 0x448   : > { %v2101_v46 = vpop.f32.mrf.mxu2 }
 0x449   : > { %v2424_v35 = vadd.f32 %v3498_v58, %v2423_v30  ;;  %2566 = vrot.lane.b32.xlu1 %v2101_v46, %s3671_s6  ;;  %v1979_v53 = vsel %vm1978_vm7, %v3496_v63, %v1975_v42  ;;  %v2676_v46 = vld [vmem:[#allocation7 + $0xf8] sm:$0xff] }
 0x44a   : > { %v1984_v22 = vsel %vm1981_vm8, %v1983_v34, %v1979_v53  ;;  %3191 = vmatpush.msrb.mxu1 %v2676_v46  ;;  %v2691_v53 = vld [vmem:[#allocation7 + $0x170] sm:$0xff] }
 0x44b   : > { %v1985_v49 = vmul.f32 %v5083_v29, %v1984_v22  ;;  %v2428_v10 = vsel %vm2427_vm11, %v3498_v58, %v2424_v35  ;;  %v2000_v29 = vmul.f32 %v4931_v4, %v1999_v19  ;;  %v2663_v4 = vld [vmem:[#allocation7 + $0x90] sm:$0xff]  ;;  %v2674_v35 = vld [vmem:[#allocation7 + $0xe8] sm:$0xff]  ;;  %2772 = vmatpush.msrb.mxu2 %v2691_v53  ;;  %v2689_v22 = vld [vmem:[#allocation7 + $0x160] sm:$0xff] }
 0x44c   : > { %v2433_v1 = vsel %vm2430_vm12, %v2432_v61, %v2428_v10  ;;  %2729 = vmatpush.msra.mxu0 %v2663_v4  ;;  %v2692_v61 = vld [vmem:[#allocation7 + $0x178] sm:$0xff]  ;;  %3192 = vmatpush.msrb.mxu1 %v2674_v35  ;;  %v2687_v10 = vld [vmem:[#allocation7 + $0x150] sm:$0xff] }
 0x44d   : > { %3134 = vmatmul.msk.f32.gmra.mxu2 %vm387_vm0, %v1985_v49  ;;  %v2434_v45 = vmul.f32 %v5094_v27, %v2433_v1  ;;  %v1651_v27 = vpop.f32.mrf.mxu3  ;;  %2854 = vmatpush.msrb.mxu3 %v2692_v61  ;;  %v2690_v49 = vld [vmem:[#allocation7 + $0x168] sm:$0xff]  ;;  %v2683_v19 = vld [vmem:[#allocation7 + $0x130] sm:$0xff] }
 0x44e   : > { %2730 = vmatpush.msra.mxu0 %v2661_v5  ;;  %v2670_v1 = vld [vmem:[#allocation7 + $0xc8] sm:$0xff]  ;;  %2773 = vmatpush.msrb.mxu2 %v2689_v22  ;;  %v2656_v5 = vld [vmem:[#allocation7 + $0x58] sm:$0xff] }
 0x44f   : > { %3159 = vmatmul.msk.f32.gmra.mxu3 %vm387_vm0, %v2434_v45  ;;  %3193 = vmatpush.msrb.mxu1 %v2672_v28  ;;  %v2688_v45 = vld [vmem:[#allocation7 + $0x158] sm:$0xff] }
 0x450   : > { %v2104_v26 = vpop.f32.mrf.mxu2  ;;  %2731 = vmatpush.msra.mxu0 %v2659_v43  ;;  %2855 = vmatpush.msrb.mxu3 %v2690_v49 }
 0x451   : > { %2568 = vrot.lane.b32.xlu2 %v2104_v26, %s3671_s6  ;;  %2774 = vmatpush.msrb.mxu2 %v2687_v10  ;;  %v2686_v26 = vld [vmem:[#allocation7 + $0x148] sm:$0xff] }
 0x452   : > { %2732 = vmatpush.msra.mxu0 %v2657_v2  ;;  %3194 = vmatpush.msrb.mxu1 %v2670_v1 }
 0x453   : > { %2856 = vmatpush.msrb.mxu3 %v2688_v45 }
 0x454   : > { %2733 = vmatpush.msra.mxu0 %v2655_v54  ;;  %3195 = vmatpush.msrb.mxu1 %v2668_v48  ;;  %v2654_v54 = vld [vmem:[#allocation7 + $0x48] sm:$0xff] }
 0x455   : > { %3135 = vmatmul.msk.f32.gmra.mxu2 %vm387_vm0, %v2000_v29  ;;  %v1654_v18 = vpop.f32.mrf.mxu3  ;;  %v2666_v29 = vld [vmem:[#allocation7 + $0xa8] sm:$0xff]  ;;  %2857 = vmatpush.msrb.mxu3 %v2686_v26 }
 0x456   : > { %2734 = vmatpush.msra.mxu0 %v2653_v40  ;;  %3196 = vmatpush.msrb.mxu1 %v2666_v29  ;;  %v2678_v40 = vld [vmem:[#allocation7 + $0x108] sm:$0xff] }
 0x458   : > { %2735 = vmatpush.msra.mxu0 %v2651_v24  ;;  %v2107_v62 = vpop.f32.mrf.mxu2  ;;  %3197 = vmatpush.msrb.mxu1 %v2664_v41  ;;  %v2652_v24 = vld [vmem:[#allocation7 + $0x38] sm:$0xff] }
 0x459   : > { %2538 = vrot.lane.b32.xlu2 %v1648_v23, %s3672_s7  ;;  %v2684_v23 = vld [vmem:[#allocation7 + $0x138] sm:$0xff] }
 0x45a   : > { %2736 = vmatpush.msra.mxu0 %v2649_v32  ;;  %2858 = vmatpush.msrb.mxu3 %v2684_v23  ;;  %v2650_v32 = vld [vmem:[#allocation7 + $0x28] sm:$0xff] }
 0x45b   : > { %3198 = vmatpush.msrb.mxu1 %v2662_v12 }
 0x45c   : > { %2737 = vmatpush.msra.mxu0 %v2647_v39  ;;  %v2646_v39 = vld [vmem:[#allocation7 + $0x8] sm:$0xff] }
 0x45d   : > { %v1657_v0 = vpop.f32.mrf.mxu3  ;;  %3199 = vmatpush.msrb.mxu1 %v2660_v6 }
 0x45e   : > { %2738 = vmatpush.msra.mxu0 %v2645_v7 }
 0x460   : > { %v2110_v13 = vpop.f32.mrf.mxu2  ;;  %2805 = vmatpush.msrb.mxu0 %v2676_v46 }
 0x461   : > { %2540 = vrot.lane.b32.xlu2 %v1651_v27, %s3672_s7  ;;  %v2682_v27 = vld [vmem:[#allocation7 + $0x128] sm:$0xff] }
 0x462   : > { %2806 = vmatpush.msrb.mxu0 %v2674_v35  ;;  %2859 = vmatpush.msrb.mxu3 %v2682_v27 }
 0x464   : > { %2807 = vmatpush.msrb.mxu0 %v2672_v28  ;;  %2860 = vmatpush.msrb.mxu3 %v2680_v37 }
 0x466   : > { %2808 = vmatpush.msrb.mxu0 %v2670_v1  ;;  %2861 = vmatpush.msrb.mxu3 %v2678_v40 }
 0x468   : > { %2809 = vmatpush.msrb.mxu0 %v2668_v48  ;;  %v2693_v48 = vld [vmem:[%s5395_s3] sm:$0x3] }
 0x469   : > { %2542 = vrot.lane.b32.xlu2 %v1654_v18, %s3672_s7  ;;  %v2658_v18 = vld [vmem:[#allocation7 + $0x68] sm:$0xff]  ;;  %v5313_v26 = vperm.slane %v2693_v48, 0 }
 0x46a   : > { %2810 = vmatpush.msrb.mxu0 %v2666_v29  ;;  %3200 = vmatpush.msrb.mxu1 %v2658_v18 }
 0x46c   : > { %2811 = vmatpush.msrb.mxu0 %v2664_v41  ;;  %3201 = vmatpush.msrb.mxu1 %v2656_v5 }
 0x46e   : > { %2812 = vmatpush.msrb.mxu0 %v2662_v12  ;;  %3202 = vmatpush.msrb.mxu1 %v2654_v54 }
 0x470   : > { %2813 = vmatpush.msrb.mxu0 %v2660_v6  ;;  %3203 = vmatpush.msrb.mxu1 %v2652_v24 }
 0x471   : > { %2544 = vrot.lane.b32.xlu2 %v1657_v0, %s3672_s7  ;;  %v2677_v0 = vld [vmem:[#allocation7 + $0x100] sm:$0xff] }
 0x472   : > { %2814 = vmatpush.msrb.mxu0 %v2658_v18  ;;  %3204 = vmatpush.msrb.mxu1 %v2650_v32 }
 0x474   : > { %2815 = vmatpush.msrb.mxu0 %v2656_v5 }
 0x476   : > { %2816 = vmatpush.msrb.mxu0 %v2654_v54 }
 0x477   : > { %v2533_v38 = vpop.permute.xlu1 %2532 }
 0x478   : > { %v2620_v60 = vsel %vm865_vm1, %v5119_v50, %v2533_v38  ;;  %v2113_v50 = vpop.f32.mrf.mxu2  ;;  %2817 = vmatpush.msrb.mxu0 %v2652_v24 }
 0x47a   : > { %v1660_v59 = vpop.f32.mrf.mxu3  ;;  %2818 = vmatpush.msrb.mxu0 %v2650_v32 }
 0x47b   : > { %2546 = vrot.lane.b32.xlu2 %v1660_v59, %s3672_s7  ;;  %v2648_v59 = vld [vmem:[#allocation7 + $0x18] sm:$0xff]  ;;  %s3609_s7 = scalar_lea.hbm %s5396_s4, 256 }
 0x47c   : > { %3205 = vmatpush.msrb.mxu1 %v2648_v59  ;;  %2819 = vmatpush.msrb.mxu0 %v2648_v59  ;;  %p3611_p9 = scmp.lt.s32.totalorder %s3609_s7, %s3605_s26 }
 0x47e   : > { %3206 = vmatpush.msrb.mxu1 %v2646_v39  ;;  %2820 = vmatpush.msrb.mxu0 %v2646_v39  ;;  %p3612_p2 = por %p3611_p9, %p3610_p11 }
 0x480   : > { %p3613_p10 = pnand %p3612_p2, %p3608_p8 }
 0x491   : > { %v3368_v51 = vpop.permute.xlu0 %3367 }
 0x492   : > { %v3369_v55 = vunpack.i.l.bf16 %v3368_v51  ;;  %v3370_v47 = vunpack.i.h.bf16 %v3368_v51 }
 0x494   : > { %v2621_v42 = vsel %vm865_vm1, %v5125_v44, %v3369_v55  ;;  %v2622_v44 = vsel %vm865_vm1, %v5140_v9, %v3370_v47  ;;  %v2685_v9 = vld [vmem:[#allocation7 + $0x140] sm:$0xff] }
 0x495   : > { %2775 = vmatpush.msrb.mxu2 %v2685_v9 }
 0x497   : > { %v2500_v63 = vpop.f32.mrf.mxu3  ;;  %2776 = vmatpush.msrb.mxu2 %v2683_v19 }
 0x498   : > { %2596 = vrot.lane.b32.xlu1 %v2500_v63, %s3670_s11 }
 0x499   : > { %2777 = vmatpush.msrb.mxu2 %v2681_v36 }
 0x49b   : > { %v5228_v11 = vpop.permute.xlu2 %2564  ;;  %2778 = vmatpush.msrb.mxu2 %v2679_v33 }
 0x49c   : > { %v5232_v58 = vsel %vm2628_vm15, %v2620_v60, %v5228_v11 }
 0x49d   : > { %2739 = vmatmul.f32.vlgmr.msra.gmra.mxu0 %v5232_v58  ;;  %2779 = vmatpush.msrb.mxu2 %v2677_v0 }
 0x49f   : > { %v2503_v20 = vpop.f32.mrf.mxu3 }
 0x4a0   : > { %2570 = vrot.lane.b32.xlu1 %v2107_v62, %s3671_s6  ;;  %2598 = vrot.lane.b32.xlu0 %v2503_v20, %s3670_s11 }
 0x4a7   : > { %v2506_v31 = vpop.f32.mrf.mxu3 }
 0x4a8   : > { %2572 = vrot.lane.b32.xlu1 %v2110_v13, %s3671_s6  ;;  %2600 = vrot.lane.b32.xlu0 %v2506_v31, %s3670_s11 }
 0x4ab   : > { %v5252_v34 = vpop.permute.xlu2 %2568 }
 0x4ac   : > { %v5258_v57 = vsel %vm2628_vm15, %v2622_v44, %v5252_v34 }
 0x4af   : > { %v2509_v25 = vpop.f32.mrf.mxu3 }
 0x4b0   : > { %2574 = vrot.lane.b32.xlu1 %v2113_v50, %s3671_s6  ;;  %2602 = vrot.lane.b32.xlu0 %v2509_v25, %s3670_s11 }
 0x4b3   : > { %v2539_v63 = vpop.permute.xlu2 %2538 }
 0x4b4   : > { %v2623_v60 = vsel %vm865_vm1, %v5151_v16, %v2539_v63 }
 0x4b7   : > { %v2512_v21 = vpop.f32.mrf.mxu3 }
 0x4b8   : > { %2604 = vrot.lane.b32.xlu0 %v2512_v21, %s3670_s11 }
 0x4bb   : > { %v5242_v17 = vpop.permute.xlu1 %2566  ;;  %v2541_v50 = vpop.permute.xlu2 %2540 }
 0x4bc   : > { %v5248_v30 = vsel %vm2628_vm15, %v2621_v42, %v5242_v17 }
 0x4bd   : > { %2742 = vmatmul.f32.gmra.mxu0 %v5248_v30 }
 0x4bf   : > { %v2515_v8 = vpop.f32.mrf.mxu3 }
 0x4c0   : > { %2606 = vrot.lane.b32.xlu0 %v2515_v8, %s3670_s11 }
 0x4c3   : > { %v2543_v21 = vpop.permute.xlu2 %2542 }
 0x4c5   : > { %2745 = vmatmul.f32.gmra.mxu0 %v5258_v57 }
 0x4c7   : > { %v2518_v15 = vpop.f32.mrf.mxu3 }
 0x4c8   : > { %2608 = vrot.lane.b32.xlu2 %v2518_v15, %s3670_s11 }
 0x4d0   : > { %v2116_v4 = vpop.f32.mrf.mxu2 }
 0x4d1   : > { %2576 = vrot.lane.b32.xlu1 %v2116_v4, %s3671_s6 }
 0x4d2   : > { %v2521_v2 = vpop.f32.mrf.mxu3 }
 0x4d8   : > { %v2119_v43 = vpop.f32.mrf.mxu2 }
 0x4d9   : > { %2578 = vrot.lane.b32.xlu1 %v2119_v43, %s3671_s6  ;;  %v2696_v43 = vperm.slane %v2693_v48, 1 }
 0x4e1   : > { %2610 = vrot.lane.b32.xlu1 %v2521_v2, %s3670_s11 }
 0x50a   : > { %v2597_v7 = vpop.permute.xlu1 %2596 }
 0x50b   : > { %v2637_v38 = vsel %vm1276_vm2, %v5228_v11, %v2597_v7  ;;  %v2624_v11 = vsel %vm865_vm1, %v5168_v52, %v2541_v50 }
 0x50c   : > { %3160 = vmatmul.msk.f32.vlgmr.msrb.gmra.mxu2 %vm387_vm0, %v2637_v38  ;;  %3168 = vmatmul.msk.f32.vlgmr.msrb.gmra.mxu3 %vm387_vm0, %v2637_v38 }
 0x512   : > { %v2571_v62 = vpop.permute.xlu1 %2570  ;;  %v2599_v20 = vpop.permute.xlu0 %2598 }
 0x513   : > { %v2638_v13 = vsel %vm1276_vm2, %v5242_v17, %v2599_v20  ;;  %v2632_v31 = vsel %vm2628_vm15, %v2623_v60, %v2571_v62  ;;  %v2625_v17 = vsel %vm865_vm1, %v5177_v3, %v2543_v21  ;;  %v2545_v3 = vpop.permute.xlu2 %2544 }
 0x514   : > { %2748 = vmatmul.f32.gmra.mxu0 %v2632_v31  ;;  %3161 = vmatmul.msk.f32.gmra.mxu2 %vm387_vm0, %v2638_v13  ;;  %v2626_v28 = vsel %vm865_vm1, %v5184_v56, %v2545_v3 }
 0x515   : > { %2830 = vmatmul.f32.vlgmr.msrb.gmra.mxu1 %v2632_v31  ;;  %3169 = vmatmul.msk.f32.gmra.mxu3 %vm387_vm0, %v2638_v13 }
 0x51a   : > { %v2573_v25 = vpop.permute.xlu1 %2572  ;;  %v2601_v51 = vpop.permute.xlu0 %2600 }
 0x51b   : > { %v2633_v16 = vsel %vm2628_vm15, %v2624_v11, %v2573_v25  ;;  %v2639_v55 = vsel %vm1276_vm2, %v5252_v34, %v2601_v51  ;;  %v2547_v44 = vpop.permute.xlu2 %2546 }
 0x51c   : > { %2751 = vmatmul.f32.gmra.mxu0 %v2633_v16  ;;  %3162 = vmatmul.msk.f32.gmra.mxu2 %vm387_vm0, %v2639_v55  ;;  %v2627_v1 = vsel %vm865_vm1, %v5192_v14, %v2547_v44  ;;  %v2740_v14 = vpop.f32.mrf.mxu0 }
 0x51d   : > { %2833 = vmatmul.f32.gmra.mxu1 %v2633_v16  ;;  %3170 = vmatmul.msk.f32.gmra.mxu3 %vm387_vm0, %v2639_v55  ;;  %v2741_v19 = vadd.f32 %v2740_v14, %v5313_v26 }
 0x522   : > { %v2575_v42 = vpop.permute.xlu1 %2574  ;;  %v2603_v47 = vpop.permute.xlu0 %2602 }
 0x523   : > { %v2634_v52 = vsel %vm2628_vm15, %v2625_v17, %v2575_v42  ;;  %v2640_v8 = vsel %vm1276_vm2, %v2571_v62, %v2603_v47  ;;  %v2609_v61 = vpop.permute.xlu2 %2608 }
 0x524   : > { %2754 = vmatmul.f32.gmra.mxu0 %v2634_v52  ;;  %3163 = vmatmul.msk.f32.gmra.mxu2 %vm387_vm0, %v2640_v8 }
 0x525   : > { %2836 = vmatmul.f32.gmra.mxu1 %v2634_v52  ;;  %3171 = vmatmul.msk.f32.gmra.mxu3 %vm387_vm0, %v2640_v8 }
 0x52a   : > { %v2605_v34 = vpop.permute.xlu0 %2604 }
 0x52b   : > { %v2641_v46 = vsel %vm1276_vm2, %v2573_v25, %v2605_v34 }
 0x52c   : > { %3164 = vmatmul.msk.f32.gmra.mxu2 %vm387_vm0, %v2641_v46 }
 0x52d   : > { %3172 = vmatmul.msk.f32.gmra.mxu3 %vm387_vm0, %v2641_v46 }
 0x532   : > { %v2607_v35 = vpop.permute.xlu0 %2606 }
 0x533   : > { %v2642_v53 = vsel %vm1276_vm2, %v2575_v42, %v2607_v35 }
 0x534   : > { %3165 = vmatmul.msk.f32.gmra.mxu2 %vm387_vm0, %v2642_v53 }
 0x535   : > { %3173 = vmatmul.msk.f32.gmra.mxu3 %vm387_vm0, %v2642_v53 }
 0x53a   : > { %v2743_v29 = vpop.f32.mrf.mxu0 }
 0x543   : > { %v2577_v22 = vpop.permute.xlu1 %2576 }
 0x544   : > { %v2643_v49 = vsel %vm1276_vm2, %v2577_v22, %v2609_v61  ;;  %v2635_v10 = vsel %vm2628_vm15, %v2626_v28, %v2577_v22 }
 0x545   : > { %2757 = vmatmul.f32.gmra.mxu0 %v2635_v10  ;;  %3166 = vmatmul.msk.f32.gmra.mxu2 %vm387_vm0, %v2643_v49 }
 0x546   : > { %2839 = vmatmul.f32.gmra.mxu1 %v2635_v10  ;;  %3174 = vmatmul.msk.f32.gmra.mxu3 %vm387_vm0, %v2643_v49 }
 0x54b   : > { %v2579_v45 = vpop.permute.xlu1 %2578 }
 0x54c   : > { %v2636_v9 = vsel %vm2628_vm15, %v2627_v1, %v2579_v45 }
 0x54d   : > { %2760 = vmatmul.f32.gmra.mxu0 %v2636_v9 }
 0x54e   : > { %2842 = vmatmul.f32.gmra.mxu1 %v2636_v9 }
 0x553   : > { %v2611_v56 = vpop.permute.xlu1 %2610 }
 0x554   : > { %v2644_v15 = vsel %vm1276_vm2, %v2579_v45, %v2611_v56 }
 0x555   : > { %3167 = vmatmul.msk.f32.gmra.mxu2 %vm387_vm0, %v2644_v15  ;;  %2821 = vmatmul.f32.vlgmr.msrb.gmra.mxu0 %v5232_v58  ;;  %v2744_v58 = vadd.f32 %v2743_v29, %v5313_v26 }
 0x556   : > { %3175 = vmatmul.msk.f32.gmra.mxu3 %vm387_vm0, %v2644_v15 }
 0x55d   : > { %2824 = vmatmul.f32.gmra.mxu0 %v5248_v30 }
 0x565   : > { %2827 = vmatmul.f32.gmra.mxu0 %v5258_v57  ;;  %v2746_v57 = vpop.f32.mrf.mxu0 }
 0x566   : > { %v2747_v12 = vadd.f32 %v2746_v57, %v5313_v26 }
 0x58f   : > { %v2781_v23 = vpop.f32.mrf.mxu2  ;;  %v2863_v36 = vpop.f32.mrf.mxu3 }
 0x590   : > { %v2782_v41 = vadd.f32 %v2781_v23, %v2741_v19 }
 0x591   : > { %v2749_v37 = vpop.f32.mrf.mxu0 }
 0x592   : > { %2887 = vst [vmem:[%s5318_s25] sm:$0xff] %v2782_v41  ;;  %v2831_v4 = vpop.f32.mrf.mxu1  ;;  %v2750_v2 = vadd.f32 %v2749_v37, %v5313_v26 }
 0x593   : > { %v2832_v0 = vadd.f32 %v2831_v4, %v2696_v43 }
 0x597   : > { %v2784_v30 = vpop.f32.mrf.mxu2 }
 0x598   : > { %v2785_v27 = vadd.f32 %v2784_v30, %v2744_v58  ;;  %v5322_v33 = vpop.f32.mrf.mxu3 }
 0x599   : > { %v2752_v32 = vpop.f32.mrf.mxu0 }
 0x59a   : > { %2889 = vst [vmem:[%s5318_s25 + $0x10] sm:$0xff] %v2785_v27  ;;  %v2834_v39 = vpop.f32.mrf.mxu1  ;;  %v2753_v7 = vadd.f32 %v2752_v32, %v5313_v26 }
 0x59b   : > { %v2835_v63 = vadd.f32 %v2834_v39, %v2696_v43 }
 0x59f   : > { %v2787_v6 = vpop.f32.mrf.mxu2 }
 0x5a0   : > { %v2788_v18 = vadd.f32 %v2787_v6, %v2747_v12  ;;  %v5326_v5 = vpop.f32.mrf.mxu3 }
 0x5a1   : > { %v2755_v13 = vpop.f32.mrf.mxu0 }
 0x5a2   : > { %2891 = vst [vmem:[%s5318_s25 + $0x20] sm:$0xff] %v2788_v18  ;;  %v2837_v31 = vpop.f32.mrf.mxu1  ;;  %v2756_v50 = vadd.f32 %v2755_v13, %v5313_v26 }
 0x5a3   : > { %v2838_v11 = vadd.f32 %v2837_v31, %v2696_v43 }
 0x5a7   : > { %v2790_v54 = vpop.f32.mrf.mxu2 }
 0x5a8   : > { %v2791_v40 = vadd.f32 %v2790_v54, %v2750_v2  ;;  %v2872_v24 = vpop.f32.mrf.mxu3 }
 0x5a9   : > { %v2873_v59 = vadd.f32 %v2872_v24, %v2832_v0 }
 0x5aa   : > { %2893 = vst [vmem:[%s5318_s25 + $0x30] sm:$0xff] %v2791_v40 }
 0x5ab   : > { %2894 = vst.msk [vmem:[%s5318_s25 + $0x38] sm:$0xff] %vm387_vm0, %v2873_v59 }
 0x5af   : > { %v2793_v38 = vpop.f32.mrf.mxu2 }
 0x5b0   : > { %v2794_v60 = vadd.f32 %v2793_v38, %v2753_v7  ;;  %v2875_v62 = vpop.f32.mrf.mxu3 }
 0x5b1   : > { %v2876_v20 = vadd.f32 %v2875_v62, %v2835_v63 }
 0x5b2   : > { %2895 = vst [vmem:[%s5318_s25 + $0x40] sm:$0xff] %v2794_v60 }
 0x5b3   : > { %2896 = vst.msk [vmem:[%s5318_s25 + $0x48] sm:$0xff] %vm387_vm0, %v2876_v20 }
 0x5b7   : > { %v2796_v25 = vpop.f32.mrf.mxu2 }
 0x5b8   : > { %v2797_v51 = vadd.f32 %v2796_v25, %v2756_v50  ;;  %v2878_v16 = vpop.f32.mrf.mxu3 }
 0x5b9   : > { %v2879_v55 = vadd.f32 %v2878_v16, %v2838_v11 }
 0x5ba   : > { %2897 = vst [vmem:[%s5318_s25 + $0x50] sm:$0xff] %v2797_v51 }
 0x5bb   : > { %2898 = vst.msk [vmem:[%s5318_s25 + $0x58] sm:$0xff] %vm387_vm0, %v2879_v55 }
 0x5c2   : > { %v2758_v21 = vpop.f32.mrf.mxu0 }
 0x5c3   : > { %v2840_v17 = vpop.f32.mrf.mxu1  ;;  %v2759_v42 = vadd.f32 %v2758_v21, %v5313_v26 }
 0x5c4   : > { %v2841_v47 = vadd.f32 %v2840_v17, %v2696_v43 }
 0x5c8   : > { %v2799_v52 = vpop.f32.mrf.mxu2 }
 0x5c9   : > { %v2800_v8 = vadd.f32 %v2799_v52, %v2759_v42  ;;  %v2881_v34 = vpop.f32.mrf.mxu3 }
 0x5ca   : > { %v2882_v46 = vadd.f32 %v2881_v34, %v2841_v47  ;;  %v2761_v3 = vpop.f32.mrf.mxu0 }
 0x5cb   : > { %2899 = vst [vmem:[%s5318_s25 + $0x60] sm:$0xff] %v2800_v8  ;;  %v2843_v44 = vpop.f32.mrf.mxu1  ;;  %v2762_v61 = vadd.f32 %v2761_v3, %v5313_v26 }
 0x5cc   : > { %2900 = vst.msk [vmem:[%s5318_s25 + $0x68] sm:$0xff] %vm387_vm0, %v2882_v46  ;;  %v2844_v22 = vadd.f32 %v2843_v44, %v2696_v43 }
 0x5d2   : > { %v2822_v35 = vpop.f32.mrf.mxu0 }
 0x5d3   : > { %v2823_v53 = vadd.f32 %v2822_v35, %v2696_v43 }
 0x5d5   : > { %v2864_v28 = vadd.f32 %v2863_v36, %v2823_v53 }
 0x5d7   : > { %2888 = vst.msk [vmem:[%s5318_s25 + $0x8] sm:$0xff] %vm387_vm0, %v2864_v28 }
 0x5d8   : > { %v2802_v49 = vpop.f32.mrf.mxu2 }
 0x5d9   : > { %v2803_v10 = vadd.f32 %v2802_v49, %v2762_v61  ;;  %v2884_v1 = vpop.f32.mrf.mxu3 }
 0x5da   : > { %v2885_v45 = vadd.f32 %v2884_v1, %v2844_v22  ;;  %v2825_v9 = vpop.f32.mrf.mxu0 }
 0x5db   : > { %2901 = vst [vmem:[%s5318_s25 + $0x70] sm:$0xff] %v2803_v10  ;;  %v2826_v56 = vadd.f32 %v2825_v9, %v2696_v43 }
 0x5dc   : > { %2902 = vst.msk [vmem:[%s5318_s25 + $0x78] sm:$0xff] %vm387_vm0, %v2885_v45 }
 0x5dd   : > { %v2867_v15 = vadd.f32 %v5322_v33, %v2826_v56 }
 0x5df   : > { %2890 = vst.msk [vmem:[%s5318_s25 + $0x18] sm:$0xff] %vm387_vm0, %v2867_v15 }
 0x5e2   : > { %v2828_v14 = vpop.f32.mrf.mxu0 }
 0x5e3   : > { %v2829_v48 = vadd.f32 %v2828_v14, %v2696_v43 }
 0x5e5   : > { %v2870_v26 = vadd.f32 %v5326_v5, %v2829_v48 }
 0x5e7   : > { %2892 = vst.msk [vmem:[%s5318_s25 + $0x28] sm:$0xff] %vm387_vm0, %v2870_v26 }
 0x5e8   : > { %3616 = shalt.err (!%p3613_p10)
}
 0x5e9   : > { %s3674_s24 = smov 256  }
 0x5ea   : > { %3217 = dma.vmem_to_hbm [thread:$0]  (%p3772_p5), %s2917_s13, 2048, %s2919_s14, %s2904_s19, %s3674_s24, %s3674_s24, %s3670_s11  }
 0x5eb PF: > { %s2933_s27 = sand.u32 1, %s3647_s15   ;;  %p5428_p12 = scmp.ge.s32.totalorder %s3659_s18, 2 }
 0x5ec   : > { %s2934_s25 = scalar_lea.sflag [#allocation4], %s2933_s27 }
 0x5ed   : > { %p3231_p13 = pnand %p5428_p12, %p3735_p6 }
 0x5ef   : > { %p3232_p0 = pneg %p3231_p13 }
 0x5f1   : > { %3642 = dma.done.wait (%p3232_p0), %s2934_s25, 2048  }
 0x5f2   : > { %3644 = vsyncadd (%p3232_p0), %s2934_s25, 4294965248  ;;  %p18_p3 = scmp.ge.s32.totalorder %s3759_s12, 4   ;;  %s5429_s15 = smov %s3651_s16 }
 0x5f3   : > { %s5430_s16 = smov %s3655_s17  ;;  %s5431_s17 = smov %s3768_s20 }
 0x5f4   : > { %s5432_s18 = smov %s3759_s12  ;;  %20 = sbr.rel (!%p18_p3) target bundleno = 6 (0x6), region = 89 }
 0x5f9   :  { %2940 = vsyncpa [#allocation3], 1 }
 0x5fa   :  { %2942 = vsyncpa [#allocation3 + $0x1], 1 }
 0x5fb   :  { %2943 = vsyncpa [#allocation6], 1 }
 0x5fc   :  { %2944 = vsyncpa [#allocation4], 1 }
 0x5fd   :  { %2946 = vsyncpa [#allocation4 + $0x1], 1 }

</bundles_post_ra>
